<compile_context>
chip_gen: v7x
topology: tpu7x:2x2x1
jax: 0.10.0
libtpu: 0.0.40
codegen_flags: <defaults>
</compile_context>

<pallas_src>
import functools

import jax
import jax.numpy as jnp
from jax.experimental import pallas as pl
from jax.experimental.pallas import tpu as pltpu

_PAD_ROWS = 8  # sublane-aligned guard rows above/below the staged conv1 output


def _round_up(x, m):
    return (x + m - 1) // m * m


def bottleneck_kernel(x_ref, colmask_ref,
                      w1_ref, s1_ref, b1_ref,
                      w2_ref, s2_ref, b2_ref,
                      w3_ref, s3_ref, b3_ref,
                      o_ref, h1p_ref, acc_ref,
                      *, TH, Wp):
    """One (image n, row-block h) tile of the Bottleneck block.

    x_ref   : (H+2, Wp, Cp)  f32   whole zero-padded image (resident across h)
    colmask : (M2, 1)        f32   1.0 at real cols (1..W), 0.0 at halo cols
    w*_ref  : bf16 weights, channel dims padded to multiples of 128
    s*/b*   : (1, C) f32 folded eval-mode BatchNorm scale / bias
    o_ref   : (TH, Wp, Coutp) f32  output tile (cols 1..W valid, rest junk)
    h1p_ref : (2*PAD + (TH+2)*Wp, width_p) bf16 scratch (flattened conv1 out)
    acc_ref : (TH*Wp, width_p) f32 scratch accumulator for the 3x3 conv

    Flattened index convention: position (row r, col c) of the halo window
    lives at h1p row PAD + r*Wp + c; output flat index j = y*Wp + (x+1), so
    tap (dy, dx) of the 3x3 conv reads h1p rows [PAD-1 + dy*Wp + dx + j].
    """
    Cp = x_ref.shape[-1]
    width_p = w1_ref.shape[1]
    Coutp = w3_ref.shape[1]
    PAD = _PAD_ROWS
    M2 = (TH + 2) * Wp          # rows of the flattened halo window
    L = TH * Wp                 # rows of one flattened output tile

    h = pl.program_id(1)
    row0 = pl.multiple_of(h * TH, TH)

    # ---- conv1 (1x1) + bn1 + relu over the TH+2-row halo window ------------
    x_halo = x_ref[pl.ds(row0, TH + 2), :, :]          # (TH+2, Wp, Cp) f32
    x_flat = x_halo.reshape(M2, Cp).astype(jnp.bfloat16)
    h1 = jnp.dot(x_flat, w1_ref[...], preferred_element_type=jnp.float32)
    h1 = jnp.maximum(h1 * s1_ref[...] + b1_ref[...], 0.0)
    # zero the left/right halo columns (conv2's zero padding), then stage bf16
    h1 = (h1 * colmask_ref[...]).astype(jnp.bfloat16)

    h1p_ref[pl.ds(0, PAD), :] = jnp.zeros((PAD, width_p), jnp.bfloat16)
    h1p_ref[pl.ds(PAD, M2), :] = h1
    h1p_ref[pl.ds(PAD + M2, PAD), :] = jnp.zeros((PAD, width_p), jnp.bfloat16)

    # top/bottom halo rows are true zero padding only at the image border
    @pl.when(h == 0)
    def _():
        h1p_ref[pl.ds(PAD, Wp), :] = jnp.zeros((Wp, width_p), jnp.bfloat16)

    @pl.when(h == pl.num_programs(1) - 1)
    def _():
        h1p_ref[pl.ds(PAD + (TH + 1) * Wp, Wp), :] = jnp.zeros(
            (Wp, width_p), jnp.bfloat16)

    # ---- conv2 (3x3, stride 1, pad 1) + bn2 + relu ---------------------------
    # 9 sublane-offset slices of the staged flat buffer; in-place f32 accum.
    for k in range(9):
        dy, dx = divmod(k, 3)
        off = PAD - 1 + dy * Wp + dx
        tap = jnp.dot(h1p_ref[pl.ds(off, L), :], w2_ref[k],
                      preferred_element_type=jnp.float32)
        if k == 0:
            acc_ref[...] = tap
        else:
            acc_ref[...] += tap
    h2 = jnp.maximum(acc_ref[...] * s2_ref[...] + b2_ref[...], 0.0)
    h2 = h2.astype(jnp.bfloat16)

    # ---- conv3 (1x1) + bn3 + residual + relu ---------------------------------
    h3 = jnp.dot(h2, w3_ref[...], preferred_element_type=jnp.float32)
    h3 = (h3 * s3_ref[...] + b3_ref[...]).reshape(TH, Wp, Coutp)
    # residual: re-read the resident x tile (rows row0+1 .. row0+TH align with
    # the output's column convention, so no shift is needed)
    identity = x_ref[pl.ds(row0 + 1, TH), :, :]
    o_ref[...] = jnp.maximum(h3 + identity, 0.0)


def bottleneck_forward(x_nchw, params, *, block_h=8):
    """x_nchw: [N, C, H, W] float32 (PyTorch convention)."""
    w1, s1, b1, w2, s2, b2, w3, s3, b3 = params
    Cin, width = w1.shape
    cout = w3.shape[1]
    # TODO(synk): downsample / stride>1 / groups>1 variants not implemented;
    #             identity residual requires in_channel == out_channel * 4.
    assert Cin == cout, "identity residual requires in_channel == out_channel*4"

    x = jnp.transpose(x_nchw, (0, 2, 3, 1)).astype(jnp.float32)  # -> NHWC
    N, H, W, _ = x.shape

    TH = block_h if H % block_h == 0 else H
    Wp = _round_up(W + 2, 8)
    Cp = _round_up(Cin, 128)
    width_p = _round_up(width, 128)
    Coutp = _round_up(cout, 128)
    assert Cp == Coutp
    M2 = (TH + 2) * Wp

    # spatial halo (1 top/bottom, 1 left, >=1 right) + lane-dense channel pad
    xp = jnp.pad(x, ((0, 0), (1, 1), (1, Wp - W - 1), (0, Cp - Cin)))

    # column mask for the flattened halo window: 1.0 at real cols 1..W
    col_ok = ((jnp.arange(Wp) >= 1) & (jnp.arange(Wp) <= W)).astype(jnp.float32)
    colmask = jnp.tile(col_ok, TH + 2).reshape(M2, 1)

    def pad2(a, r, c):
        return jnp.pad(a, ((0, r - a.shape[0]), (0, c - a.shape[1])))

    # weights cast to bf16 once here; channel pads are zeros so results match
    w1p = pad2(w1, Cp, width_p).astype(jnp.bfloat16)
    w2p = jnp.pad(w2.reshape(9, width, width),
                  ((0, 0), (0, width_p - width),
                   (0, width_p - width))).astype(jnp.bfloat16)
    w3p = pad2(w3, width_p, Coutp).astype(jnp.bfloat16)
    s1p, b1p = pad2(s1, 1, width_p), pad2(b1, 1, width_p)
    s2p, b2p = pad2(s2, 1, width_p), pad2(b2, 1, width_p)
    s3p, b3p = pad2(s3, 1, Coutp), pad2(b3, 1, Coutp)

    def const_spec(shape):
        zeros = (0,) * len(shape)
        return pl.BlockSpec(shape, lambda n, h, z=zeros: z)

    in_specs = [
        # whole padded image, resident across the h axis (DMA'd once per n)
        pl.BlockSpec((None, H + 2, Wp, Cp), lambda n, h: (n, 0, 0, 0)),
        const_spec((M2, 1)),                       # column mask
        const_spec((Cp, width_p)),                 # w1
        const_spec((1, width_p)), const_spec((1, width_p)),   # s1, b1
        const_spec((9, width_p, width_p)),         # w2
        const_spec((1, width_p)), const_spec((1, width_p)),   # s2, b2
        const_spec((width_p, Coutp)),              # w3
        const_spec((1, Coutp)), const_spec((1, Coutp)),        # s3, b3
    ]
    out_spec = pl.BlockSpec((None, TH, Wp, Coutp), lambda n, h: (n, h, 0, 0))

    flops = 2 * N * H * W * (Cin * width + 9 * width * width + width * cout)
    bytes_accessed = 4 * (x.size + N * H * W * cout
                          + w1.size + w2.size + w3.size)

    kernel = functools.partial(bottleneck_kernel, TH=TH, Wp=Wp)
    out = pl.pallas_call(
        kernel,
        out_shape=jax.ShapeDtypeStruct((N, H, Wp, Coutp), jnp.float32),
        grid=(N, H // TH),
        in_specs=in_specs,
        out_specs=out_spec,
        scratch_shapes=[
            pltpu.VMEM((2 * _PAD_ROWS + M2, width_p), jnp.bfloat16),
            pltpu.VMEM((TH * Wp, width_p), jnp.float32),
        ],
        compiler_params=pltpu.CompilerParams(
            dimension_semantics=("parallel", "parallel"),
            vmem_limit_bytes=32 * 1024 * 1024),
        cost_estimate=pl.CostEstimate(flops=flops, transcendentals=0,
                                      bytes_accessed=bytes_accessed),
    )(xp, colmask, w1p, s1p, b1p, w2p, s2p, b2p, w3p, s3p, b3p)

    # drop halo/junk columns and padded channels, back to NCHW
    out = out[:, :, 1:W + 1, :cout]
    return jnp.transpose(out, (0, 3, 1, 2))


def make_params(key, in_channel, out_channel, groups=1, width_per_group=64):
    """Shapes follow Bottleneck.__init__; deterministic init."""
    expansion = 4
    width = int(out_channel * (width_per_group / 64.0)) * groups
    cout = out_channel * expansion
    assert groups == 1  # TODO(synk): grouped 3x3 conv (groups>1) not implemented
    ks = jax.random.split(key, 15)

    def bn_fold(k0, k1, k2, k3, c):
        gamma = jax.random.uniform(k0, (c,), jnp.float32, 0.5, 1.5)
        beta = 0.1 * jax.random.normal(k1, (c,), jnp.float32)
        mean = 0.1 * jax.random.normal(k2, (c,), jnp.float32)
        var = jax.random.uniform(k3, (c,), jnp.float32, 0.5, 1.5)
        scale = gamma / jnp.sqrt(var + 1e-5)
        bias = beta - mean * scale
        return scale.reshape(1, c), bias.reshape(1, c)

    # conv weights stored pre-transposed for NHWC matmuls:
    #   conv1: (Cin, width), conv2: (3, 3, width, width) HWIO, conv3: (width, Cout)
    w1 = 0.1 * jax.random.normal(ks[0], (in_channel, width), jnp.float32)
    w2 = 0.1 * jax.random.normal(ks[1], (3, 3, width, width), jnp.float32)
    w3 = 0.1 * jax.random.normal(ks[2], (width, cout), jnp.float32)
    # TODO(synk): BatchNorm implemented in eval mode (running stats folded);
    #             training-mode batch statistics are not computed.
    s1, b1 = bn_fold(ks[3], ks[4], ks[5], ks[6], width)
    s2, b2 = bn_fold(ks[7], ks[8], ks[9], ks[10], width)
    s3, b3 = bn_fold(ks[11], ks[12], ks[13], ks[14], cout)
    return (w1, s1, b1, w2, s2, b2, w3, s3, b3)


def reference_forward(x_nchw, params):
    """Pure-JAX f32 reference (lax convs) for numerical verification."""
    w1, s1, b1, w2, s2, b2, w3, s3, b3 = params
    x = jnp.transpose(x_nchw, (0, 2, 3, 1))
    dn = ('NHWC', 'HWIO', 'NHWC')
    Cin = x.shape[-1]
    width = w1.shape[1]

    h = jax.lax.conv_general_dilated(x, w1.reshape(1, 1, Cin, width),
                                     (1, 1), 'VALID', dimension_numbers=dn)
    h = jnp.maximum(h * s1.reshape(1, 1, 1, -1) + b1.reshape(1, 1, 1, -1), 0.0)
    h = jax.lax.conv_general_dilated(h, w2, (1, 1), ((1, 1), (1, 1)),
                                     dimension_numbers=dn)
    h = jnp.maximum(h * s2.reshape(1, 1, 1, -1) + b2.reshape(1, 1, 1, -1), 0.0)
    h = jax.lax.conv_general_dilated(h, w3.reshape(1, 1, width, -1),
                                     (1, 1), 'VALID', dimension_numbers=dn)
    h = h * s3.reshape(1, 1, 1, -1) + b3.reshape(1, 1, 1, -1)
    h = jnp.maximum(h + x, 0.0)
    return jnp.transpose(h, (0, 3, 1, 2))


if __name__ == "__main__":
    # downsample=None requires in_channel == out_channel * expansion
    out_channel = 4
    in_channel = out_channel * 4          # = 16
    N, H, W = 2, 16, 16

    key = jax.random.PRNGKey(0)
    kx, kp = jax.random.split(key)
    x = jax.random.normal(kx, (N, in_channel, H, W), jnp.float32)   # NCHW
    params = make_params(kp, in_channel, out_channel)

    y = bottleneck_forward(x, params)     # grid = (2 images, 2 row-blocks)
    y = jax.block_until_ready(y)

    y_ref = reference_forward(x, params)
    assert y.shape == (N, out_channel * 4, H, W)
    max_err = jnp.max(jnp.abs(y - y_ref))
    # bf16 matmul inputs (f32 accumulation) -> slightly looser tolerance
    assert jnp.allclose(y, y_ref, atol=3e-2, rtol=3e-2), \
        f"max abs err {max_err}"

    print("KERNEL_OK")
</pallas_src>

<mosaic_0001>
module attributes {stable_mosaic.version = 11 : i64} {
  func.func @bottleneck_kernel(%arg0: i32, %arg1: i32, %arg2: memref<1x18x24x128xf32, #tpu.memory_space<vmem>>, %arg3: memref<240x1xf32, #tpu.memory_space<vmem>>, %arg4: memref<128x128xbf16, #tpu.memory_space<vmem>>, %arg5: memref<1x128xf32, #tpu.memory_space<vmem>>, %arg6: memref<1x128xf32, #tpu.memory_space<vmem>>, %arg7: memref<9x128x128xbf16, #tpu.memory_space<vmem>>, %arg8: memref<1x128xf32, #tpu.memory_space<vmem>>, %arg9: memref<1x128xf32, #tpu.memory_space<vmem>>, %arg10: memref<128x128xbf16, #tpu.memory_space<vmem>>, %arg11: memref<1x128xf32, #tpu.memory_space<vmem>>, %arg12: memref<1x128xf32, #tpu.memory_space<vmem>>, %arg13: memref<1x8x24x128xf32, #tpu.memory_space<vmem>>, %arg14: memref<256x128xbf16, #tpu.memory_space<vmem>>, %arg15: memref<192x128xf32, #tpu.memory_space<vmem>>) attributes {dimension_semantics = [#tpu.dimension_semantics<parallel>, #tpu.dimension_semantics<parallel>], iteration_bounds = array<i64: 2, 2>, scalar_prefetch = 0 : i64, scratch_operands = 2 : i64, tpu.core_type = #tpu.core_type<tc>, window_params = [{transform_indices = @transform_0, window_bounds = array<i64: 1, 18, 24, 128>}, {pipeline_mode = #tpu.pipeline_mode<synchronous>, transform_indices = @transform_1, window_bounds = array<i64: 240, 1>}, {pipeline_mode = #tpu.pipeline_mode<synchronous>, transform_indices = @transform_2, window_bounds = array<i64: 128, 128>}, {pipeline_mode = #tpu.pipeline_mode<synchronous>, transform_indices = @transform_3, window_bounds = array<i64: 1, 128>}, {pipeline_mode = #tpu.pipeline_mode<synchronous>, transform_indices = @transform_4, window_bounds = array<i64: 1, 128>}, {pipeline_mode = #tpu.pipeline_mode<synchronous>, transform_indices = @transform_5, window_bounds = array<i64: 9, 128, 128>}, {pipeline_mode = #tpu.pipeline_mode<synchronous>, transform_indices = @transform_6, window_bounds = array<i64: 1, 128>}, {pipeline_mode = #tpu.pipeline_mode<synchronous>, transform_indices = @transform_7, window_bounds = array<i64: 1, 128>}, {pipeline_mode = #tpu.pipeline_mode<synchronous>, transform_indices = @transform_8, window_bounds = array<i64: 128, 128>}, {pipeline_mode = #tpu.pipeline_mode<synchronous>, transform_indices = @transform_9, window_bounds = array<i64: 1, 128>}, {pipeline_mode = #tpu.pipeline_mode<synchronous>, transform_indices = @transform_10, window_bounds = array<i64: 1, 128>}, {transform_indices = @transform_11, window_bounds = array<i64: 1, 8, 24, 128>}]} {
    %c8_i32 = arith.constant 8 : i32
    %0 = arith.muli %arg1, %c8_i32 : i32
    %1 = tpu.assume_multiple %0, 8 : i32
    %c0 = arith.constant 0 : index
    %2 = arith.index_cast %1 : i32 to index
    %c0_0 = arith.constant 0 : index
    %c0_1 = arith.constant 0 : index
    %3 = vector.load %arg2[%c0, %2, %c0_0, %c0_1] : memref<1x18x24x128xf32, #tpu.memory_space<vmem>>, vector<1x10x24x128xf32>
    %4 = vector.shape_cast %3 : vector<1x10x24x128xf32> to vector<10x24x128xf32>
    %5 = vector.shape_cast %4 : vector<10x24x128xf32> to vector<240x128xf32>
    %6 = arith.truncf %5 : vector<240x128xf32> to vector<240x128xbf16>
    %c0_2 = arith.constant 0 : index
    %c0_3 = arith.constant 0 : index
    %7 = vector.load %arg4[%c0_2, %c0_3] : memref<128x128xbf16, #tpu.memory_space<vmem>>, vector<128x128xbf16>
    %cst = arith.constant dense<0.000000e+00> : vector<240x128xf32>
    %8 = tpu.matmul %6, %7, %cst {dimension_numbers = #tpu.dot_dimension_numbers<[1], [0], [0], [1], [0, 0, 1, 1], [], []>} : vector<240x128xbf16>, vector<128x128xbf16>, vector<240x128xf32> -> vector<240x128xf32>
    %c0_4 = arith.constant 0 : index
    %c0_5 = arith.constant 0 : index
    %9 = vector.load %arg5[%c0_4, %c0_5] : memref<1x128xf32, #tpu.memory_space<vmem>>, vector<1x128xf32>
    %10 = vector.broadcast %9 : vector<1x128xf32> to vector<240x128xf32>
    %11 = arith.mulf %8, %10 : vector<240x128xf32>
    %c0_6 = arith.constant 0 : index
    %c0_7 = arith.constant 0 : index
    %12 = vector.load %arg6[%c0_6, %c0_7] : memref<1x128xf32, #tpu.memory_space<vmem>>, vector<1x128xf32>
    %13 = vector.broadcast %12 : vector<1x128xf32> to vector<240x128xf32>
    %14 = arith.addf %11, %13 : vector<240x128xf32>
    %cst_8 = arith.constant 0.000000e+00 : f32
    %15 = vector.broadcast %cst_8 : f32 to vector<240x128xf32>
    %16 = arith.maximumf %14, %15 : vector<240x128xf32>
    %c0_9 = arith.constant 0 : index
    %c0_10 = arith.constant 0 : index
    %17 = vector.load %arg3[%c0_9, %c0_10] : memref<240x1xf32, #tpu.memory_space<vmem>>, vector<240x1xf32>
    %18 = vector.broadcast %17 : vector<240x1xf32> to vector<240x128xf32>
    %19 = arith.mulf %16, %18 : vector<240x128xf32>
    %20 = arith.truncf %19 : vector<240x128xf32> to vector<240x128xbf16>
    %cst_11 = arith.constant 0.000000e+00 : bf16
    %21 = vector.broadcast %cst_11 : bf16 to vector<8x128xbf16>
    %c0_12 = arith.constant 0 : index
    %c0_13 = arith.constant 0 : index
    %22 = vector.load %arg14[%c0_12, %c0_13] : memref<256x128xbf16, #tpu.memory_space<vmem>>, vector<8x128xbf16>
    tpu.vector_store %arg14[%c0_12, %c0_13], %21 {strides = array<i32>} : memref<256x128xbf16, #tpu.memory_space<vmem>>, vector<8x128xbf16>,
    %c8 = arith.constant 8 : index
    %c0_14 = arith.constant 0 : index
    %23 = vector.load %arg14[%c8, %c0_14] : memref<256x128xbf16, #tpu.memory_space<vmem>>, vector<240x128xbf16>
    tpu.vector_store %arg14[%c8, %c0_14], %20 {strides = array<i32>} : memref<256x128xbf16, #tpu.memory_space<vmem>>, vector<240x128xbf16>,
    %cst_15 = arith.constant 0.000000e+00 : bf16
    %24 = vector.broadcast %cst_15 : bf16 to vector<8x128xbf16>
    %c248 = arith.constant 248 : index
    %c0_16 = arith.constant 0 : index
    %25 = vector.load %arg14[%c248, %c0_16] : memref<256x128xbf16, #tpu.memory_space<vmem>>, vector<8x128xbf16>
    tpu.vector_store %arg14[%c248, %c0_16], %24 {strides = array<i32>} : memref<256x128xbf16, #tpu.memory_space<vmem>>, vector<8x128xbf16>,
    %c0_i32 = arith.constant 0 : i32
    %26 = arith.cmpi eq, %arg1, %c0_i32 : i32
    %27 = arith.extui %26 : i1 to i32
    %c0_i32_17 = arith.constant 0 : i32
    %28 = arith.cmpi ne, %27, %c0_i32_17 : i32
    scf.if %28 {
      %cst_116 = arith.constant 0.000000e+00 : bf16
      %122 = vector.broadcast %cst_116 : bf16 to vector<24x128xbf16>
      %c8_117 = arith.constant 8 : index
      %c0_118 = arith.constant 0 : index
      %123 = vector.load %arg14[%c8_117, %c0_118] : memref<256x128xbf16, #tpu.memory_space<vmem>>, vector<24x128xbf16>
      tpu.vector_store %arg14[%c8_117, %c0_118], %122 {strides = array<i32>} : memref<256x128xbf16, #tpu.memory_space<vmem>>, vector<24x128xbf16>,
    } else {
    }
    %c1_i32 = arith.constant 1 : i32
    %29 = arith.cmpi eq, %arg1, %c1_i32 : i32
    %30 = arith.extui %29 : i1 to i32
    %c0_i32_18 = arith.constant 0 : i32
    %31 = arith.cmpi ne, %30, %c0_i32_18 : i32
    scf.if %31 {
      %cst_116 = arith.constant 0.000000e+00 : bf16
      %122 = vector.broadcast %cst_116 : bf16 to vector<24x128xbf16>
      %c224 = arith.constant 224 : index
      %c0_117 = arith.constant 0 : index
      %123 = vector.load %arg14[%c224, %c0_117] : memref<256x128xbf16, #tpu.memory_space<vmem>>, vector<24x128xbf16>
      tpu.vector_store %arg14[%c224, %c0_117], %122 {strides = array<i32>} : memref<256x128xbf16, #tpu.memory_space<vmem>>, vector<24x128xbf16>,
    } else {
    }
    %c7 = arith.constant 7 : index
    %c0_19 = arith.constant 0 : index
    %32 = vector.load %arg14[%c7, %c0_19] : memref<256x128xbf16, #tpu.memory_space<vmem>>, vector<192x128xbf16>
    %c0_20 = arith.constant 0 : index
    %c0_21 = arith.constant 0 : index
    %c0_22 = arith.constant 0 : index
    %33 = vector.load %arg7[%c0_20, %c0_21, %c0_22] : memref<9x128x128xbf16, #tpu.memory_space<vmem>>, vector<1x128x128xbf16>
    %34 = vector.shape_cast %33 : vector<1x128x128xbf16> to vector<128x128xbf16>
    %cst_23 = arith.constant dense<0.000000e+00> : vector<192x128xf32>
    %35 = tpu.matmul %32, %34, %cst_23 {dimension_numbers = #tpu.dot_dimension_numbers<[1], [0], [0], [1], [0, 0, 1, 1], [], []>} : vector<192x128xbf16>, vector<128x128xbf16>, vector<192x128xf32> -> vector<192x128xf32>
    %c0_24 = arith.constant 0 : index
    %c0_25 = arith.constant 0 : index
    %36 = vector.load %arg15[%c0_24, %c0_25] : memref<192x128xf32, #tpu.memory_space<vmem>>, vector<192x128xf32>
    tpu.vector_store %arg15[%c0_24, %c0_25], %35 {strides = array<i32>} : memref<192x128xf32, #tpu.memory_space<vmem>>, vector<192x128xf32>,
    %c8_26 = arith.constant 8 : index
    %c0_27 = arith.constant 0 : index
    %37 = vector.load %arg14[%c8_26, %c0_27] : memref<256x128xbf16, #tpu.memory_space<vmem>>, vector<192x128xbf16>
    %c1 = arith.constant 1 : index
    %c0_28 = arith.constant 0 : index
    %c0_29 = arith.constant 0 : index
    %38 = vector.load %arg7[%c1, %c0_28, %c0_29] : memref<9x128x128xbf16, #tpu.memory_space<vmem>>, vector<1x128x128xbf16>
    %39 = vector.shape_cast %38 : vector<1x128x128xbf16> to vector<128x128xbf16>
    %cst_30 = arith.constant dense<0.000000e+00> : vector<192x128xf32>
    %40 = tpu.matmul %37, %39, %cst_30 {dimension_numbers = #tpu.dot_dimension_numbers<[1], [0], [0], [1], [0, 0, 1, 1], [], []>} : vector<192x128xbf16>, vector<128x128xbf16>, vector<192x128xf32> -> vector<192x128xf32>
    %c0_31 = arith.constant 0 : index
    %c0_32 = arith.constant 0 : index
    %41 = vector.load %arg15[%c0_31, %c0_32] : memref<192x128xf32, #tpu.memory_space<vmem>>, vector<192x128xf32>
    %42 = arith.addf %41, %40 : vector<192x128xf32>
    %c0_33 = arith.constant 0 : index
    %c0_34 = arith.constant 0 : index
    %43 = vector.load %arg15[%c0_33, %c0_34] : memref<192x128xf32, #tpu.memory_space<vmem>>, vector<192x128xf32>
    tpu.vector_store %arg15[%c0_33, %c0_34], %42 {strides = array<i32>} : memref<192x128xf32, #tpu.memory_space<vmem>>, vector<192x128xf32>,
    %c9 = arith.constant 9 : index
    %c0_35 = arith.constant 0 : index
    %44 = vector.load %arg14[%c9, %c0_35] : memref<256x128xbf16, #tpu.memory_space<vmem>>, vector<192x128xbf16>
    %c2 = arith.constant 2 : index
    %c0_36 = arith.constant 0 : index
    %c0_37 = arith.constant 0 : index
    %45 = vector.load %arg7[%c2, %c0_36, %c0_37] : memref<9x128x128xbf16, #tpu.memory_space<vmem>>, vector<1x128x128xbf16>
    %46 = vector.shape_cast %45 : vector<1x128x128xbf16> to vector<128x128xbf16>
    %cst_38 = arith.constant dense<0.000000e+00> : vector<192x128xf32>
    %47 = tpu.matmul %44, %46, %cst_38 {dimension_numbers = #tpu.dot_dimension_numbers<[1], [0], [0], [1], [0, 0, 1, 1], [], []>} : vector<192x128xbf16>, vector<128x128xbf16>, vector<192x128xf32> -> vector<192x128xf32>
    %c0_39 = arith.constant 0 : index
    %c0_40 = arith.constant 0 : index
    %48 = vector.load %arg15[%c0_39, %c0_40] : memref<192x128xf32, #tpu.memory_space<vmem>>, vector<192x128xf32>
    %49 = arith.addf %48, %47 : vector<192x128xf32>
    %c0_41 = arith.constant 0 : index
    %c0_42 = arith.constant 0 : index
    %50 = vector.load %arg15[%c0_41, %c0_42] : memref<192x128xf32, #tpu.memory_space<vmem>>, vector<192x128xf32>
    tpu.vector_store %arg15[%c0_41, %c0_42], %49 {strides = array<i32>} : memref<192x128xf32, #tpu.memory_space<vmem>>, vector<192x128xf32>,
    %c31 = arith.constant 31 : index
    %c0_43 = arith.constant 0 : index
    %51 = vector.load %arg14[%c31, %c0_43] : memref<256x128xbf16, #tpu.memory_space<vmem>>, vector<192x128xbf16>
    %c3 = arith.constant 3 : index
    %c0_44 = arith.constant 0 : index
    %c0_45 = arith.constant 0 : index
    %52 = vector.load %arg7[%c3, %c0_44, %c0_45] : memref<9x128x128xbf16, #tpu.memory_space<vmem>>, vector<1x128x128xbf16>
    %53 = vector.shape_cast %52 : vector<1x128x128xbf16> to vector<128x128xbf16>
    %cst_46 = arith.constant dense<0.000000e+00> : vector<192x128xf32>
    %54 = tpu.matmul %51, %53, %cst_46 {dimension_numbers = #tpu.dot_dimension_numbers<[1], [0], [0], [1], [0, 0, 1, 1], [], []>} : vector<192x128xbf16>, vector<128x128xbf16>, vector<192x128xf32> -> vector<192x128xf32>
    %c0_47 = arith.constant 0 : index
    %c0_48 = arith.constant 0 : index
    %55 = vector.load %arg15[%c0_47, %c0_48] : memref<192x128xf32, #tpu.memory_space<vmem>>, vector<192x128xf32>
    %56 = arith.addf %55, %54 : vector<192x128xf32>
    %c0_49 = arith.constant 0 : index
    %c0_50 = arith.constant 0 : index
    %57 = vector.load %arg15[%c0_49, %c0_50] : memref<192x128xf32, #tpu.memory_space<vmem>>, vector<192x128xf32>
    tpu.vector_store %arg15[%c0_49, %c0_50], %56 {strides = array<i32>} : memref<192x128xf32, #tpu.memory_space<vmem>>, vector<192x128xf32>,
    %c32 = arith.constant 32 : index
    %c0_51 = arith.constant 0 : index
    %58 = vector.load %arg14[%c32, %c0_51] : memref<256x128xbf16, #tpu.memory_space<vmem>>, vector<192x128xbf16>
    %c4 = arith.constant 4 : index
    %c0_52 = arith.constant 0 : index
    %c0_53 = arith.constant 0 : index
    %59 = vector.load %arg7[%c4, %c0_52, %c0_53] : memref<9x128x128xbf16, #tpu.memory_space<vmem>>, vector<1x128x128xbf16>
    %60 = vector.shape_cast %59 : vector<1x128x128xbf16> to vector<128x128xbf16>
    %cst_54 = arith.constant dense<0.000000e+00> : vector<192x128xf32>
    %61 = tpu.matmul %58, %60, %cst_54 {dimension_numbers = #tpu.dot_dimension_numbers<[1], [0], [0], [1], [0, 0, 1, 1], [], []>} : vector<192x128xbf16>, vector<128x128xbf16>, vector<192x128xf32> -> vector<192x128xf32>
    %c0_55 = arith.constant 0 : index
    %c0_56 = arith.constant 0 : index
    %62 = vector.load %arg15[%c0_55, %c0_56] : memref<192x128xf32, #tpu.memory_space<vmem>>, vector<192x128xf32>
    %63 = arith.addf %62, %61 : vector<192x128xf32>
    %c0_57 = arith.constant 0 : index
    %c0_58 = arith.constant 0 : index
    %64 = vector.load %arg15[%c0_57, %c0_58] : memref<192x128xf32, #tpu.memory_space<vmem>>, vector<192x128xf32>
    tpu.vector_store %arg15[%c0_57, %c0_58], %63 {strides = array<i32>} : memref<192x128xf32, #tpu.memory_space<vmem>>, vector<192x128xf32>,
    %c33 = arith.constant 33 : index
    %c0_59 = arith.constant 0 : index
    %65 = vector.load %arg14[%c33, %c0_59] : memref<256x128xbf16, #tpu.memory_space<vmem>>, vector<192x128xbf16>
    %c5 = arith.constant 5 : index
    %c0_60 = arith.constant 0 : index
    %c0_61 = arith.constant 0 : index
    %66 = vector.load %arg7[%c5, %c0_60, %c0_61] : memref<9x128x128xbf16, #tpu.memory_space<vmem>>, vector<1x128x128xbf16>
    %67 = vector.shape_cast %66 : vector<1x128x128xbf16> to vector<128x128xbf16>
    %cst_62 = arith.constant dense<0.000000e+00> : vector<192x128xf32>
    %68 = tpu.matmul %65, %67, %cst_62 {dimension_numbers = #tpu.dot_dimension_numbers<[1], [0], [0], [1], [0, 0, 1, 1], [], []>} : vector<192x128xbf16>, vector<128x128xbf16>, vector<192x128xf32> -> vector<192x128xf32>
    %c0_63 = arith.constant 0 : index
    %c0_64 = arith.constant 0 : index
    %69 = vector.load %arg15[%c0_63, %c0_64] : memref<192x128xf32, #tpu.memory_space<vmem>>, vector<192x128xf32>
    %70 = arith.addf %69, %68 : vector<192x128xf32>
    %c0_65 = arith.constant 0 : index
    %c0_66 = arith.constant 0 : index
    %71 = vector.load %arg15[%c0_65, %c0_66] : memref<192x128xf32, #tpu.memory_space<vmem>>, vector<192x128xf32>
    tpu.vector_store %arg15[%c0_65, %c0_66], %70 {strides = array<i32>} : memref<192x128xf32, #tpu.memory_space<vmem>>, vector<192x128xf32>,
    %c55 = arith.constant 55 : index
    %c0_67 = arith.constant 0 : index
    %72 = vector.load %arg14[%c55, %c0_67] : memref<256x128xbf16, #tpu.memory_space<vmem>>, vector<192x128xbf16>
    %c6 = arith.constant 6 : index
    %c0_68 = arith.constant 0 : index
    %c0_69 = arith.constant 0 : index
    %73 = vector.load %arg7[%c6, %c0_68, %c0_69] : memref<9x128x128xbf16, #tpu.memory_space<vmem>>, vector<1x128x128xbf16>
    %74 = vector.shape_cast %73 : vector<1x128x128xbf16> to vector<128x128xbf16>
    %cst_70 = arith.constant dense<0.000000e+00> : vector<192x128xf32>
    %75 = tpu.matmul %72, %74, %cst_70 {dimension_numbers = #tpu.dot_dimension_numbers<[1], [0], [0], [1], [0, 0, 1, 1], [], []>} : vector<192x128xbf16>, vector<128x128xbf16>, vector<192x128xf32> -> vector<192x128xf32>
    %c0_71 = arith.constant 0 : index
    %c0_72 = arith.constant 0 : index
    %76 = vector.load %arg15[%c0_71, %c0_72] : memref<192x128xf32, #tpu.memory_space<vmem>>, vector<192x128xf32>
    %77 = arith.addf %76, %75 : vector<192x128xf32>
    %c0_73 = arith.constant 0 : index
    %c0_74 = arith.constant 0 : index
    %78 = vector.load %arg15[%c0_73, %c0_74] : memref<192x128xf32, #tpu.memory_space<vmem>>, vector<192x128xf32>
    tpu.vector_store %arg15[%c0_73, %c0_74], %77 {strides = array<i32>} : memref<192x128xf32, #tpu.memory_space<vmem>>, vector<192x128xf32>,
    %c56 = arith.constant 56 : index
    %c0_75 = arith.constant 0 : index
    %79 = vector.load %arg14[%c56, %c0_75] : memref<256x128xbf16, #tpu.memory_space<vmem>>, vector<192x128xbf16>
    %c7_76 = arith.constant 7 : index
    %c0_77 = arith.constant 0 : index
    %c0_78 = arith.constant 0 : index
    %80 = vector.load %arg7[%c7_76, %c0_77, %c0_78] : memref<9x128x128xbf16, #tpu.memory_space<vmem>>, vector<1x128x128xbf16>
    %81 = vector.shape_cast %80 : vector<1x128x128xbf16> to vector<128x128xbf16>
    %cst_79 = arith.constant dense<0.000000e+00> : vector<192x128xf32>
    %82 = tpu.matmul %79, %81, %cst_79 {dimension_numbers = #tpu.dot_dimension_numbers<[1], [0], [0], [1], [0, 0, 1, 1], [], []>} : vector<192x128xbf16>, vector<128x128xbf16>, vector<192x128xf32> -> vector<192x128xf32>
    %c0_80 = arith.constant 0 : index
    %c0_81 = arith.constant 0 : index
    %83 = vector.load %arg15[%c0_80, %c0_81] : memref<192x128xf32, #tpu.memory_space<vmem>>, vector<192x128xf32>
    %84 = arith.addf %83, %82 : vector<192x128xf32>
    %c0_82 = arith.constant 0 : index
    %c0_83 = arith.constant 0 : index
    %85 = vector.load %arg15[%c0_82, %c0_83] : memref<192x128xf32, #tpu.memory_space<vmem>>, vector<192x128xf32>
    tpu.vector_store %arg15[%c0_82, %c0_83], %84 {strides = array<i32>} : memref<192x128xf32, #tpu.memory_space<vmem>>, vector<192x128xf32>,
    %c57 = arith.constant 57 : index
    %c0_84 = arith.constant 0 : index
    %86 = vector.load %arg14[%c57, %c0_84] : memref<256x128xbf16, #tpu.memory_space<vmem>>, vector<192x128xbf16>
    %c8_85 = arith.constant 8 : index
    %c0_86 = arith.constant 0 : index
    %c0_87 = arith.constant 0 : index
    %87 = vector.load %arg7[%c8_85, %c0_86, %c0_87] : memref<9x128x128xbf16, #tpu.memory_space<vmem>>, vector<1x128x128xbf16>
    %88 = vector.shape_cast %87 : vector<1x128x128xbf16> to vector<128x128xbf16>
    %cst_88 = arith.constant dense<0.000000e+00> : vector<192x128xf32>
    %89 = tpu.matmul %86, %88, %cst_88 {dimension_numbers = #tpu.dot_dimension_numbers<[1], [0], [0], [1], [0, 0, 1, 1], [], []>} : vector<192x128xbf16>, vector<128x128xbf16>, vector<192x128xf32> -> vector<192x128xf32>
    %c0_89 = arith.constant 0 : index
    %c0_90 = arith.constant 0 : index
    %90 = vector.load %arg15[%c0_89, %c0_90] : memref<192x128xf32, #tpu.memory_space<vmem>>, vector<192x128xf32>
    %91 = arith.addf %90, %89 : vector<192x128xf32>
    %c0_91 = arith.constant 0 : index
    %c0_92 = arith.constant 0 : index
    %92 = vector.load %arg15[%c0_91, %c0_92] : memref<192x128xf32, #tpu.memory_space<vmem>>, vector<192x128xf32>
    tpu.vector_store %arg15[%c0_91, %c0_92], %91 {strides = array<i32>} : memref<192x128xf32, #tpu.memory_space<vmem>>, vector<192x128xf32>,
    %c0_93 = arith.constant 0 : index
    %c0_94 = arith.constant 0 : index
    %93 = vector.load %arg15[%c0_93, %c0_94] : memref<192x128xf32, #tpu.memory_space<vmem>>, vector<192x128xf32>
    %c0_95 = arith.constant 0 : index
    %c0_96 = arith.constant 0 : index
    %94 = vector.load %arg8[%c0_95, %c0_96] : memref<1x128xf32, #tpu.memory_space<vmem>>, vector<1x128xf32>
    %95 = vector.broadcast %94 : vector<1x128xf32> to vector<192x128xf32>
    %96 = arith.mulf %93, %95 : vector<192x128xf32>
    %c0_97 = arith.constant 0 : index
    %c0_98 = arith.constant 0 : index
    %97 = vector.load %arg9[%c0_97, %c0_98] : memref<1x128xf32, #tpu.memory_space<vmem>>, vector<1x128xf32>
    %98 = vector.broadcast %97 : vector<1x128xf32> to vector<192x128xf32>
    %99 = arith.addf %96, %98 : vector<192x128xf32>
    %cst_99 = arith.constant 0.000000e+00 : f32
    %100 = vector.broadcast %cst_99 : f32 to vector<192x128xf32>
    %101 = arith.maximumf %99, %100 : vector<192x128xf32>
    %102 = arith.truncf %101 : vector<192x128xf32> to vector<192x128xbf16>
    %c0_100 = arith.constant 0 : index
    %c0_101 = arith.constant 0 : index
    %103 = vector.load %arg10[%c0_100, %c0_101] : memref<128x128xbf16, #tpu.memory_space<vmem>>, vector<128x128xbf16>
    %cst_102 = arith.constant dense<0.000000e+00> : vector<192x128xf32>
    %104 = tpu.matmul %102, %103, %cst_102 {dimension_numbers = #tpu.dot_dimension_numbers<[1], [0], [0], [1], [0, 0, 1, 1], [], []>} : vector<192x128xbf16>, vector<128x128xbf16>, vector<192x128xf32> -> vector<192x128xf32>
    %c0_103 = arith.constant 0 : index
    %c0_104 = arith.constant 0 : index
    %105 = vector.load %arg11[%c0_103, %c0_104] : memref<1x128xf32, #tpu.memory_space<vmem>>, vector<1x128xf32>
    %106 = vector.broadcast %105 : vector<1x128xf32> to vector<192x128xf32>
    %107 = arith.mulf %104, %106 : vector<192x128xf32>
    %c0_105 = arith.constant 0 : index
    %c0_106 = arith.constant 0 : index
    %108 = vector.load %arg12[%c0_105, %c0_106] : memref<1x128xf32, #tpu.memory_space<vmem>>, vector<1x128xf32>
    %109 = vector.broadcast %108 : vector<1x128xf32> to vector<192x128xf32>
    %110 = arith.addf %107, %109 : vector<192x128xf32>
    %111 = vector.shape_cast %110 : vector<192x128xf32> to vector<8x24x128xf32>
    %c1_i32_107 = arith.constant 1 : i32
    %112 = arith.addi %1, %c1_i32_107 : i32
    %c0_108 = arith.constant 0 : index
    %113 = arith.index_cast %112 : i32 to index
    %c0_109 = arith.constant 0 : index
    %c0_110 = arith.constant 0 : index
    %114 = vector.load %arg2[%c0_108, %113, %c0_109, %c0_110] : memref<1x18x24x128xf32, #tpu.memory_space<vmem>>, vector<1x8x24x128xf32>
    %115 = vector.shape_cast %114 : vector<1x8x24x128xf32> to vector<8x24x128xf32>
    %116 = arith.addf %111, %115 : vector<8x24x128xf32>
    %cst_111 = arith.constant 0.000000e+00 : f32
    %117 = vector.broadcast %cst_111 : f32 to vector<8x24x128xf32>
    %118 = arith.maximumf %116, %117 : vector<8x24x128xf32>
    %c0_112 = arith.constant 0 : index
    %c0_113 = arith.constant 0 : index
    %c0_114 = arith.constant 0 : index
    %c0_115 = arith.constant 0 : index
    %119 = vector.load %arg13[%c0_112, %c0_113, %c0_114, %c0_115] : memref<1x8x24x128xf32, #tpu.memory_space<vmem>>, vector<1x8x24x128xf32>
    %120 = vector.shape_cast %119 : vector<1x8x24x128xf32> to vector<8x24x128xf32>
    %121 = vector.shape_cast %118 : vector<8x24x128xf32> to vector<1x8x24x128xf32>
    tpu.vector_store %arg13[%c0_112, %c0_113, %c0_114, %c0_115], %121 {strides = array<i32>} : memref<1x8x24x128xf32, #tpu.memory_space<vmem>>, vector<1x8x24x128xf32>,
    return
  }
  func.func @transform_0(%arg0: i32, %arg1: i32) -> (i32, i32, i32, i32) {
    %c0_i32 = arith.constant 0 : i32
    %c0_i32_0 = arith.constant 0 : i32
    %c0_i32_1 = arith.constant 0 : i32
    %c0_i32_2 = arith.constant 0 : i32
    return %arg0, %c0_i32, %c0_i32_0, %c0_i32_1 : i32, i32, i32, i32
  }
  func.func @transform_1(%arg0: i32, %arg1: i32) -> (i32, i32) {
    %c0_i32 = arith.constant 0 : i32
    %c0_i32_0 = arith.constant 0 : i32
    %c0_i32_1 = arith.constant 0 : i32
    return %c0_i32, %c0_i32_0 : i32, i32
  }
  func.func @transform_2(%arg0: i32, %arg1: i32) -> (i32, i32) {
    %c0_i32 = arith.constant 0 : i32
    %c0_i32_0 = arith.constant 0 : i32
    %c0_i32_1 = arith.constant 0 : i32
    return %c0_i32, %c0_i32_0 : i32, i32
  }
  func.func @transform_3(%arg0: i32, %arg1: i32) -> (i32, i32) {
    %c0_i32 = arith.constant 0 : i32
    %c0_i32_0 = arith.constant 0 : i32
    %c0_i32_1 = arith.constant 0 : i32
    return %c0_i32, %c0_i32_0 : i32, i32
  }
  func.func @transform_4(%arg0: i32, %arg1: i32) -> (i32, i32) {
    %c0_i32 = arith.constant 0 : i32
    %c0_i32_0 = arith.constant 0 : i32
    %c0_i32_1 = arith.constant 0 : i32
    return %c0_i32, %c0_i32_0 : i32, i32
  }
  func.func @transform_5(%arg0: i32, %arg1: i32) -> (i32, i32, i32) {
    %c0_i32 = arith.constant 0 : i32
    %c0_i32_0 = arith.constant 0 : i32
    %c0_i32_1 = arith.constant 0 : i32
    %c0_i32_2 = arith.constant 0 : i32
    return %c0_i32, %c0_i32_0, %c0_i32_1 : i32, i32, i32
  }
  func.func @transform_6(%arg0: i32, %arg1: i32) -> (i32, i32) {
    %c0_i32 = arith.constant 0 : i32
    %c0_i32_0 = arith.constant 0 : i32
    %c0_i32_1 = arith.constant 0 : i32
    return %c0_i32, %c0_i32_0 : i32, i32
  }
  func.func @transform_7(%arg0: i32, %arg1: i32) -> (i32, i32) {
    %c0_i32 = arith.constant 0 : i32
    %c0_i32_0 = arith.constant 0 : i32
    %c0_i32_1 = arith.constant 0 : i32
    return %c0_i32, %c0_i32_0 : i32, i32
  }
  func.func @transform_8(%arg0: i32, %arg1: i32) -> (i32, i32) {
    %c0_i32 = arith.constant 0 : i32
    %c0_i32_0 = arith.constant 0 : i32
    %c0_i32_1 = arith.constant 0 : i32
    return %c0_i32, %c0_i32_0 : i32, i32
  }
  func.func @transform_9(%arg0: i32, %arg1: i32) -> (i32, i32) {
    %c0_i32 = arith.constant 0 : i32
    %c0_i32_0 = arith.constant 0 : i32
    %c0_i32_1 = arith.constant 0 : i32
    return %c0_i32, %c0_i32_0 : i32, i32
  }
  func.func @transform_10(%arg0: i32, %arg1: i32) -> (i32, i32) {
    %c0_i32 = arith.constant 0 : i32
    %c0_i32_0 = arith.constant 0 : i32
    %c0_i32_1 = arith.constant 0 : i32
    return %c0_i32, %c0_i32_0 : i32, i32
  }
  func.func @transform_11(%arg0: i32, %arg1: i32) -> (i32, i32, i32, i32) {
    %c0_i32 = arith.constant 0 : i32
    %c0_i32_0 = arith.constant 0 : i32
    %c0_i32_1 = arith.constant 0 : i32
    return %arg0, %arg1, %c0_i32, %c0_i32_0 : i32, i32, i32, i32
  }
}

</mosaic_0001>

<bundles_post_ra>
// kernel: tpu_custom_call.1
= control target key start
LH: loop header
LB: loop body
LE: loop exit
PB: predicated region body
PF: predicated region fallthrough
CT: control target
= control target key end

     0   :  { %s7951_s0 = inlined_call_operand.hbm [shape: f32[2,18,24,128], index: 0, kind: input, shape index: {}]   ;;  %s7952_s1 = inlined_call_operand.vmem [shape: f32[240,1], index: 1, kind: input, shape index: {}]   ;;  %s7953_s2 = inlined_call_operand.vmem [shape: bf16[128,128], index: 2, kind: input, shape index: {}]   ;;  %s7954_s3 = inlined_call_operand.vmem [shape: f32[1,128], index: 3, kind: input, shape index: {}]   ;;  %s7955_s4 = inlined_call_operand.vmem [shape: f32[1,128], index: 4, kind: input, shape index: {}]   ;;  %s7956_s5 = inlined_call_operand.hbm [shape: bf16[9,128,128], index: 5, kind: input, shape index: {}]   ;;  %s7957_s6 = inlined_call_operand.vmem [shape: f32[1,128], index: 6, kind: input, shape index: {}]   ;;  %s7958_s7 = inlined_call_operand.vmem [shape: f32[1,128], index: 7, kind: input, shape index: {}]   ;;  %s7959_s8 = inlined_call_operand.vmem [shape: bf16[128,128], index: 8, kind: input, shape index: {}]   ;;  %s7960_s9 = inlined_call_operand.vmem [shape: f32[1,128], index: 9, kind: input, shape index: {}]   ;;  %s7961_s10 = inlined_call_operand.vmem [shape: f32[1,128], index: 10, kind: input, shape index: {}]   ;;  %s7962_s11 = inlined_call_operand.hbm [shape: f32[2,16,24,128], index: 11, kind: output, shape index: {}]  }
   0x1   :  { %7987 = sst [smem:[#allocation20_spill]] %s7956_s5 }
   0x2   :  { %7988 = sst [smem:[#allocation21_spill]] %s7957_s6 }
   0x3   :  { %7989 = sst [smem:[#allocation22_spill]] %s7958_s7 }
   0x4   :  { %7990 = sst [smem:[#allocation23_spill]] %s7959_s8 }
   0x5   :  { %7991 = sst [smem:[#allocation24_spill]] %s7960_s9 }
   0x6   :  { %7992 = sst [smem:[#allocation25_spill]] %s7961_s10 }
   0x7   :  { %7993 = sst [smem:[#allocation26_spill]] %s7962_s11 }
   0x8   :  { %16 = vsyncpa [#allocation5], 0 }
   0x9   :  { %18 = vsyncpa [#allocation5 + $0x1], 0 }
   0xa   :  { %19 = vsyncpa [#allocation8], 0 }
   0xb   :  { %20 = vsyncpa [#allocation6], 0 }
   0xc   :  { %22 = vsyncpa [#allocation6 + $0x1], 0  ;;  %s6551_s17 = smov 0   ;;  %s6553_s18 = smov 0  }
   0xd   :  { %s6555_s19 = smov 0   ;;  %s6557_s20 = smov 0  }
   0xe   :  { %s6559_s21 = smov 0   ;;  %s6561_s22 = smov 0  }
   0xf   :  { %s6563_s23 = smov 0   ;;  %s6565_s24 = smov 0  }
  0x10   :  { %s6567_s25 = smov 0   ;;  %s6569_s26 = smov 0  }
  0x11   :  { %s6571_s27 = smov 0  }
  0x12 LB: > { %7994 = sst [smem:[#allocation13_spill]] %s6435_s17  ;;  %s5018_s28 = sadd.s32 4294967295, %s6475_s27   ;;  %s6475_s27 = sphi %s6571_s27, %s28_s27   ;;  %s6471_s26 = sphi %s6569_s26, %s8047_s26   ;;  %s6467_s25 = sphi %s6567_s25, %s8046_s25   ;;  %s6463_s24 = sphi %s6565_s24, %s8045_s24   ;;  %s6459_s23 = sphi %s6563_s23, %s8036_s23   ;;  %s6455_s22 = sphi %s6561_s22, %s8044_s22   ;;  %s6451_s21 = sphi %s6559_s21, %s8043_s21   ;;  %s6447_s20 = sphi %s6557_s20, %s8042_s20   ;;  %s6443_s19 = sphi %s6555_s19, %s8041_s19   ;;  %s6439_s18 = sphi %s6553_s18, %s8040_s18   ;;  %s6435_s17 = sphi %s6551_s17, %s8039_s17  }
  0x13   : > { %7995 = sst [smem:[#allocation14_spill]] %s6463_s24  ;;  %s5019_s29 = sadd.s32 4294967294, %s6475_s27  }
  0x14   : > { %7996 = sst [smem:[#allocation15_spill]] %s6467_s25  ;;  %p60_p0 = scmp.ne.s32.totalorder %s6451_s21, %s6447_s20 }
  0x15   : > { %p6607_p1 = scmp.eq.s32.totalorder %s5018_s28, 0  ;;  %p295_p2 = scmp.ne.s32.totalorder %s6443_s19, %s6439_s18 }
  0x16   : > { %p296_p4 = scmp.eq.s32.totalorder %s5018_s28, 3  ;;  %p301_p5 = scmp.ne.s32.totalorder %s6439_s18, %s6435_s17 }
  0x17   : > { %s7997_s30 = scalar_select %p6607_p1, 1, 0 }
  0x18   : > { %p6616_p3 = por %p6607_p1, %p60_p0  ;;  %p302_p6 = scmp.eq.s32.totalorder %s5019_s29, 3 }
  0x19   : > { %p6622_p7 = por %p296_p4, %p295_p2  ;;  %p5020_p8 = scmp.ge.s32.totalorder %s6475_s27, 1 }
  0x1a   : > { %s7998_s13 = scalar_select %p6616_p3, 1, 0 }
  0x1b   : > { %s7999_s14 = scalar_select %p6622_p7, 1, 0 }
  0x1c   : > { %p6627_p9 = por %p302_p6, %p301_p5  ;;  %p309_p10 = scmp.lt.s32.totalorder %s6475_s27, 5 }
  0x1d   : > { %8000 = sst [smem:[#allocation16_spill]] %s7999_s14  ;;  %s6477_s20 = smov [#allocation7]  }
  0x1e   : > { %s8001_s15 = scalar_select %p6627_p9, 1, 0 }
  0x1f   : > { %p6632_p11 = pnand %p5020_p8, %p309_p10  ;;  %s333_s12 = sshll.u32 %s6477_s20, 4  ;;  %s334_s12 = int_to_ptr.vmem [resolvable:$true] %s333_s12 }
  0x20   : > { %8002 = sst [smem:[#allocation17_spill]] %s8001_s15  ;;  %s8005_s5 = sld [smem:[#allocation20_spill]] }
  0x21   : > { %s8003_s16 = scalar_select %p6632_p11, 1, 0 }
  0x22   : > { %p6076_p12 = pneg %p6632_p11 }
  0x24   : > { %p6640_p13 = pnand %p6076_p12, %p6607_p1 }
  0x26   : > { %s6291_s15 = scalar_lea.hbm %s8005_s5, 9216  ;;  %p6293_p2 = pneg %p6640_p13 }
  0x27   : > { %p6292_p0 = scmp.ne.s32.totalorder %s8005_s5, %s6291_s15  ;;  %p6298_p6 = scmp.lt.u32.totalorder %s6291_s15, %s8005_s5 }
  0x29   : > { %p6294_p4 = pnand %p6293_p2, %p6292_p0 }
  0x2b   : > { %p6295_p5 = pneg %p6294_p4 }
  0x2d   : > { %p6300_p8 = pnand %p6298_p6, %p6295_p5 }
  0x2f   : > { %6303 = shalt.err (!%p6300_p8)
}
  0x30   : > { %s6304_s10 = scalar_lea.vmem %s334_s12, 9216  ;;  %p6312_p7 = scmp.lt.s32.totalorder %s334_s12, %s334_s12 }
  0x31   : > { %p6305_p10 = scmp.ne.s32.totalorder %s334_s12, %s6304_s10  ;;  %p6313_p1 = scmp.lt.s32.totalorder %s6304_s10, %s6304_s10 }
  0x33   : > { %p6307_p12 = pnand %p6305_p10, %p6293_p2  ;;  %p6314_p3 = por %p6313_p1, %p6312_p7 }
  0x35   : > { %p6308_p9 = pneg %p6307_p12 }
  0x37   : > { %p6315_p11 = pnand %p6314_p3, %p6308_p9 }
  0x39   : > { %6318 = shalt.err (!%p6315_p11)
}
  0x3a   : > { %s6478_s11 = smov 64   ;;  %s6479_s17 = smov 4  }
  0x3b   : > { %6079 = dma.hbm_to_vmem [thread:$0]  (!%p6640_p13), %s8005_s5, 9216, %s334_s12, [#allocation8], %s6478_s11, %s6478_s11, %s6479_s17  }
  0x3c   : > { %s37_s10 = sadd.s32 1, %s6467_s25  ;;  %s40_s15 = sadd.s32 1, %s6471_s26 }
  0x3d   : > { %p38_p1 = scmp.ge.s32.totalorder %s37_s10, 2  ;;  %s47_s29 = sadd.s32 1, %s6455_s22 }
  0x3e   : > { %p54_p3 = scmp.ne.s32.totalorder %s6455_s22, %s6451_s21  ;;  %p55_p7 = scmp.eq.s32.totalorder %s6475_s27, 0 }
  0x3f   : > { %s8049_s10 = smov (%p38_p1, %s37_s10), 0  ;;  %s8051_s15 = smov (!%p38_p1, %s40_s15), %s6471_s26 }
  0x40   : > { %8006 = sst [smem:[#allocation18_spill]] %s8049_s10  ;;  %s281_s28 = ssub.s32 %s6467_s25, %s8049_s10 }
  0x41   : > { %p42_p9 = scmp.ge.s32.totalorder %s8051_s15, 2  ;;  %p6089_p11 = scmp.lt.s32.totalorder %s6475_s27, 4 }
  0x42   : > { %p6672_p13 = por %p55_p7, %p54_p3  ;;  %s362_s20 = sand.u32 1, %s6455_s22  }
  0x43   : > { %s8053_s15 = smov (%p42_p9, %s8051_s15), 0  ;;  %s6062_s11 = smul.u32 432, %s362_s20 }
  0x44   : > { %8008 = sst [smem:[#allocation19_spill]] %s8053_s15  ;;  %s44_s17 = ssub.s32 %s6471_s26, %s8053_s15 }
  0x45   : > { %s6063_s24 = smul.u32 6912, %s6471_s26  ;;  %p45_p0 = scmp.eq.s32.totalorder %s44_s17, 0 }
  0x46   : > { %s282_s14 = sor.u32 %s281_s28, %s44_s17  ;;  %s8009_s10 = sadd.s32 1, %s6443_s19 }
  0x47   : > { %p283_p2 = scmp.eq.s32.totalorder %s282_s14, 0  ;;  %s6693_s6 = scalar_lea.hbm %s7951_s0, %s6063_s24 }
  0x48   : > { %s6683_s5 = scalar_select %p45_p0, %s6455_s22, %s47_s29  }
  0x49   : > { %s6688_s25 = scalar_select %p283_p2, %s6443_s19, %s8009_s10  }
  0x4a   : > { %s366_s8 = scalar_lea.vmem [#allocation4], %s6062_s11  ;;  %p6701_p4 = pnand %p6089_p11, %p6672_p13 }
  0x4b   : > { %s373_s15 = sshll.u32 %s366_s8, 4  ;;  %s6705_s10 = scalar_lea.sflag [#allocation5], %s362_s20  ;;  %s6695_s15 = int_to_ptr.vmem [resolvable:$true] %s373_s15 }
  0x4c   : > { %s6319_s7 = scalar_lea.hbm %s6693_s6, 6912  ;;  %p6321_p6 = pneg %p6701_p4 }
  0x4d   : > { %p6320_p5 = scmp.ne.s32.totalorder %s6693_s6, %s6319_s7  ;;  %s6324_s28 = scalar_lea.hbm %s7951_s0, 13824 }
  0x4e   : > { %p6325_p12 = scmp.lt.u32.totalorder %s6693_s6, %s7951_s0  ;;  %p6326_p1 = scmp.lt.u32.totalorder %s6324_s28, %s6319_s7 }
  0x4f   : > { %p6322_p8 = pnand %p6321_p6, %p6320_p5  ;;  %p6328_p7 = scmp.lt.u32.totalorder %s6319_s7, %s6693_s6 }
  0x50   : > { %p6327_p3 = por %p6326_p1, %p6325_p12 }
  0x51   : > { %p6323_p10 = pneg %p6322_p8 }
  0x52   : > { %p6329_p9 = por %p6328_p7, %p6327_p3 }
  0x54   : > { %p6330_p11 = pnand %p6329_p9, %p6323_p10 }
  0x56   : > { %6333 = shalt.err (!%p6330_p11)
}
  0x57   : > { %s6334_s20 = scalar_lea.vmem %s6695_s15, 6912  ;;  %s6480_s17 = smov [#allocation4]  }
  0x58   : > { %p6335_p13 = scmp.ne.s32.totalorder %s6695_s15, %s6334_s20  ;;  %s6339_s24 = sshll.u32 %s6480_s17, 4  ;;  %s6340_s24 = int_to_ptr.vmem [resolvable:$false] %s6339_s24 }
  0x59   : > { %s6341_s14 = scalar_lea.vmem %s6340_s24, 13824  ;;  %p6342_p5 = scmp.lt.s32.totalorder %s6695_s15, %s6340_s24 }
  0x5a   : > { %p6337_p0 = pnand %p6335_p13, %p6321_p6  ;;  %p6343_p8 = scmp.lt.s32.totalorder %s6341_s14, %s6334_s20 }
  0x5c   : > { %p6338_p2 = pneg %p6337_p0  ;;  %p6344_p12 = por %p6343_p8, %p6342_p5 }
  0x5e   : > { %p6345_p1 = pnand %p6344_p12, %p6338_p2 }
  0x60   : > { %6348 = shalt.err (!%p6345_p1)
}
  0x61   : > { %s6481_s7 = smov 128   ;;  %s6482_s8 = smov 8  }
  0x62   : > { %6083 = dma.hbm_to_vmem [thread:$0]  (!%p6701_p4), %s6693_s6, 6912, %s6695_s15, %s6705_s10, %s6481_s7, %s6481_s7, %s6482_s8  }
  0x63   : > { %p8011_p6 = scmp.ne.s32.totalorder %s8003_s16, 0 }
  0x64   : > { %s387_s9 = sand.u32 (!%p8011_p6), 1, %s6451_s21   ;;  %p8012_p10 = scmp.ne.s32.totalorder (!%p8011_p6), %s7998_s13, 0 }
  0x65   : > { %385 = sbr.rel (%p8011_p6) target bundleno = 1284 (0x504), region = 64  ;;  %s388_s12 = scalar_lea.sflag (!%p8011_p6), [#allocation5], %s387_s9 }
  0x66   : > { %s6736_s28 = smul.u32 (!%p8011_p6), 432, %s387_s9 }
  0x68   : > { %s391_s11 = scalar_lea.vmem (!%p8011_p6), [#allocation4], %s6736_s28 }
  0x6c   : > { %6422 = dma.done.wait (%p8012_p10), %s388_s12, 6912  }
  0x6d   : > { %6424 = vsyncadd (%p8012_p10), %s388_s12, 4294960384  ;;  %p8013_p3 = scmp.ne.s32.totalorder %s7997_s30, 0 }
  0x6f   : > { %6426 = dma.done.wait (%p8013_p3), [#allocation8], 9216  }
  0x70   : > { %6428 = vsyncadd (%p8013_p3), [#allocation8], 4294958080  ;;  %s431_s6 = sand.u32 1, %s6439_s18   ;;  %v6483_v0 = vmov 0.0   ;;  %vm6484_vm0 = vmmov 0   ;;  %v6485_v1 = vmov 0  }
  0x71   : > { %s6750_s16 = smul.u32 192, %s431_s6  ;;  %5378 = vmatprep.subr.bf16.mxu0 %v6483_v0  ;;  %5394 = vmatprep.mubr.msk.bf16.mxu0 %vm6484_vm0, %v6483_v0  ;;  %1030 = vst [vmem:[#allocation2] sm:$0xf] %v6485_v1  ;;  %1108 = vst [vmem:[#allocation2 + $0x78] sm:$0xf0] %v6485_v1  ;;  %v6194_v2 = vld [vmem:[%s7953_s2] sm:$0xff]  }
  0x72   : > { %6192 = vset.pattern.permute.xlu0 %v6485_v1  ;;  %6193 = vset.pattern.permute.xlu1 %v6485_v1  ;;  %v6195_v3 = vld [vmem:[%s7953_s2 + $0x8] sm:$0xff]   ;;  %v6196_v4 = vld [vmem:[%s7953_s2 + $0x10] sm:$0xff]   ;;  %v6197_v5 = vld [vmem:[%s7953_s2 + $0x18] sm:$0xff]   ;;  %s5027_s24 = smul.u32 192, %s6459_s23  ;;  %vm1046_vm1 = vcmask 1043456   ;;  %p5038_p4 = scmp.ne.s32.totalorder %s6459_s23, 0 }
  0x73   : > { %5379 = vmatpush3.bf16.msra.mxu0 %v6194_v2  ;;  %v6198_v6 = vld [vmem:[%s7953_s2 + $0x20] sm:$0xff]   ;;  %v807_v8 = vld [vmem:[%s7952_s1 + $0x10] sm:$0xff]  ;;  %v806_v9 = vld [vmem:[%s7952_s1 + $0x8] sm:$0xff]  ;;  %s7024_s12 = scalar_lea.vmem [#allocation9], %s6750_s16 }
  0x74   : > { %5380 = vmatprep.subr.bf16.mxu0 %v6483_v0  ;;  %v805_v7 = vld [vmem:[%s7952_s1] sm:$0xff]  ;;  %847 = vperm.xlu1 %6193, %v807_v8   ;;  %v6199_v10 = vld [vmem:[%s7953_s2 + $0x28] sm:$0xff]   ;;  %v808_v11 = vld [vmem:[%s7952_s1 + $0x18] sm:$0xff]  ;;  %s6803_s13 = scalar_lea.vmem %s391_s11, %s5027_s24 [#allocation4] }
  0x75   : > { %837 = vperm.xlu0 %6192, %v805_v7   ;;  %v809_v12 = vld [vmem:[%s7952_s1 + $0x20] sm:$0xff]  ;;  %v6200_v13 = vld [vmem:[%s7953_s2 + $0x30] sm:$0xff]   ;;  %v810_v14 = vld [vmem:[%s7952_s1 + $0x28] sm:$0xff] }
  0x76   : > { %v6201_v15 = vld [vmem:[%s7953_s2 + $0x38] sm:$0xff]   ;;  %v811_v16 = vld [vmem:[%s7952_s1 + $0x30] sm:$0xff]  ;;  %v439_v17 = vld [vmem:[%s6803_s13] sm:$0xff] }
  0x77   : > { %5381 = vmatpush3.bf16.msra.mxu0 %v6195_v3  ;;  %v440_v18 = vld [vmem:[%s6803_s13 + $0x8] sm:$0xff]  ;;  %v812_v19 = vld [vmem:[%s7952_s1 + $0x38] sm:$0xff]  ;;  %v813_v21 = vld [vmem:[%s7952_s1 + $0x40] sm:$0xff] }
  0x78   : > { %5382 = vmatprep.subr.bf16.mxu0 %v6483_v0  ;;  %852 = vperm.xlu1 %6193, %v808_v11   ;;  %v469_v20 = vpack.c.bf16 %v440_v18, %v439_v17  ;;  %v814_v22 = vld [vmem:[%s7952_s1 + $0x48] sm:$0xff]  ;;  %v815_v23 = vld [vmem:[%s7952_s1 + $0x50] sm:$0xff]  ;;  %v442_v25 = vld [vmem:[%s6803_s13 + $0x18] sm:$0xff] }
  0x79   : > { %842 = vperm.xlu0 %6192, %v806_v9   ;;  %v441_v24 = vld [vmem:[%s6803_s13 + $0x10] sm:$0xff]  ;;  %v816_v26 = vld [vmem:[%s7952_s1 + $0x58] sm:$0xff]  ;;  %v817_v28 = vld [vmem:[%s7952_s1 + $0x60] sm:$0xff] }
  0x7a   : > { %v470_v27 = vpack.c.bf16 %v442_v25, %v441_v24  ;;  %v818_v29 = vld [vmem:[%s7952_s1 + $0x68] sm:$0xff]  ;;  %v819_v30 = vld [vmem:[%s7952_s1 + $0x70] sm:$0xff]  ;;  %v443_v31 = vld [vmem:[%s6803_s13 + $0x20] sm:$0xff] }
  0x7b   : > { %5383 = vmatpush3.bf16.msra.mxu0 %v6196_v4  ;;  %v444_v32 = vld [vmem:[%s6803_s13 + $0x28] sm:$0xff]  ;;  %v820_v33 = vld [vmem:[%s7952_s1 + $0x78] sm:$0xff]  ;;  %v821_v35 = vld [vmem:[%s7952_s1 + $0x80] sm:$0xff] }
  0x7c   : > { %5384 = vmatprep.subr.bf16.mxu0 %v6483_v0  ;;  %862 = vperm.xlu1 %6193, %v810_v14   ;;  %v471_v34 = vpack.c.bf16 %v444_v32, %v443_v31  ;;  %v822_v36 = vld [vmem:[%s7952_s1 + $0x88] sm:$0xff]  ;;  %v823_v37 = vld [vmem:[%s7952_s1 + $0x90] sm:$0xff]  ;;  %v446_v39 = vld [vmem:[%s6803_s13 + $0x38] sm:$0xff] }
  0x7d   : > { %857 = vperm.xlu0 %6192, %v809_v12   ;;  %v445_v38 = vld [vmem:[%s6803_s13 + $0x30] sm:$0xff]  ;;  %v824_v40 = vld [vmem:[%s7952_s1 + $0x98] sm:$0xff]  ;;  %v825_v42 = vld [vmem:[%s7952_s1 + $0xa0] sm:$0xff] }
  0x7e   : > { %v472_v41 = vpack.c.bf16 %v446_v39, %v445_v38  ;;  %v826_v43 = vld [vmem:[%s7952_s1 + $0xa8] sm:$0xff]  ;;  %v827_v44 = vld [vmem:[%s7952_s1 + $0xb0] sm:$0xff]  ;;  %v447_v45 = vld [vmem:[%s6803_s13 + $0x40] sm:$0xff] }
  0x7f   : > { %5385 = vmatpush3.bf16.msra.mxu0 %v6197_v5  ;;  %v448_v46 = vld [vmem:[%s6803_s13 + $0x48] sm:$0xff]  ;;  %v828_v47 = vld [vmem:[%s7952_s1 + $0xb8] sm:$0xff]  ;;  %v829_v49 = vld [vmem:[%s7952_s1 + $0xc0] sm:$0xff] }
  0x80   : > { %5386 = vmatprep.subr.bf16.mxu0 %v6483_v0  ;;  %872 = vperm.xlu1 %6193, %v812_v19   ;;  %v473_v48 = vpack.c.bf16 %v448_v46, %v447_v45  ;;  %v830_v50 = vld [vmem:[%s7952_s1 + $0xc8] sm:$0xff]  ;;  %v831_v51 = vld [vmem:[%s7952_s1 + $0xd0] sm:$0xff]  ;;  %v450_v53 = vld [vmem:[%s6803_s13 + $0x58] sm:$0xff] }
  0x81   : > { %867 = vperm.xlu0 %6192, %v811_v16   ;;  %v449_v52 = vld [vmem:[%s6803_s13 + $0x50] sm:$0xff]  ;;  %v832_v54 = vld [vmem:[%s7952_s1 + $0xd8] sm:$0xff]  ;;  %v833_v56 = vld [vmem:[%s7952_s1 + $0xe0] sm:$0xff] }
  0x82   : > { %v474_v55 = vpack.c.bf16 %v450_v53, %v449_v52  ;;  %v834_v57 = vld [vmem:[%s7952_s1 + $0xe8] sm:$0xff]  ;;  %v451_v58 = vld [vmem:[%s6803_s13 + $0x60] sm:$0xff]  ;;  %v453_v61 = vld [vmem:[%s6803_s13 + $0x70] sm:$0xff] }
  0x83   : > { %5387 = vmatpush3.bf16.msra.mxu0 %v6198_v6  ;;  %v452_v59 = vld [vmem:[%s6803_s13 + $0x68] sm:$0xff]  ;;  %v454_v62 = vld [vmem:[%s6803_s13 + $0x78] sm:$0xff]  ;;  %v455_v1 = vld [vmem:[%s6803_s13 + $0x80] sm:$0xff] }
  0x84   : > { %5388 = vmatprep.subr.bf16.mxu0 %v6483_v0  ;;  %882 = vperm.xlu1 %6193, %v814_v22   ;;  %v475_v60 = vpack.c.bf16 %v452_v59, %v451_v58  ;;  %v476_v63 = vpack.c.bf16 %v454_v62, %v453_v61  ;;  %v456_v2 = vld [vmem:[%s6803_s13 + $0x88] sm:$0xff]  ;;  %v457_v4 = vld [vmem:[%s6803_s13 + $0x90] sm:$0xff]  ;;  %v458_v5 = vld [vmem:[%s6803_s13 + $0x98] sm:$0xff] }
  0x85   : > { %877 = vperm.xlu0 %6192, %v813_v21   ;;  %v477_v3 = vpack.c.bf16 %v456_v2, %v455_v1  ;;  %v478_v6 = vpack.c.bf16 %v458_v5, %v457_v4  ;;  %v459_v7 = vld [vmem:[%s6803_s13 + $0xa0] sm:$0xff]  ;;  %v460_v8 = vld [vmem:[%s6803_s13 + $0xa8] sm:$0xff]  ;;  %v462_v11 = vld [vmem:[%s6803_s13 + $0xb8] sm:$0xff] }
  0x86   : > { %v479_v9 = vpack.c.bf16 %v460_v8, %v459_v7  ;;  %v464_v14 = vld [vmem:[%s6803_s13 + $0xc8] sm:$0xff]  ;;  %v465_v16 = vld [vmem:[%s6803_s13 + $0xd0] sm:$0xff]  ;;  %v466_v17 = vld [vmem:[%s6803_s13 + $0xd8] sm:$0xff] }
  0x87   : > { %5389 = vmatpush3.bf16.msra.mxu0 %v6199_v10  ;;  %v461_v10 = vld [vmem:[%s6803_s13 + $0xb0] sm:$0xff]  ;;  %v482_v18 = vpack.c.bf16 %v466_v17, %v465_v16  ;;  %v467_v19 = vld [vmem:[%s6803_s13 + $0xe0] sm:$0xff] }
  0x88   : > { %5390 = vmatprep.subr.bf16.mxu0 %v6483_v0  ;;  %892 = vperm.xlu1 %6193, %v816_v26   ;;  %v480_v12 = vpack.c.bf16 %v462_v11, %v461_v10  ;;  %v6942_v22 = vld [vmem:[%s7954_s3] ss:$0 sm:$0xff] }
  0x89   : > { %887 = vperm.xlu0 %6192, %v815_v23   ;;  %v6947_v24 = vld [vmem:[%s7955_s4] ss:$0 sm:$0xff] }
  0x8b   : > { %5391 = vmatpush3.bf16.msra.mxu0 %v6200_v13  ;;  %v463_v13 = vld [vmem:[%s6803_s13 + $0xc0] sm:$0xff] }
  0x8c   : > { %5392 = vmatprep.subr.bf16.mxu0 %v6483_v0  ;;  %902 = vperm.xlu1 %6193, %v818_v29  }
  0x8d   : > { %897 = vperm.xlu0 %6192, %v817_v28  }
  0x8f   : > { %5393 = vmatpush3.bf16.msra.mxu0 %v6201_v15  ;;  %v481_v15 = vpack.c.bf16 %v464_v14, %v463_v13 }
  0x90   : > { %912 = vperm.xlu1 %6193, %v820_v33  }
  0x91   : > { %907 = vperm.xlu0 %6192, %v819_v30  }
  0x92   : > { %5395 = vmatmul.mubr.bf16.vlgmr.msra.gmra.mrb[0].mxu0 %v469_v20  ;;  %v468_v20 = vld [vmem:[%s6803_s13 + $0xe8] sm:$0xff] }
  0x93   : > { %5398 = vmatprep.mubr.msk.bf16.mxu0 %vm6484_vm0, %v6483_v0  ;;  %v483_v21 = vpack.c.bf16 %v468_v20, %v467_v19 }
  0x94   : > { %922 = vperm.xlu1 %6193, %v822_v36  }
  0x95   : > { %917 = vperm.xlu0 %6192, %v821_v35  }
  0x98   : > { %932 = vperm.xlu1 %6193, %v824_v40  }
  0x99   : > { %927 = vperm.xlu0 %6192, %v823_v37  }
  0x9a   : > { %5399 = vmatmul.mubr.bf16.gmra.mrb[4].mxu0 %v470_v27 }
  0x9b   : > { %5402 = vmatprep.mubr.msk.bf16.mxu0 %vm6484_vm0, %v6483_v0 }
  0x9c   : > { %942 = vperm.xlu1 %6193, %v826_v43  }
  0x9d   : > { %937 = vperm.xlu0 %6192, %v825_v42  }
  0xa0   : > { %952 = vperm.xlu1 %6193, %v828_v47  }
  0xa1   : > { %947 = vperm.xlu0 %6192, %v827_v44  }
  0xa2   : > { %5403 = vmatmul.mubr.bf16.gmra.mrb[8].mxu0 %v471_v34 }
  0xa3   : > { %5406 = vmatprep.mubr.msk.bf16.mxu0 %vm6484_vm0, %v6483_v0 }
  0xa4   : > { %962 = vperm.xlu1 %6193, %v830_v50  }
  0xa5   : > { %957 = vperm.xlu0 %6192, %v829_v49  }
  0xa8   : > { %972 = vperm.xlu1 %6193, %v832_v54  }
  0xa9   : > { %967 = vperm.xlu0 %6192, %v831_v51  }
  0xaa   : > { %5407 = vmatmul.mubr.bf16.gmra.mrb[12].mxu0 %v472_v41 }
  0xab   : > { %5410 = vmatprep.mubr.msk.bf16.mxu0 %vm6484_vm0, %v6483_v0 }
  0xac   : > { %982 = vperm.xlu1 %6193, %v834_v57  }
  0xad   : > { %977 = vperm.xlu0 %6192, %v833_v56  }
  0xb2   : > { %5411 = vmatmul.mubr.bf16.gmra.mrb[16].mxu0 %v473_v48 }
  0xb3   : > { %5414 = vmatprep.mubr.msk.bf16.mxu0 %vm6484_vm0, %v6483_v0 }
  0xba   : > { %5415 = vmatmul.mubr.bf16.gmra.mrb[20].mxu0 %v474_v55 }
  0xbb   : > { %5418 = vmatprep.mubr.msk.bf16.mxu0 %vm6484_vm0, %v6483_v0 }
  0xc2   : > { %5419 = vmatmul.mubr.bf16.gmra.mrb[24].mxu0 %v475_v60 }
  0xc3   : > { %5422 = vmatprep.mubr.msk.bf16.mxu0 %vm6484_vm0, %v6483_v0 }
  0xca   : > { %5423 = vmatmul.mubr.bf16.gmra.mrb[28].mxu0 %v476_v63 }
  0xcb   : > { %5426 = vmatprep.mubr.msk.bf16.mxu0 %vm6484_vm0, %v6483_v0 }
  0xd2   : > { %5427 = vmatmul.mubr.bf16.gmra.mrb[32].mxu0 %v477_v3 }
  0xd3   : > { %5430 = vmatprep.mubr.msk.bf16.mxu0 %vm6484_vm0, %v6483_v0 }
  0xda   : > { %5431 = vmatmul.mubr.bf16.gmra.mrb[36].mxu0 %v478_v6 }
  0xdb   : > { %5434 = vmatprep.mubr.msk.bf16.mxu0 %vm6484_vm0, %v6483_v0 }
  0xe2   : > { %5435 = vmatmul.mubr.bf16.gmra.mrb[40].mxu0 %v479_v9 }
  0xe3   : > { %5438 = vmatprep.mubr.msk.bf16.mxu0 %vm6484_vm0, %v6483_v0 }
  0xea   : > { %5439 = vmatmul.mubr.bf16.gmra.mrb[44].mxu0 %v480_v12 }
  0xeb   : > { %5442 = vmatprep.mubr.msk.bf16.mxu0 %vm6484_vm0, %v6483_v0 }
  0xf2   : > { %5443 = vmatmul.mubr.bf16.gmra.mrb[48].mxu0 %v481_v15 }
  0xf3   : > { %5446 = vmatprep.mubr.msk.bf16.mxu0 %vm6484_vm0, %v6483_v0  ;;  %v848_v40 = vpop.permute.xlu1 %847 }
  0xf4   : > { %v838_v25 = vpop.permute.xlu0 %837 }
  0xf7   : > { %v853_v50 = vpop.permute.xlu1 %852 }
  0xf8   : > { %v843_v33 = vpop.permute.xlu0 %842 }
  0xfa   : > { %5447 = vmatmul.mubr.bf16.gmra.mrb[52].mxu0 %v482_v18 }
  0xfb   : > { %5450 = vmatprep.mubr.msk.bf16.mxu0 %vm6484_vm0, %v6483_v0  ;;  %v863_v4 = vpop.permute.xlu1 %862 }
  0xfc   : > { %v858_v2 = vpop.permute.xlu0 %857 }
 0x100   : > { %v868_v19 = vpop.permute.xlu0 %867 }
 0x102   : > { %5451 = vmatmul.mubr.bf16.gmra.mrb[56].mxu0 %v483_v21  ;;  %v873_v21 = vpop.permute.xlu1 %872 }
 0x165   : > { %v582_v23 = vpop.f32.mrb[0].mxu0 }
 0x166   : > { %v708_v26 = vmul.f32 %v6942_v22, %v582_v23  ;;  %v5396_v27 = vpop.f32.mrb[1].mxu0 }
 0x167   : > { %v585_v0 = vpop.f32.mrb[2].mxu0 }
 0x168   : > { %v745_v28 = vadd.f32 %v6947_v24, %v708_v26  ;;  %v709_v29 = vmul.f32 %v6942_v22, %v585_v0  ;;  %v5397_v30 = vpop.f32.mrb[3].mxu0 }
 0x16a   : > { %v746_v31 = vadd.f32 %v6947_v24, %v709_v29  ;;  %v775_v32 = vmax.f32 %v745_v28, 0.0 }
 0x16c   : > { %v776_v34 = vmax.f32 %v746_v31, 0.0  ;;  %v985_v36 = vmul.f32 %v838_v25, %v775_v32 }
 0x16d   : > { %v590_v35 = vpop.f32.mrb[4].mxu0 }
 0x16e   : > { %v986_v37 = vmul.f32 %v843_v33, %v776_v34  ;;  %v710_v38 = vmul.f32 %v6942_v22, %v590_v35  ;;  %v5400_v39 = vpop.f32.mrb[5].mxu0 }
 0x16f   : > { %v593_v41 = vpop.f32.mrb[6].mxu0  ;;  %v883_v39 = vpop.permute.xlu1 %882 }
 0x170   : > { %v1015_v42 = vpack.c.bf16 %v986_v37, %v985_v36  ;;  %v747_v43 = vadd.f32 %v6947_v24, %v710_v38  ;;  %v711_v44 = vmul.f32 %v6942_v22, %v593_v41  ;;  %v5401_v45 = vpop.f32.mrb[7].mxu0  ;;  %v878_v36 = vpop.permute.xlu0 %877 }
 0x172   : > { %v1047_v46 = vrot.slane %v1015_v42, 4  ;;  %v777_v47 = vmax.f32 %v747_v43, 0.0  ;;  %v748_v48 = vadd.f32 %v6947_v24, %v711_v44 }
 0x174   : > { %1092 = vst [vmem:[#allocation2] sm:$0xf0] %v1047_v46  ;;  %v778_v49 = vmax.f32 %v748_v48, 0.0  ;;  %v987_v52 = vmul.f32 %v848_v40, %v777_v47 }
 0x175   : > { %v598_v51 = vpop.f32.mrb[8].mxu0 }
 0x176   : > { %v988_v53 = vmul.f32 %v853_v50, %v778_v49  ;;  %v712_v54 = vmul.f32 %v6942_v22, %v598_v51  ;;  %v5404_v55 = vpop.f32.mrb[9].mxu0 }
 0x177   : > { %v601_v56 = vpop.f32.mrb[10].mxu0 }
 0x178   : > { %v1016_v57 = vpack.c.bf16 %v988_v53, %v987_v52  ;;  %v749_v58 = vadd.f32 %v6947_v24, %v712_v54  ;;  %v713_v59 = vmul.f32 %v6942_v22, %v601_v56  ;;  %v5405_v60 = vpop.f32.mrb[11].mxu0  ;;  %v888_v53 = vpop.permute.xlu0 %887 }
 0x179   : > { %v893_v56 = vpop.permute.xlu1 %892 }
 0x17a   : > { %v1048_v61 = vrot.slane %v1016_v57, 4  ;;  %v779_v62 = vmax.f32 %v749_v58, 0.0  ;;  %v750_v63 = vadd.f32 %v6947_v24, %v713_v59 }
 0x17c   : > { %v1049_v1 = vsel %vm1046_vm1, %v1047_v46, %v1048_v61  ;;  %v780_v3 = vmax.f32 %v750_v63, 0.0  ;;  %v989_v6 = vmul.f32 %v858_v2, %v779_v62 }
 0x17d   : > { %1093 = vst [vmem:[#allocation2 + $0x8] sm:$0xff] %v1049_v1  ;;  %v606_v5 = vpop.f32.mrb[12].mxu0 }
 0x17e   : > { %v990_v7 = vmul.f32 %v863_v4, %v780_v3  ;;  %v714_v8 = vmul.f32 %v6942_v22, %v606_v5  ;;  %v5408_v9 = vpop.f32.mrb[13].mxu0 }
 0x17f   : > { %v609_v10 = vpop.f32.mrb[14].mxu0 }
 0x180   : > { %v1017_v11 = vpack.c.bf16 %v990_v7, %v989_v6  ;;  %v751_v12 = vadd.f32 %v6947_v24, %v714_v8  ;;  %v715_v13 = vmul.f32 %v6942_v22, %v609_v10  ;;  %v5409_v14 = vpop.f32.mrb[15].mxu0  ;;  %v898_v7 = vpop.permute.xlu0 %897 }
 0x181   : > { %v903_v10 = vpop.permute.xlu1 %902 }
 0x182   : > { %v1050_v15 = vrot.slane %v1017_v11, 4  ;;  %v781_v16 = vmax.f32 %v751_v12, 0.0  ;;  %v752_v17 = vadd.f32 %v6947_v24, %v715_v13 }
 0x184   : > { %v1051_v18 = vsel %vm1046_vm1, %v1048_v61, %v1050_v15  ;;  %v782_v20 = vmax.f32 %v752_v17, 0.0  ;;  %v991_v25 = vmul.f32 %v868_v19, %v781_v16 }
 0x185   : > { %1094 = vst [vmem:[#allocation2 + $0x10] sm:$0xff] %v1051_v18  ;;  %v614_v23 = vpop.f32.mrb[16].mxu0 }
 0x186   : > { %v992_v26 = vmul.f32 %v873_v21, %v782_v20  ;;  %v716_v27 = vmul.f32 %v6942_v22, %v614_v23  ;;  %v5412_v0 = vpop.f32.mrb[17].mxu0 }
 0x187   : > { %v617_v28 = vpop.f32.mrb[18].mxu0 }
 0x188   : > { %v1018_v29 = vpack.c.bf16 %v992_v26, %v991_v25  ;;  %v753_v30 = vadd.f32 %v6947_v24, %v716_v27  ;;  %v717_v31 = vmul.f32 %v6942_v22, %v617_v28  ;;  %v5413_v32 = vpop.f32.mrb[19].mxu0  ;;  %v908_v26 = vpop.permute.xlu0 %907 }
 0x189   : > { %v913_v28 = vpop.permute.xlu1 %912 }
 0x18a   : > { %v1052_v33 = vrot.slane %v1018_v29, 4  ;;  %v783_v34 = vmax.f32 %v753_v30, 0.0  ;;  %v754_v35 = vadd.f32 %v6947_v24, %v717_v31 }
 0x18c   : > { %v1053_v37 = vsel %vm1046_vm1, %v1050_v15, %v1052_v33  ;;  %v784_v38 = vmax.f32 %v754_v35, 0.0  ;;  %v993_v41 = vmul.f32 %v878_v36, %v783_v34 }
 0x18d   : > { %1095 = vst [vmem:[#allocation2 + $0x18] sm:$0xff] %v1053_v37  ;;  %v622_v40 = vpop.f32.mrb[20].mxu0 }
 0x18e   : > { %v994_v42 = vmul.f32 %v883_v39, %v784_v38  ;;  %v718_v43 = vmul.f32 %v6942_v22, %v622_v40  ;;  %v5416_v44 = vpop.f32.mrb[21].mxu0 }
 0x18f   : > { %v625_v45 = vpop.f32.mrb[22].mxu0 }
 0x190   : > { %v1019_v46 = vpack.c.bf16 %v994_v42, %v993_v41  ;;  %v755_v47 = vadd.f32 %v6947_v24, %v718_v43  ;;  %v719_v48 = vmul.f32 %v6942_v22, %v625_v45  ;;  %v5417_v49 = vpop.f32.mrb[23].mxu0  ;;  %v918_v42 = vpop.permute.xlu0 %917 }
 0x191   : > { %v923_v45 = vpop.permute.xlu1 %922 }
 0x192   : > { %v1054_v50 = vrot.slane %v1019_v46, 4  ;;  %v785_v51 = vmax.f32 %v755_v47, 0.0  ;;  %v756_v52 = vadd.f32 %v6947_v24, %v719_v48 }
 0x194   : > { %v1055_v54 = vsel %vm1046_vm1, %v1052_v33, %v1054_v50  ;;  %v786_v55 = vmax.f32 %v756_v52, 0.0  ;;  %v995_v58 = vmul.f32 %v888_v53, %v785_v51 }
 0x195   : > { %1096 = vst [vmem:[#allocation2 + $0x20] sm:$0xff] %v1055_v54  ;;  %v630_v57 = vpop.f32.mrb[24].mxu0 }
 0x196   : > { %v996_v59 = vmul.f32 %v893_v56, %v786_v55  ;;  %v720_v60 = vmul.f32 %v6942_v22, %v630_v57  ;;  %v5420_v61 = vpop.f32.mrb[25].mxu0 }
 0x197   : > { %v633_v62 = vpop.f32.mrb[26].mxu0 }
 0x198   : > { %v1020_v63 = vpack.c.bf16 %v996_v59, %v995_v58  ;;  %v757_v1 = vadd.f32 %v6947_v24, %v720_v60  ;;  %v721_v2 = vmul.f32 %v6942_v22, %v633_v62  ;;  %v5421_v3 = vpop.f32.mrb[27].mxu0  ;;  %v928_v59 = vpop.permute.xlu0 %927 }
 0x199   : > { %v933_v62 = vpop.permute.xlu1 %932 }
 0x19a   : > { %v1056_v4 = vrot.slane %v1020_v63, 4  ;;  %v787_v5 = vmax.f32 %v757_v1, 0.0  ;;  %v758_v6 = vadd.f32 %v6947_v24, %v721_v2 }
 0x19c   : > { %v1057_v8 = vsel %vm1046_vm1, %v1054_v50, %v1056_v4  ;;  %v788_v9 = vmax.f32 %v758_v6, 0.0  ;;  %v997_v12 = vmul.f32 %v898_v7, %v787_v5 }
 0x19d   : > { %1097 = vst [vmem:[#allocation2 + $0x28] sm:$0xff] %v1057_v8  ;;  %v638_v11 = vpop.f32.mrb[28].mxu0 }
 0x19e   : > { %v998_v13 = vmul.f32 %v903_v10, %v788_v9  ;;  %v722_v14 = vmul.f32 %v6942_v22, %v638_v11  ;;  %v5424_v15 = vpop.f32.mrb[29].mxu0 }
 0x19f   : > { %v641_v16 = vpop.f32.mrb[30].mxu0 }
 0x1a0   : > { %v1021_v17 = vpack.c.bf16 %v998_v13, %v997_v12  ;;  %v759_v18 = vadd.f32 %v6947_v24, %v722_v14  ;;  %v723_v19 = vmul.f32 %v6942_v22, %v641_v16  ;;  %v5425_v20 = vpop.f32.mrb[31].mxu0  ;;  %v938_v13 = vpop.permute.xlu0 %937 }
 0x1a1   : > { %v943_v16 = vpop.permute.xlu1 %942 }
 0x1a2   : > { %v1058_v21 = vrot.slane %v1021_v17, 4  ;;  %v789_v23 = vmax.f32 %v759_v18, 0.0  ;;  %v760_v25 = vadd.f32 %v6947_v24, %v723_v19 }
 0x1a4   : > { %v1059_v27 = vsel %vm1046_vm1, %v1056_v4, %v1058_v21  ;;  %v790_v0 = vmax.f32 %v760_v25, 0.0  ;;  %v999_v30 = vmul.f32 %v908_v26, %v789_v23 }
 0x1a5   : > { %1098 = vst [vmem:[#allocation2 + $0x30] sm:$0xff] %v1059_v27  ;;  %v646_v29 = vpop.f32.mrb[32].mxu0 }
 0x1a6   : > { %v1000_v31 = vmul.f32 %v913_v28, %v790_v0  ;;  %v724_v32 = vmul.f32 %v6942_v22, %v646_v29  ;;  %v5428_v33 = vpop.f32.mrb[33].mxu0 }
 0x1a7   : > { %v649_v34 = vpop.f32.mrb[34].mxu0 }
 0x1a8   : > { %v1022_v35 = vpack.c.bf16 %v1000_v31, %v999_v30  ;;  %v761_v36 = vadd.f32 %v6947_v24, %v724_v32  ;;  %v725_v37 = vmul.f32 %v6942_v22, %v649_v34  ;;  %v5429_v38 = vpop.f32.mrb[35].mxu0  ;;  %v948_v31 = vpop.permute.xlu0 %947 }
 0x1a9   : > { %v953_v34 = vpop.permute.xlu1 %952 }
 0x1aa   : > { %v1060_v39 = vrot.slane %v1022_v35, 4  ;;  %v791_v40 = vmax.f32 %v761_v36, 0.0  ;;  %v762_v41 = vadd.f32 %v6947_v24, %v725_v37 }
 0x1ac   : > { %v1061_v43 = vsel %vm1046_vm1, %v1058_v21, %v1060_v39  ;;  %v792_v44 = vmax.f32 %v762_v41, 0.0  ;;  %v1001_v47 = vmul.f32 %v918_v42, %v791_v40 }
 0x1ad   : > { %1099 = vst [vmem:[#allocation2 + $0x38] sm:$0xff] %v1061_v43  ;;  %v654_v46 = vpop.f32.mrb[36].mxu0 }
 0x1ae   : > { %v1002_v48 = vmul.f32 %v923_v45, %v792_v44  ;;  %v726_v49 = vmul.f32 %v6942_v22, %v654_v46  ;;  %v5432_v50 = vpop.f32.mrb[37].mxu0 }
 0x1af   : > { %v657_v51 = vpop.f32.mrb[38].mxu0 }
 0x1b0   : > { %v1023_v52 = vpack.c.bf16 %v1002_v48, %v1001_v47  ;;  %v763_v53 = vadd.f32 %v6947_v24, %v726_v49  ;;  %v727_v54 = vmul.f32 %v6942_v22, %v657_v51  ;;  %v5433_v55 = vpop.f32.mrb[39].mxu0  ;;  %v958_v48 = vpop.permute.xlu0 %957 }
 0x1b1   : > { %v963_v51 = vpop.permute.xlu1 %962 }
 0x1b2   : > { %v1062_v56 = vrot.slane %v1023_v52, 4  ;;  %v793_v57 = vmax.f32 %v763_v53, 0.0  ;;  %v764_v58 = vadd.f32 %v6947_v24, %v727_v54 }
 0x1b4   : > { %v1063_v60 = vsel %vm1046_vm1, %v1060_v39, %v1062_v56  ;;  %v794_v61 = vmax.f32 %v764_v58, 0.0  ;;  %v1003_v1 = vmul.f32 %v928_v59, %v793_v57 }
 0x1b5   : > { %1100 = vst [vmem:[#allocation2 + $0x40] sm:$0xff] %v1063_v60  ;;  %v662_v63 = vpop.f32.mrb[40].mxu0 }
 0x1b6   : > { %v1004_v2 = vmul.f32 %v933_v62, %v794_v61  ;;  %v728_v3 = vmul.f32 %v6942_v22, %v662_v63  ;;  %v5436_v4 = vpop.f32.mrb[41].mxu0 }
 0x1b7   : > { %v665_v5 = vpop.f32.mrb[42].mxu0 }
 0x1b8   : > { %v1024_v6 = vpack.c.bf16 %v1004_v2, %v1003_v1  ;;  %v765_v7 = vadd.f32 %v6947_v24, %v728_v3  ;;  %v729_v8 = vmul.f32 %v6942_v22, %v665_v5  ;;  %v5437_v9 = vpop.f32.mrb[43].mxu0  ;;  %v968_v2 = vpop.permute.xlu0 %967 }
 0x1b9   : > { %v973_v5 = vpop.permute.xlu1 %972 }
 0x1ba   : > { %v1064_v10 = vrot.slane %v1024_v6, 4  ;;  %v795_v11 = vmax.f32 %v765_v7, 0.0  ;;  %v766_v12 = vadd.f32 %v6947_v24, %v729_v8 }
 0x1bc   : > { %v1065_v14 = vsel %vm1046_vm1, %v1062_v56, %v1064_v10  ;;  %v796_v15 = vmax.f32 %v766_v12, 0.0  ;;  %v1005_v18 = vmul.f32 %v938_v13, %v795_v11 }
 0x1bd   : > { %1101 = vst [vmem:[#allocation2 + $0x48] sm:$0xff] %v1065_v14  ;;  %v670_v17 = vpop.f32.mrb[44].mxu0 }
 0x1be   : > { %v1006_v19 = vmul.f32 %v943_v16, %v796_v15  ;;  %v730_v20 = vmul.f32 %v6942_v22, %v670_v17  ;;  %v5440_v21 = vpop.f32.mrb[45].mxu0 }
 0x1bf   : > { %v673_v23 = vpop.f32.mrb[46].mxu0  ;;  %v983_v21 = vpop.permute.xlu1 %982 }
 0x1c0   : > { %v1025_v25 = vpack.c.bf16 %v1006_v19, %v1005_v18  ;;  %v767_v26 = vadd.f32 %v6947_v24, %v730_v20  ;;  %v731_v27 = vmul.f32 %v6942_v22, %v673_v23  ;;  %v5441_v0 = vpop.f32.mrb[47].mxu0  ;;  %v978_v23 = vpop.permute.xlu0 %977 }
 0x1c2   : > { %v1066_v28 = vrot.slane %v1025_v25, 4  ;;  %v797_v29 = vmax.f32 %v767_v26, 0.0  ;;  %v768_v30 = vadd.f32 %v6947_v24, %v731_v27 }
 0x1c4   : > { %v1067_v32 = vsel %vm1046_vm1, %v1064_v10, %v1066_v28  ;;  %v798_v33 = vmax.f32 %v768_v30, 0.0  ;;  %v1007_v36 = vmul.f32 %v948_v31, %v797_v29 }
 0x1c5   : > { %1102 = vst [vmem:[#allocation2 + $0x50] sm:$0xff] %v1067_v32  ;;  %v678_v35 = vpop.f32.mrb[48].mxu0 }
 0x1c6   : > { %v1008_v37 = vmul.f32 %v953_v34, %v798_v33  ;;  %v732_v38 = vmul.f32 %v6942_v22, %v678_v35  ;;  %v5444_v39 = vpop.f32.mrb[49].mxu0 }
 0x1c7   : > { %v681_v40 = vpop.f32.mrb[50].mxu0 }
 0x1c8   : > { %v1026_v41 = vpack.c.bf16 %v1008_v37, %v1007_v36  ;;  %v769_v42 = vadd.f32 %v6947_v24, %v732_v38  ;;  %v733_v43 = vmul.f32 %v6942_v22, %v681_v40  ;;  %v5445_v44 = vpop.f32.mrb[51].mxu0 }
 0x1ca   : > { %v1068_v45 = vrot.slane %v1026_v41, 4  ;;  %v799_v46 = vmax.f32 %v769_v42, 0.0  ;;  %v770_v47 = vadd.f32 %v6947_v24, %v733_v43 }
 0x1cc   : > { %v1069_v49 = vsel %vm1046_vm1, %v1066_v28, %v1068_v45  ;;  %v800_v50 = vmax.f32 %v770_v47, 0.0  ;;  %v1009_v53 = vmul.f32 %v958_v48, %v799_v46 }
 0x1cd   : > { %1103 = vst [vmem:[#allocation2 + $0x58] sm:$0xff] %v1069_v49  ;;  %v686_v52 = vpop.f32.mrb[52].mxu0 }
 0x1ce   : > { %v1010_v54 = vmul.f32 %v963_v51, %v800_v50  ;;  %v734_v55 = vmul.f32 %v6942_v22, %v686_v52  ;;  %v5448_v56 = vpop.f32.mrb[53].mxu0 }
 0x1cf   : > { %v689_v57 = vpop.f32.mrb[54].mxu0 }
 0x1d0   : > { %v1027_v58 = vpack.c.bf16 %v1010_v54, %v1009_v53  ;;  %v771_v59 = vadd.f32 %v6947_v24, %v734_v55  ;;  %v735_v60 = vmul.f32 %v6942_v22, %v689_v57  ;;  %v5449_v61 = vpop.f32.mrb[55].mxu0 }
 0x1d2   : > { %v1070_v62 = vrot.slane %v1027_v58, 4  ;;  %v801_v63 = vmax.f32 %v771_v59, 0.0  ;;  %v772_v1 = vadd.f32 %v6947_v24, %v735_v60 }
 0x1d4   : > { %v1071_v3 = vsel %vm1046_vm1, %v1068_v45, %v1070_v62  ;;  %v802_v4 = vmax.f32 %v772_v1, 0.0  ;;  %v1011_v7 = vmul.f32 %v968_v2, %v801_v63 }
 0x1d5   : > { %1104 = vst [vmem:[#allocation2 + $0x60] sm:$0xff] %v1071_v3  ;;  %v694_v6 = vpop.f32.mrb[56].mxu0 }
 0x1d6   : > { %v1012_v8 = vmul.f32 %v973_v5, %v802_v4  ;;  %v736_v9 = vmul.f32 %v6942_v22, %v694_v6  ;;  %v5452_v10 = vpop.f32.mrb[57].mxu0 }
 0x1d7   : > { %v697_v11 = vpop.f32.mrb[58].mxu0 }
 0x1d8   : > { %v1028_v12 = vpack.c.bf16 %v1012_v8, %v1011_v7  ;;  %v773_v13 = vadd.f32 %v6947_v24, %v736_v9  ;;  %v737_v14 = vmul.f32 %v6942_v22, %v697_v11  ;;  %v5453_v15 = vpop.f32.mrb[59].mxu0  ;;  %v6486_v22 = vmov (!%p5038_p4), 0  }
 0x1d9   : > { %1113 = vst [vmem:[#allocation2] sm:$0xf0] (!%p5038_p4), %v6486_v22  ;;  %1114 = vst [vmem:[#allocation2 + $0x8] sm:$0xff] (!%p5038_p4), %v6486_v22 }
 0x1da   : > { %v1072_v16 = vrot.slane %v1028_v12, 4  ;;  %v803_v17 = vmax.f32 %v773_v13, 0.0  ;;  %v774_v18 = vadd.f32 %v6947_v24, %v737_v14 }
 0x1dc   : > { %v1073_v19 = vsel %vm1046_vm1, %v1070_v62, %v1072_v16  ;;  %v804_v20 = vmax.f32 %v774_v18, 0.0  ;;  %v1013_v25 = vmul.f32 %v978_v23, %v803_v17 }
 0x1dd   : > { %1105 = vst [vmem:[#allocation2 + $0x68] sm:$0xff] %v1073_v19 }
 0x1de   : > { %v1014_v26 = vmul.f32 %v983_v21, %v804_v20 }
 0x1df   : > { %1112 = sbr.rel (%p5038_p4) target bundleno = 486 (0x1e6), region = 76 }
 0x1e0   : > { %v1029_v27 = vpack.c.bf16 %v1014_v26, %v1013_v25 }
 0x1e2   : > { %v1074_v0 = vrot.slane %v1029_v27, 4 }
 0x1e4   : > { %v1075_v28 = vsel %vm1046_vm1, %v1072_v16, %v1074_v0  ;;  %1107 = vst [vmem:[#allocation2 + $0x78] sm:$0xf] %v1074_v0 }
 0x1e5   : > { %1106 = vst [vmem:[#allocation2 + $0x70] sm:$0xff] %v1075_v28 }
 0x1e6 PF: > { %p5039_p7 = scmp.ne.s32.totalorder %s6459_s23, 1 }
 0x1e7   : > { %v6487_v24 = vmov (!%p5039_p7), 0  }
 0x1e8   : > { %1118 = sbr.rel (%p5039_p7) target bundleno = 495 (0x1ef), region = 80  ;;  %1119 = vst [vmem:[#allocation2 + $0x70] sm:$0xff] (!%p5039_p7), %v6487_v24  ;;  %1120 = vst [vmem:[#allocation2 + $0x78] sm:$0xf] (!%p5039_p7), %v6487_v24 }
 0x1ef PF: > { %v6202_v29 = vld [vmem:[#allocation7 + $0x80] sm:$0xff]   ;;  %v6203_v30 = vld [vmem:[#allocation7 + $0x88] sm:$0xff]   ;;  %v6204_v31 = vld [vmem:[#allocation7 + $0x90] sm:$0xff]   ;;  %vm1839_vm2 = vsmask.f32 3328  ;;  %s8022_s15 = sld [smem:[#allocation23_spill]] }
 0x1f0   : > { %5534 = vmatprep.subr.bf16.mxu1 %v6202_v29  ;;  %v6205_v32 = vld [vmem:[#allocation7 + $0x98] sm:$0xff]   ;;  %v1809_v33 = vld [vmem:[#allocation2] sm:$0xf0]  ;;  %v7028_v34 = vld [vmem:[#allocation2 + $0x8] sm:$0xff]  ;;  %vm1150_vm3 = vsmask.f32 4352 }
 0x1f1   : > { %5535 = vmatpush3.bf16.msra.mxu1 %v6202_v29  ;;  %v1841_v35 = vshrl.u32 %v1809_v33, 16  ;;  %v1844_v36 = vshll.u32 %v1809_v33, 16  ;;  %v1849_v37 = vshrl.u32 %v7028_v34, 16  ;;  %v1852_v38 = vshll.u32 %v7028_v34, 16  ;;  %v6206_v43 = vld [vmem:[#allocation7 + $0xa0] sm:$0xff]   ;;  %v6207_v47 = vld [vmem:[#allocation7 + $0xa8] sm:$0xff]  }
 0x1f2   : > { %5536 = vmatprep.subr.bf16.mxu1 %v6203_v30  ;;  %v1811_v48 = vld [vmem:[#allocation2 + $0x10] sm:$0xff]  ;;  %v1812_v49 = vld [vmem:[#allocation2 + $0x18] sm:$0xff]  ;;  %v1813_v57 = vld [vmem:[#allocation2 + $0x20] sm:$0xff]  ;;  %vm2917_vm4 = vsmask.f32 7424  ;;  %s8025_s28 = sld [smem:[#allocation21_spill]] }
 0x1f3   : > { %v1843_v39 = vrot.slane %v1841_v35, 4  ;;  %v1846_v40 = vrot.slane %v1844_v36, 5  ;;  %v1851_v41 = vrot.slane %v1849_v37, 4  ;;  %v1854_v42 = vrot.slane %v1852_v38, 5  ;;  %v6208_v52 = vld [vmem:[#allocation7 + $0xb0] sm:$0xff]   ;;  %v1814_v58 = vld [vmem:[#allocation2 + $0x28] sm:$0xff] }
 0x1f4   : > { %v7037_v50 = vshrl.u32 %v1811_v48, 16  ;;  %v7039_v51 = vshll.u32 %v1811_v48, 16  ;;  %v7041_v53 = vshrl.u32 %v1812_v49, 16  ;;  %v7043_v54 = vshll.u32 %v1812_v49, 16  ;;  %v6209_v59 = vld [vmem:[#allocation7 + $0xb8] sm:$0xff]   ;;  %v6210_v4 = vld [vmem:[#allocation7 + $0xc0] sm:$0xff]  }
 0x1f5   : > { %5537 = vmatpush3.bf16.msra.mxu1 %v6203_v30  ;;  %v1847_v44 = vor.u32 %v1846_v40, %v1843_v39  ;;  %v1855_v45 = vor.u32 %v1854_v42, %v1851_v41  ;;  %v7049_v62 = vshrl.u32 %v1813_v57, 16  ;;  %v7051_v63 = vshll.u32 %v1813_v57, 16  ;;  %v1815_v6 = vld [vmem:[#allocation2 + $0x30] sm:$0xff]  ;;  %v6211_v7 = vld [vmem:[#allocation7 + $0xc8] sm:$0xff]   ;;  %v1816_v11 = vld [vmem:[#allocation2 + $0x38] sm:$0xff]  ;;  %s8026_s24 = sld [smem:[#allocation22_spill]] }
 0x1f6   : > { %5538 = vmatprep.subr.bf16.mxu1 %v6204_v31  ;;  %v1860_v55 = vrot.slane %v7037_v50, 4  ;;  %v1863_v56 = vrot.slane %v7039_v51, 5  ;;  %v1869_v60 = vrot.slane %v7041_v53, 4  ;;  %v1872_v61 = vrot.slane %v7043_v54, 5  ;;  %v1817_v14 = vld [vmem:[#allocation2 + $0x40] sm:$0xff]  ;;  %v6224_v19 = vld [vmem:[#allocation7 + $0x8] sm:$0xff]  }
 0x1f7   : > { %v1856_v46 = vsel %vm1839_vm2, %v1847_v44, %v1855_v45  ;;  %v7053_v1 = vshrl.u32 %v1814_v58, 16  ;;  %v7055_v3 = vshll.u32 %v1814_v58, 16  ;;  %v1878_v8 = vrot.slane %v7049_v62, 4  ;;  %v6223_v17 = vld [vmem:[#allocation7] sm:$0xff]   ;;  %v6212_v21 = vld [vmem:[#allocation7 + $0xd0] sm:$0xff]   ;;  %v1818_v22 = vld [vmem:[#allocation2 + $0x48] sm:$0xff] }
 0x1f8   : > { %5550 = vmatprep.mubr.bf16.mxu1 %v1856_v46  ;;  %v1864_v2 = vor.u32 %v1863_v56, %v1860_v55  ;;  %v1873_v5 = vor.u32 %v1872_v61, %v1869_v60  ;;  %v1881_v9 = vrot.slane %v7051_v63, 5  ;;  %v7063_v16 = vshrl.u32 %v1815_v6, 16  ;;  %5454 = vmatprep.subr.bf16.mxu0 %v6223_v17  ;;  %v6226_v29 = vld [vmem:[#allocation7 + $0x10] sm:$0xff]   ;;  %v6213_v35 = vld [vmem:[#allocation7 + $0xd8] sm:$0xff]   ;;  %v6215_v56 = vld [vmem:[#allocation7 + $0xe8] sm:$0xff]   ;;  %s8027_s8 = sld [smem:[#allocation24_spill]] }
 0x1f9   : > { %5539 = vmatpush3.bf16.msra.mxu1 %v6204_v31  ;;  %v1887_v10 = vrot.slane %v7053_v1, 4  ;;  %v1890_v13 = vrot.slane %v7055_v3, 5  ;;  %v7065_v18 = vshll.u32 %v1815_v6, 16  ;;  %v7067_v23 = vshrl.u32 %v1816_v11, 16  ;;  %5455 = vmatpush3.bf16.msra.mxu0 %v6223_v17  ;;  %v7090_v49 = vld [vmem:[#allocation2 + $0x58] sm:$0xff]  ;;  %v6229_v58 = vld [vmem:[#allocation7 + $0x20] sm:$0xff]  }
 0x1fa   : > { %5540 = vmatprep.subr.bf16.mxu1 %v6205_v32  ;;  %v1865_v12 = vsel %vm1839_vm2, %v1855_v45, %v1864_v2  ;;  %v1874_v15 = vsel %vm1839_vm2, %v1864_v2, %v1873_v5  ;;  %v1882_v20 = vor.u32 %v1881_v9, %v1878_v8  ;;  %v7069_v25 = vshll.u32 %v1816_v11, 16  ;;  %5456 = vmatprep.subr.bf16.mxu0 %v6224_v19  ;;  %v6228_v45 = vld [vmem:[#allocation7 + $0x18] sm:$0xff]   ;;  %v1821_v61 = vld [vmem:[#allocation2 + $0x60] sm:$0x1f]  ;;  %v6216_v9 = vld [vmem:[#allocation7 + $0xf0] sm:$0xff]   ;;  %s8028_s30 = sld [smem:[#allocation25_spill]] }
 0x1fb   : > { %v7071_v26 = vshrl.u32 %v1817_v14, 16  ;;  %v1891_v27 = vor.u32 %v1890_v13, %v1887_v10  ;;  %v1896_v0 = vrot.slane %v7063_v16, 4  ;;  %v1899_v28 = vrot.slane %v7065_v18, 5  ;;  %v6231_v10 = vld [vmem:[#allocation7 + $0x28] sm:$0xff]   ;;  %s8029_s29 = sld [smem:[#allocation14_spill]]  ;;  %s6066_s10 = smul.u32 24, %s6459_s23 }
 0x1fc   : > { %v2255_v24 = vrot.slane %v7037_v50, 7  ;;  %v1883_v30 = vsel %vm1839_vm2, %v1873_v5, %v1882_v20  ;;  %v1905_v31 = vrot.slane %v7067_v23, 4  ;;  %v1908_v36 = vrot.slane %v7069_v25, 5  ;;  %s4915_s11 = sshll.u32 %s7024_s12, 4  ;;  %s8030_s17 = sld [smem:[#allocation16_spill]]  ;;  %s7883_s11 = int_to_ptr.vmem [resolvable:$true] %s4915_s11 }
 0x1fd   : > { %5541 = vmatpush3.bf16.msra.mxu1 %v6205_v32  ;;  %v1819_v32 = vld [vmem:[#allocation2 + $0x50] sm:$0xff]  ;;  %v1892_v33 = vsel %vm1839_vm2, %v1882_v20, %v1891_v27  ;;  %v1914_v39 = vrot.slane %v7071_v26, 4  ;;  %v7081_v40 = vshll.u32 %v1817_v14, 16  ;;  %v7083_v41 = vshrl.u32 %v1818_v22, 16  ;;  %5457 = vmatpush3.bf16.msra.mxu0 %v6224_v19  ;;  %s8031_s7 = sld [smem:[#allocation26_spill]]  ;;  %s6349_s9 = scalar_lea.vmem %s7883_s11, 3072 }
 0x1fe   : > { %5542 = vmatprep.subr.bf16.mxu1 %v6206_v43  ;;  %v7085_v42 = vshll.u32 %v1818_v22, 16  ;;  %v7087_v44 = vshrl.u32 %v1819_v32, 16  ;;  %5458 = vmatprep.subr.bf16.mxu0 %v6226_v29  ;;  %v1900_v46 = vor.u32 %v1899_v28, %v1896_v0  ;;  %v1165_v55 = vrot.slane %v1852_v38, 4  ;;  %v6217_v0 = vld [vmem:[#allocation7 + $0xf8] sm:$0xff]   ;;  %v6233_v28 = vld [vmem:[#allocation7 + $0x30] sm:$0xff]   ;;  %p6350_p9 = scmp.ne.s32.totalorder %s7883_s11, %s6349_s9  ;;  %s6488_s16 = smov [#allocation9]  }
 0x1ff   : > { %v1917_v48 = vrot.slane %v7081_v40, 5  ;;  %v1923_v57 = vrot.slane %v7083_v41, 4  ;;  %v7100_v6 = vshll.u32 %v1819_v32, 16  ;;  %v7103_v34 = vshrl.u32 %v7090_v49, 16  ;;  %v2217_v32 = vld [vmem:[#allocation2 + $0x8] sm:$0x80] }
 0x200   : > { %v1901_v60 = vsel %vm1839_vm2, %v1891_v27, %v1900_v46  ;;  %v1948_v13 = vshrl.u32 %v1821_v61, 16  ;;  %v1932_v17 = vrot.slane %v7087_v44, 4  ;;  %v1951_v27 = vshll.u32 %v1821_v61, 16 }
 0x201   : > { %5543 = vmatpush3.bf16.msra.mxu1 %v6206_v43  ;;  %v6214_v43 = vld [vmem:[#allocation7 + $0xe0] sm:$0xff]   ;;  %5459 = vmatpush3.bf16.msra.mxu0 %v6226_v29  ;;  %v1918_v11 = vor.u32 %v1917_v48, %v1914_v39  ;;  %v1935_v19 = vrot.slane %v7100_v6, 5  ;;  %v1941_v20 = vrot.slane %v7103_v34, 4  ;;  %v1180_v39 = vrot.slane %v7041_v53, 3  ;;  %s6067_s20 = smul.u32 48, %s8029_s29 }
 0x202   : > { %5544 = vmatprep.subr.bf16.mxu1 %v6207_v47  ;;  %5460 = vmatprep.subr.bf16.mxu0 %v6228_v45  ;;  %v2928_v48 = vrot.slane %v7043_v54, 1  ;;  %vm2247_vm5 = vsmask.f32 256  ;;  %p8032_p11 = scmp.ne.s32.totalorder %s8030_s17, 0 }
 0x204   : > { %v2932_v61 = vor.u32 %v2928_v48, %v7041_v53  ;;  %p6351_p13 = pnand %p6350_p9, %p8032_p11 }
 0x205   : > { %5545 = vmatpush3.bf16.msra.mxu1 %v6207_v47  ;;  %v1909_v47 = vor.u32 %v1908_v36, %v1905_v31  ;;  %5461 = vmatpush3.bf16.msra.mxu0 %v6228_v45  ;;  %v1174_v36 = vrot.slane %v7039_v51, 4  ;;  %v2923_v45 = vrot.slane %v7039_v51, 1 }
 0x206   : > { %5546 = vmatprep.subr.bf16.mxu1 %v6208_v52  ;;  %5462 = vmatprep.subr.bf16.mxu0 %v6229_v58  ;;  %p6352_p0 = pneg %p6351_p13 }
 0x207   : > { %v1910_v5 = vsel %vm1839_vm2, %v1900_v46, %v1909_v47  ;;  %v1919_v22 = vsel %vm1839_vm2, %v1909_v47, %v1918_v11  ;;  %v1936_v46 = vor.u32 %v1935_v19, %v1932_v17  ;;  %v1953_v47 = vrot.slane %v1951_v27, 5  ;;  %v7155_v27 = vld [vmem:[#allocation2 + $0x60] sm:$0xff] }
 0x208   : > { %v2944_v17 = vrot.slane %v7055_v3, 1  ;;  %v1198_v19 = vrot.slane %v7053_v1, 3 }
 0x209   : > { %5547 = vmatpush3.bf16.msra.mxu1 %v6208_v52  ;;  %v1162_v52 = vrot.slane %v1849_v37, 3  ;;  %v1926_v37 = vrot.slane %v7085_v42, 5  ;;  %5463 = vmatpush3.bf16.msra.mxu0 %v6229_v58  ;;  %v2249_v58 = vshrl.u32 %v2217_v32, 16  ;;  %v2960_v32 = vrot.slane %v7069_v25, 1 }
 0x20a   : > { %5548 = vmatprep.subr.bf16.mxu1 %v6209_v59  ;;  %5464 = vmatprep.subr.bf16.mxu0 %v6231_v10 }
 0x20b   : > { %v7105_v8 = vor.u32 %v1165_v55, %v1162_v52  ;;  %v7126_v55 = vld [vmem:[#allocation7 + $0x100] sm:$0xff]  }
 0x20d   : > { %5549 = vmatpush3.bf16.msra.mxu1 %v6209_v59  ;;  %v1121_v59 = vld [vmem:[#allocation2] sm:$0xf8]  ;;  %5465 = vmatpush3.bf16.msra.mxu0 %v6231_v10 }
 0x20e   : > { %5574 = vmatprep.subr.bf16.mxu1 %v6210_v4  ;;  %v1152_v2 = vshrl.u32 %v1121_v59, 16  ;;  %5466 = vmatprep.subr.bf16.mxu0 %v6233_v28 }
 0x210   : > { %5551 = vmatmul.mubr.bf16.vlgmr.msra.gmra.mrb[0].mxu1 %v1865_v12  ;;  %v1154_v38 = vrot.slane %v1152_v2, 3  ;;  %v7108_v12 = vshll.u32 %v7090_v49, 16  ;;  %v2263_v2 = vrot.slane %v7041_v53, 7 }
 0x211   : > { %5575 = vmatpush3.bf16.msra.mxu1 %v6210_v4  ;;  %5554 = vmatprep.mubr.bf16.mxu1 %v1874_v15  ;;  %v1155_v4 = vshll.u32 %v1121_v59, 16  ;;  %v1927_v15 = vor.u32 %v1926_v37, %v1923_v57  ;;  %v2936_v57 = vrot.slane %v7051_v63, 1  ;;  %v2258_v59 = vor.u32 %v2255_v24, %v7039_v51 }
 0x212   : > { %5576 = vmatprep.subr.bf16.mxu1 %v6211_v7  ;;  %v1944_v29 = vrot.slane %v7108_v12, 5  ;;  %5467 = vmatpush3.bf16.msra.mxu0 %v6233_v28  ;;  %v1189_v51 = vrot.slane %v7049_v62, 3  ;;  %v6240_v28 = vld [vmem:[#allocation7 + $0x48] sm:$0xff]  }
 0x213   : > { %v1928_v31 = vsel %vm1839_vm2, %v1918_v11, %v1927_v15  ;;  %v7143_v10 = vsel %vm2917_vm4, %v2932_v61, %v2936_v57 }
 0x214   : > { %v1945_v52 = vor.u32 %v1944_v29, %v1941_v20  ;;  %v1201_v20 = vrot.slane %v7055_v3, 4  ;;  %v2948_v29 = vor.u32 %v2944_v17, %v7053_v1 }
 0x215   : > { %5577 = vmatpush3.bf16.msra.mxu1 %v6211_v7  ;;  %v1157_v7 = vrot.slane %v1155_v4, 4 }
 0x216   : > { %5578 = vmatprep.subr.bf16.mxu1 %v6212_v21  ;;  %v1946_v11 = vsel %vm1839_vm2, %v1936_v46, %v1945_v52 }
 0x217   : > { %v1158_v14 = vor.u32 %v1157_v7, %v1154_v38  ;;  %v2940_v38 = vor.u32 %v2936_v57, %v7049_v62  ;;  %v1937_v7 = vsel %vm1839_vm2, %v1927_v15, %v1936_v46  ;;  %v2336_v46 = vshll.u32 %v7155_v27, 16 }
 0x218   : > { %5555 = vmatmul.mubr.bf16.gmra.mrb[4].mxu1 %v1883_v30  ;;  %v7117_v30 = vrot.slane %v1948_v13, 4 }
 0x219   : > { %5579 = vmatpush3.bf16.msra.mxu1 %v6212_v21  ;;  %5558 = vmatprep.mubr.bf16.mxu1 %v1892_v33  ;;  %v1167_v21 = vsel %vm1150_vm3, %v1158_v14, %v7105_v8  ;;  %v6234_v33 = vld [vmem:[#allocation7 + $0x38] sm:$0xff]   ;;  %v1192_v14 = vrot.slane %v7051_v63, 4 }
 0x21a   : > { %5580 = vmatprep.subr.bf16.mxu1 %v6213_v35  ;;  %5470 = vmatprep.mubr.bf16.mxu0 %v1167_v21  ;;  %v1954_v13 = vor.u32 %v1953_v47, %v7117_v30  ;;  %v2952_v21 = vrot.slane %v7065_v18, 1  ;;  %v2279_v30 = vrot.slane %v7053_v1, 7 }
 0x21b   : > { %5468 = vmatprep.subr.bf16.mxu0 %v6234_v33  ;;  %v1193_v47 = vor.u32 %v1192_v14, %v1189_v51  ;;  %v1210_v51 = vrot.slane %v7065_v18, 4 }
 0x21c   : > { %5469 = vmatpush3.bf16.msra.mxu0 %v6234_v33  ;;  %v7165_v33 = vld [vmem:[#allocation2 + $0x68] sm:$0xff] }
 0x21d   : > { %5581 = vmatpush3.bf16.msra.mxu1 %v6213_v35  ;;  %v1171_v35 = vrot.slane %v7037_v50, 3  ;;  %v2341_v61 = vshrl.u32 %v7165_v33, 16 }
 0x21e   : > { %5582 = vmatprep.subr.bf16.mxu1 %v6214_v43 }
 0x220   : > { %5559 = vmatmul.mubr.bf16.gmra.mrb[8].mxu1 %v1901_v60  ;;  %v1175_v60 = vor.u32 %v1174_v36, %v1171_v35  ;;  %v7168_v35 = vsel %vm2917_vm4, %v2948_v29, %v2952_v21  ;;  %v2956_v36 = vor.u32 %v2952_v21, %v7063_v16  ;;  %v2992_v21 = vrot.slane %v7108_v12, 1 }
 0x221   : > { %5562 = vmatprep.mubr.bf16.mxu1 %v1910_v5  ;;  %5583 = vmatpush3.bf16.msra.mxu1 %v6214_v43  ;;  %v1183_v43 = vrot.slane %v7043_v54, 4  ;;  %v6239_v5 = vld [vmem:[#allocation7 + $0x40] sm:$0xff]  }
 0x222   : > { %5584 = vmatprep.subr.bf16.mxu1 %v6215_v56  ;;  %v1176_v15 = vsel %vm1150_vm3, %v7105_v8, %v1175_v60  ;;  %5494 = vmatprep.subr.bf16.mxu0 %v6239_v5  ;;  %v2251_v8 = vrot.slane %v2249_v58, 7  ;;  %v7176_v57 = vsel %vm2917_vm4, %v2956_v36, %v2960_v32  ;;  %v2964_v58 = vor.u32 %v2960_v32, %v7067_v23 }
 0x223   : > { %v1184_v4 = vor.u32 %v1183_v43, %v1180_v39  ;;  %5471 = vmatmul.mubr.bf16.vlgmr.msra.gmra.mrb[60].mxu0 %v1176_v15  ;;  %v2968_v39 = vrot.slane %v7081_v40, 1  ;;  %v1955_v43 = vsel %vm1839_vm2, %v1945_v52, %v1954_v13  ;;  %v1207_v52 = vrot.slane %v7063_v16, 3 }
 0x224   : > { %5495 = vmatpush3.bf16.msra.mxu0 %v6239_v5  ;;  %v2259_v5 = vsel %vm2247_vm5, %v2251_v8, %v2258_v59  ;;  %v1219_v59 = vrot.slane %v7069_v25, 4  ;;  %v2996_v36 = vor.u32 %v2992_v21, %v7103_v34 }
 0x225   : > { %5585 = vmatpush3.bf16.msra.mxu1 %v6215_v56  ;;  %v2924_v56 = vor.u32 %v2923_v45, %v7037_v50  ;;  %v2333_v45 = vshrl.u32 %v7155_v27, 16  ;;  %5496 = vmatprep.subr.bf16.mxu0 %v6240_v28  ;;  %v7188_v13 = vsel %vm2917_vm4, %v2964_v58, %v2968_v39  ;;  %v1194_v14 = vsel %vm1150_vm3, %v1184_v4, %v1193_v47 }
 0x226   : > { %5586 = vmatprep.subr.bf16.mxu1 %v6216_v9  ;;  %v1211_v32 = vor.u32 %v1210_v51, %v1207_v52  ;;  %v1228_v52 = vrot.slane %v7081_v40, 4 }
 0x227   : > { %v7136_v37 = vsel %vm2917_vm4, %v2924_v56, %v2928_v48  ;;  %v1202_v48 = vor.u32 %v1201_v20, %v1198_v19  ;;  %v6242_v56 = vld [vmem:[#allocation7 + $0x50] sm:$0xff]   ;;  %v6244_v20 = vld [vmem:[#allocation7 + $0x58] sm:$0xff]  }
 0x228   : > { %5563 = vmatmul.mubr.bf16.gmra.mrb[12].mxu1 %v1919_v22  ;;  %v7159_v22 = vsel %vm2917_vm4, %v2940_v38, %v2944_v17  ;;  %v2976_v38 = vrot.slane %v7085_v42, 1  ;;  %5497 = vmatpush3.bf16.msra.mxu0 %v6240_v28  ;;  %v3000_v28 = vrot.slane %v2336_v46, 1 }
 0x229   : > { %5566 = vmatprep.mubr.bf16.mxu1 %v1928_v31  ;;  %5587 = vmatpush3.bf16.msra.mxu1 %v6216_v9  ;;  %v2271_v9 = vrot.slane %v7049_v62, 7  ;;  %v2287_v31 = vrot.slane %v7063_v16, 7  ;;  %v1203_v19 = vsel %vm1150_vm3, %v1193_v47, %v1202_v48  ;;  %v6245_v47 = vld [vmem:[#allocation7 + $0x60] sm:$0xff]   ;;  %v1212_v51 = vsel %vm1150_vm3, %v1202_v48, %v1211_v32  ;;  %v6220_v48 = vld [vmem:[#allocation7 + $0x110] sm:$0xff]  }
 0x22a   : > { %5588 = vmatprep.subr.bf16.mxu1 %v6217_v0  ;;  %v2980_v15 = vor.u32 %v2976_v38, %v7083_v41  ;;  %5498 = vmatprep.subr.bf16.mxu0 %v6242_v56 }
 0x22b   : > { %v2274_v29 = vor.u32 %v2271_v9, %v7051_v63 }
 0x22c   : > { %5499 = vmatpush3.bf16.msra.mxu0 %v6242_v56  ;;  %v7221_v56 = vsel %vm2917_vm4, %v2996_v36, %v3000_v28  ;;  %v1133_v36 = vld [vmem:[#allocation2 + $0x60] sm:$0xf] }
 0x22d   : > { %5589 = vmatpush3.bf16.msra.mxu1 %v6217_v0  ;;  %v1185_v0 = vsel %vm1150_vm3, %v1175_v60, %v1184_v4  ;;  %v2972_v60 = vor.u32 %v2968_v39, %v7071_v26  ;;  %v2266_v4 = vor.u32 %v2263_v2, %v7043_v54  ;;  %v6219_v39 = vld [vmem:[#allocation7 + $0x108] sm:$0xff]   ;;  %v2344_v54 = vshll.u32 %v7165_v33, 16  ;;  %5500 = vmatprep.subr.bf16.mxu0 %v6244_v20 }
 0x22e   : > { %5614 = vmatprep.subr.bf16.mxu1 %v7126_v55  ;;  %5474 = vmatprep.mubr.bf16.mxu0 %v1185_v0 }
 0x22f   : > { %v7192_v17 = vsel %vm2917_vm4, %v2972_v60, %v2976_v38  ;;  %5475 = vmatmul.mubr.bf16.gmra.mrb[64].mxu0 %v1194_v14  ;;  %v2267_v63 = vsel %vm2247_vm5, %v2255_v24, %v2266_v4  ;;  %v1225_v60 = vrot.slane %v7071_v26, 3  ;;  %v2275_v38 = vsel %vm2247_vm5, %v2263_v2, %v2274_v29  ;;  %v6247_v24 = vld [vmem:[#allocation7 + $0x68] sm:$0xff]  }
 0x230   : > { %5567 = vmatmul.mubr.bf16.gmra.mrb[16].mxu1 %v1937_v7  ;;  %v2984_v7 = vrot.slane %v7100_v6, 1  ;;  %5478 = vmatprep.mubr.bf16.mxu0 %v1203_v19  ;;  %v3008_v53 = vrot.slane %v2344_v54, 1  ;;  %v2282_v2 = vor.u32 %v2279_v30, %v7055_v3  ;;  %v2290_v14 = vor.u32 %v2287_v31, %v7065_v18  ;;  %v6249_v3 = vld [vmem:[#allocation7 + $0x70] sm:$0xff]  }
 0x231   : > { %5570 = vmatprep.mubr.bf16.mxu1 %v1946_v11  ;;  %v1216_v11 = vrot.slane %v7067_v23, 3  ;;  %5501 = vmatpush3.bf16.msra.mxu0 %v6244_v20  ;;  %v2303_v4 = vrot.slane %v7071_v26, 7  ;;  %v1243_v29 = vrot.slane %v7087_v44, 3  ;;  %v1255_v26 = vrot.slane %v7108_v12, 4 }
 0x232   : > { %v7202_v0 = vsel %vm2917_vm4, %v2980_v15, %v2984_v7  ;;  %v2988_v8 = vor.u32 %v2984_v7, %v7087_v44  ;;  %v1234_v7 = vrot.slane %v7083_v41, 3  ;;  %5502 = vmatprep.subr.bf16.mxu0 %v6245_v47  ;;  %v7246_v19 = vor.u32 %v3008_v53, %v2341_v61 }
 0x233   : > { %v2283_v18 = vsel %vm2247_vm5, %v2271_v9, %v2282_v2  ;;  %v6250_v9 = vld [vmem:[#allocation7 + $0x78] sm:$0xff]  }
 0x234   : > { %v7213_v58 = vsel %vm2917_vm4, %v2988_v8, %v2992_v21  ;;  %v2295_v21 = vrot.slane %v7067_v23, 7  ;;  %v1246_v8 = vrot.slane %v7100_v6, 4  ;;  %v1252_v23 = vrot.slane %v7103_v34, 3 }
 0x235   : > { %5503 = vmatpush3.bf16.msra.mxu0 %v6245_v47  ;;  %v1262_v47 = vshll.u32 %v1133_v36, 16 }
 0x236   : > { %5504 = vmatprep.subr.bf16.mxu0 %v6247_v24  ;;  %v2298_v1 = vor.u32 %v2295_v21, %v7069_v25  ;;  %v6225_v25 = vld [vmem:[#allocation7 + $0x128] sm:$0xff]  }
 0x237   : > { %5479 = vmatmul.mubr.bf16.gmra.mrb[68].mxu0 %v1212_v51  ;;  %v1264_v51 = vrot.slane %v1262_v47, 4  ;;  %v7315_v47 = vld [vmem:[#allocation2 + $0x30] sm:$0xff] }
 0x238   : > { %5571 = vmatmul.mubr.bf16.gmra.mrb[20].mxu1 %v1955_v43  ;;  %v1220_v43 = vor.u32 %v1219_v59, %v1216_v11  ;;  %v3004_v11 = vor.u32 %v3000_v28, %v2333_v45  ;;  %v6221_v59 = vld [vmem:[#allocation7 + $0x118] sm:$0xff]   ;;  %v2291_v28 = vsel %vm2247_vm5, %v2279_v30, %v2290_v14  ;;  %v2306_v30 = vor.u32 %v2303_v4, %v7081_v40 }
 0x239   : > { %5590 = vmatprep.mubr.bf16.mxu1 %v2259_v5  ;;  %v1237_v5 = vrot.slane %v7085_v42, 4  ;;  %5505 = vmatpush3.bf16.msra.mxu0 %v6247_v24 }
 0x23a   : > { %v1221_v50 = vsel %vm1150_vm3, %v1211_v32, %v1220_v43  ;;  %v7242_v15 = vsel %vm2917_vm4, %v3004_v11, %v3008_v53  ;;  %5506 = vmatprep.subr.bf16.mxu0 %v6249_v3  ;;  %v2307_v40 = vsel %vm2247_vm5, %v2295_v21, %v2306_v30  ;;  %v6227_v11 = vld [vmem:[#allocation7 + $0x130] sm:$0xff]   ;;  %v7281_v21 = vld [vmem:[#allocation7 + $0x200] sm:$0xff]  }
 0x23b   : > { %5482 = vmatprep.mubr.bf16.mxu0 %v1221_v50  ;;  %v1238_v20 = vor.u32 %v1237_v5, %v1234_v7  ;;  %v2319_v7 = vrot.slane %v7087_v44, 7 }
 0x23d   : > { %5507 = vmatpush3.bf16.msra.mxu0 %v6249_v3  ;;  %v2322_v44 = vor.u32 %v2319_v7, %v7100_v6 }
 0x23e   : > { %5508 = vmatprep.subr.bf16.mxu0 %v6250_v9 }
 0x240   : > { %5591 = vmatmul.mubr.bf16.vlgmr.msra.gmra.mrb[0].mxu1 %v2267_v63  ;;  %v1247_v63 = vor.u32 %v1246_v8, %v1243_v29  ;;  %v6232_v29 = vld [vmem:[#allocation7 + $0x140] sm:$0xff]  }
 0x241   : > { %5615 = vmatpush3.bf16.msra.mxu1 %v7126_v55  ;;  %5594 = vmatprep.mubr.bf16.mxu1 %v2275_v38  ;;  %v1229_v55 = vor.u32 %v1228_v52, %v1225_v60  ;;  %v1256_v60 = vor.u32 %v1255_v26, %v1252_v23  ;;  %v2299_v52 = vsel %vm2247_vm5, %v2287_v31, %v2298_v1  ;;  %v2311_v38 = vrot.slane %v7083_v41, 7  ;;  %v1480_v31 = vld [vmem:[#allocation2] sm:$0xf0]  ;;  %v1481_v41 = vld [vmem:[#allocation2 + $0x8] sm:$0xff] }
 0x242   : > { %5616 = vmatprep.subr.bf16.mxu1 %v6219_v39  ;;  %v1248_v50 = vsel %vm1150_vm3, %v1238_v20, %v1247_v63  ;;  %5509 = vmatpush3.bf16.msra.mxu0 %v6250_v9  ;;  %v1523_v2 = vrot.slane %v1480_v31, 4  ;;  %v7293_v23 = vld [vmem:[#allocation2 + $0x20] sm:$0xff]  ;;  %v7295_v26 = vld [vmem:[#allocation7 + $0x208] sm:$0xff]  }
 0x243   : > { %v1230_v32 = vsel %vm1150_vm3, %v1220_v43, %v1229_v55  ;;  %v1239_v62 = vsel %vm1150_vm3, %v1229_v55, %v1238_v20  ;;  %v1259_v43 = vshrl.u32 %v1133_v36, 16  ;;  %v1257_v24 = vsel %vm1150_vm3, %v1247_v63, %v1256_v60  ;;  %v6230_v20 = vld [vmem:[#allocation7 + $0x138] sm:$0xff]   ;;  %5774 = vmatprep.subr.bf16.mxu0 %v7281_v21  ;;  %v7299_v1 = vld [vmem:[#allocation2 + $0x28] sm:$0xff]  ;;  %v7317_v63 = vld [vmem:[#allocation7 + $0x210] sm:$0xff]  }
 0x244   : > { %5483 = vmatmul.mubr.bf16.gmra.mrb[72].mxu0 %v1230_v32  ;;  %v2314_v16 = vor.u32 %v2311_v38, %v7085_v42  ;;  %v2327_v55 = vrot.slane %v7103_v34, 7  ;;  %v2335_v42 = vrot.slane %v2333_v45, 7  ;;  %v1483_v34 = vld [vmem:[#allocation2 + $0x18] sm:$0xff]  ;;  %v2343_v36 = vrot.slane %v2341_v61, 7  ;;  %v6284_v31 = vld [vmem:[#allocation2 + $0x20] sm:$0xff] }
 0x245   : > { %5617 = vmatpush3.bf16.msra.mxu1 %v6219_v39  ;;  %v6222_v39 = vld [vmem:[#allocation7 + $0x120] sm:$0xff]   ;;  %5486 = vmatprep.mubr.bf16.mxu0 %v1239_v62  ;;  %v1261_v5 = vrot.slane %v1259_v43, 3  ;;  %v1528_v8 = vrot.slane %v1483_v34, 4  ;;  %v7302_v61 = vrot.slane %v7293_v23, 4  ;;  %v1532_v30 = vrot.slane %v7299_v1, 4 }
 0x246   : > { %5618 = vmatprep.subr.bf16.mxu1 %v6220_v48  ;;  %v2315_v14 = vsel %vm2247_vm5, %v2303_v4, %v2314_v16  ;;  %v2330_v4 = vor.u32 %v2327_v55, %v7108_v12  ;;  %v2346_v9 = vor.u32 %v2344_v54, %v2343_v36  ;;  %v7338_v16 = vld [vmem:[#allocation7 + $0x220] sm:$0xff]   ;;  %v3318_v36 = vshrl.u32 %v7293_v23, 16 }
 0x247   : > { %v1265_v53 = vor.u32 %v1264_v51, %v1261_v5  ;;  %v1531_v43 = vsel %vm1046_vm1, %v1528_v8, %v7302_v61  ;;  %v7313_v54 = vsel %vm1046_vm1, %v7302_v61, %v1532_v30  ;;  %v6283_v51 = vld [vmem:[#allocation2 + $0x18] sm:$0xff]  ;;  %v6238_v34 = vld [vmem:[#allocation7 + $0x160] sm:$0xff]  }
 0x248   : > { %5595 = vmatmul.mubr.bf16.gmra.mrb[4].mxu1 %v2283_v18  ;;  %v1482_v18 = vld [vmem:[#allocation2 + $0x10] sm:$0xff]  ;;  %v2331_v32 = vsel %vm2247_vm5, %v2319_v7, %v2330_v4  ;;  %v4015_v4 = vld [vmem:[#allocation2 + $0x18] sm:$0xf0] }
 0x249   : > { %5619 = vmatpush3.bf16.msra.mxu1 %v6220_v48  ;;  %5598 = vmatprep.mubr.bf16.mxu1 %v2291_v28  ;;  %v1524_v48 = vrot.slane %v1481_v41, 4  ;;  %v1266_v6 = vsel %vm1150_vm3, %v1256_v60, %v1265_v53  ;;  %v2338_v28 = vor.u32 %v2336_v46, %v2335_v42  ;;  %v1526_v45 = vrot.slane %v1482_v18, 4  ;;  %v6282_v60 = vld [vmem:[#allocation2 + $0x10] sm:$0xff]  ;;  %v7340_v41 = vld [vmem:[#allocation2 + $0x48] sm:$0xff]  ;;  %v7364_v18 = vld [vmem:[#allocation7 + $0x238] sm:$0xff]  }
 0x24a   : > { %5620 = vmatprep.subr.bf16.mxu1 %v6221_v59 }
 0x24b   : > { %v1525_v3 = vsel %vm1046_vm1, %v1523_v2, %v1524_v48  ;;  %v2339_v12 = vsel %vm2247_vm5, %v2327_v55, %v2338_v28  ;;  %v1527_v62 = vsel %vm1046_vm1, %v1524_v48, %v1526_v45  ;;  %v1529_v46 = vsel %vm1046_vm1, %v1526_v45, %v1528_v8  ;;  %v6237_v48 = vld [vmem:[#allocation7 + $0x158] sm:$0xff]   ;;  %v6285_v55 = vld [vmem:[#allocation2 + $0x28] sm:$0xff] }
 0x24c   : > { %5487 = vmatmul.mubr.bf16.gmra.mrb[76].mxu0 %v1248_v50  ;;  %v1540_v2 = vrot.slane %v7340_v41, 4  ;;  %v4046_v45 = vshrl.u32 %v4015_v4, 16  ;;  %v4049_v8 = vshll.u32 %v4015_v4, 16 }
 0x24d   : > { %5621 = vmatpush3.bf16.msra.mxu1 %v6221_v59  ;;  %5490 = vmatprep.mubr.bf16.mxu0 %v1257_v24  ;;  %v2323_v59 = vsel %vm2247_vm5, %v2311_v38, %v2322_v44  ;;  %v7321_v38 = vld [vmem:[#allocation7 + $0x218] sm:$0xff]   ;;  %v7336_v24 = vld [vmem:[#allocation2 + $0x40] sm:$0xff]  ;;  %v7342_v44 = vld [vmem:[#allocation7 + $0x228] sm:$0xff]  }
 0x24e   : > { %5622 = vmatprep.subr.bf16.mxu1 %v6222_v39  ;;  %v1538_v53 = vrot.slane %v7336_v24, 4 }
 0x250   : > { %5599 = vmatmul.mubr.bf16.gmra.mrb[8].mxu1 %v2299_v52  ;;  %v7319_v52 = vld [vmem:[#allocation2 + $0x38] sm:$0xff] }
 0x251   : > { %5602 = vmatprep.mubr.bf16.mxu1 %v2307_v40  ;;  %5623 = vmatpush3.bf16.msra.mxu1 %v6222_v39  ;;  %v2347_v39 = vsel %vm2247_vm5, %v2335_v42, %v2346_v9  ;;  %v1536_v7 = vrot.slane %v7319_v52, 4  ;;  %v6235_v40 = vld [vmem:[#allocation7 + $0x148] sm:$0xff]   ;;  %v7357_v42 = vld [vmem:[#allocation2 + $0x50] sm:$0xff]  ;;  %v6287_v9 = vld [vmem:[#allocation2 + $0x38] sm:$0xff] }
 0x252   : > { %5624 = vmatprep.subr.bf16.mxu1 %v6225_v25  ;;  %v1542_v28 = vrot.slane %v7357_v42, 4 }
 0x254   : > { %5491 = vmatmul.mubr.bf16.gmra.mrb[80].mxu0 %v1266_v6  ;;  %v7362_v6 = vld [vmem:[#allocation7 + $0x230] sm:$0xff]  }
 0x255   : > { %5625 = vmatpush3.bf16.msra.mxu1 %v6225_v25  ;;  %5510 = vmatprep.mubr.bf16.mxu0 %v1525_v3  ;;  %v1534_v25 = vrot.slane %v7315_v47, 4  ;;  %v6286_v3 = vld [vmem:[#allocation2 + $0x30] sm:$0xff] }
 0x256   : > { %5626 = vmatprep.subr.bf16.mxu1 %v6227_v11 }
 0x257   : > { %v7330_v5 = vsel %vm1046_vm1, %v1532_v30, %v1534_v25  ;;  %v7334_v50 = vsel %vm1046_vm1, %v1534_v25, %v1536_v7  ;;  %v1492_v30 = vld [vmem:[#allocation2 + $0x60] sm:$0xf] }
 0x258   : > { %5603 = vmatmul.mubr.bf16.gmra.mrb[12].mxu1 %v2315_v14  ;;  %v7352_v14 = vsel %vm1046_vm1, %v1536_v7, %v1538_v53  ;;  %v6288_v7 = vld [vmem:[#allocation2 + $0x40] sm:$0xff] }
 0x259   : > { %5606 = vmatprep.mubr.bf16.mxu1 %v2323_v59  ;;  %5627 = vmatpush3.bf16.msra.mxu1 %v6227_v11  ;;  %v6236_v11 = vld [vmem:[#allocation7 + $0x150] sm:$0xff]   ;;  %v7355_v59 = vsel %vm1046_vm1, %v1538_v53, %v1540_v2  ;;  %v3327_v53 = vshrl.u32 %v7299_v1, 16 }
 0x25a   : > { %5628 = vmatprep.subr.bf16.mxu1 %v6230_v20 }
 0x25c   : > { %5511 = vmatmul.mubr.bf16.vlgmr.msra.gmra.mrb[60].mxu0 %v1527_v62  ;;  %v7378_v62 = vsel %vm1046_vm1, %v1540_v2, %v1542_v28  ;;  %v3330_v2 = vshll.u32 %v7299_v1, 16 }
 0x25d   : > { %5629 = vmatpush3.bf16.msra.mxu1 %v6230_v20  ;;  %5514 = vmatprep.mubr.bf16.mxu0 %v1529_v46  ;;  %v7359_v20 = vld [vmem:[#allocation2 + $0x58] sm:$0xff] }
 0x25e   : > { %5654 = vmatprep.subr.bf16.mxu1 %v6232_v29  ;;  %5775 = vmatpush3.bf16.msra.mxu0 %v7281_v21 }
 0x25f   : > { %5776 = vmatprep.subr.bf16.mxu0 %v7295_v26 }
 0x260   : > { %5607 = vmatmul.mubr.bf16.gmra.mrb[16].mxu1 %v2331_v32  ;;  %v6241_v32 = vld [vmem:[#allocation7 + $0x168] sm:$0xff]  }
 0x261   : > { %5610 = vmatprep.mubr.bf16.mxu1 %v2339_v12  ;;  %v3321_v12 = vshll.u32 %v7293_v23, 16 }
 0x262   : > { %5777 = vmatpush3.bf16.msra.mxu0 %v7295_v26 }
 0x263   : > { %5778 = vmatprep.subr.bf16.mxu0 %v7317_v63  ;;  %v4059_v25 = vrot.slane %v3321_v12, 5 }
 0x264   : > { %5515 = vmatmul.mubr.bf16.gmra.mrb[64].mxu0 %v1531_v43  ;;  %v4051_v43 = vrot.slane %v4049_v8, 5 }
 0x265   : > { %5518 = vmatprep.mubr.bf16.mxu0 %v7313_v54 }
 0x266   : > { %5779 = vmatpush3.bf16.msra.mxu0 %v7317_v63 }
 0x267   : > { %5780 = vmatprep.subr.bf16.mxu0 %v7321_v38 }
 0x268   : > { %5611 = vmatmul.mubr.bf16.gmra.mrb[20].mxu1 %v2347_v39  ;;  %v4048_v39 = vrot.slane %v4046_v45, 4  ;;  %v6289_v45 = vld [vmem:[#allocation2 + $0x48] sm:$0xff] }
 0x269   : > { %5630 = vmatprep.mubr.bf16.mxu1 %v6282_v60  ;;  %v4056_v60 = vrot.slane %v3318_v36, 4 }
 0x26a   : > { %5781 = vmatpush3.bf16.msra.mxu0 %v7321_v38 }
 0x26b   : > { %5782 = vmatprep.subr.bf16.mxu0 %v7338_v16 }
 0x26c   : > { %5519 = vmatmul.mubr.bf16.gmra.mrb[68].mxu0 %v7330_v5 }
 0x26d   : > { %5522 = vmatprep.mubr.bf16.mxu0 %v7334_v50 }
 0x26e   : > { %5783 = vmatpush3.bf16.msra.mxu0 %v7338_v16 }
 0x26f   : > { %5784 = vmatprep.subr.bf16.mxu0 %v7342_v44 }
 0x270   : > { %5631 = vmatmul.mubr.bf16.vlgmr.msra.gmra.mrb[0].mxu1 %v6283_v51  ;;  %v1546_v51 = vrot.slane %v1492_v30, 4  ;;  %v6290_v30 = vld [vmem:[#allocation2 + $0x50] sm:$0xff] }
 0x271   : > { %5655 = vmatpush3.bf16.msra.mxu1 %v6232_v29  ;;  %5634 = vmatprep.mubr.bf16.mxu1 %v6284_v31  ;;  %v7370_v29 = vrot.slane %v7359_v20, 4  ;;  %v4052_v31 = vor.u32 %v4051_v43, %v4048_v39  ;;  %v6248_v39 = vld [vmem:[#allocation7 + $0x180] sm:$0xff]  }
 0x272   : > { %5656 = vmatprep.subr.bf16.mxu1 %v6235_v40  ;;  %5785 = vmatpush3.bf16.msra.mxu0 %v7342_v44 }
 0x273   : > { %5786 = vmatprep.subr.bf16.mxu0 %v7362_v6  ;;  %v7382_v46 = vsel %vm1046_vm1, %v1542_v28, %v7370_v29  ;;  %v1547_v4 = vsel %vm1046_vm1, %v7370_v29, %v1546_v51  ;;  %v4068_v28 = vrot.slane %v3330_v2, 5  ;;  %v7977_v51 = vshrl.u32 %v7336_v24, 16 }
 0x274   : > { %5523 = vmatmul.mubr.bf16.gmra.mrb[72].mxu0 %v7352_v14 }
 0x275   : > { %5657 = vmatpush3.bf16.msra.mxu1 %v6235_v40  ;;  %5526 = vmatprep.mubr.bf16.mxu0 %v7355_v59  ;;  %v6243_v40 = vld [vmem:[#allocation7 + $0x170] sm:$0xff]  }
 0x276   : > { %5658 = vmatprep.subr.bf16.mxu1 %v6236_v11  ;;  %5787 = vmatpush3.bf16.msra.mxu0 %v7362_v6 }
 0x277   : > { %5788 = vmatprep.subr.bf16.mxu0 %v7364_v18 }
 0x278   : > { %5635 = vmatmul.mubr.bf16.gmra.mrb[4].mxu1 %v6285_v55  ;;  %v3336_v55 = vshrl.u32 %v7315_v47, 16 }
 0x279   : > { %5659 = vmatpush3.bf16.msra.mxu1 %v6236_v11  ;;  %5638 = vmatprep.mubr.bf16.mxu1 %v6286_v3  ;;  %v4060_v11 = vor.u32 %v4059_v25, %v4056_v60  ;;  %v3339_v3 = vshll.u32 %v7315_v47, 16  ;;  %v3345_v25 = vshrl.u32 %v7319_v52, 16  ;;  %v8015_v47 = vshll.u32 %v7336_v24, 16 }
 0x27a   : > { %5660 = vmatprep.subr.bf16.mxu1 %v6237_v48  ;;  %5789 = vmatpush3.bf16.msra.mxu0 %v7364_v18 }
 0x27b   : > { %v4061_v8 = vsel %vm1839_vm2, %v4052_v31, %v4060_v11  ;;  %v7978_v31 = vshll.u32 %v7336_v24, 16 }
 0x27c   : > { %5527 = vmatmul.mubr.bf16.gmra.mrb[76].mxu0 %v7378_v62 }
 0x27d   : > { %5661 = vmatpush3.bf16.msra.mxu1 %v6237_v48  ;;  %5530 = vmatprep.mubr.bf16.mxu0 %v7382_v46  ;;  %v6246_v48 = vld [vmem:[#allocation7 + $0x178] sm:$0xff]  }
 0x27e   : > { %5662 = vmatprep.subr.bf16.mxu1 %v6238_v34 }
 0x280   : > { %5639 = vmatmul.mubr.bf16.gmra.mrb[8].mxu1 %v6287_v9  ;;  %v4077_v9 = vrot.slane %v3339_v3, 5 }
 0x281   : > { %5642 = vmatprep.mubr.bf16.mxu1 %v6288_v7  ;;  %5663 = vmatpush3.bf16.msra.mxu1 %v6238_v34  ;;  %v4065_v34 = vrot.slane %v3327_v53, 4  ;;  %v3348_v7 = vshll.u32 %v7319_v52, 16 }
 0x282   : > { %5664 = vmatprep.subr.bf16.mxu1 %v6241_v32 }
 0x283   : > { %v4069_v43 = vor.u32 %v4068_v28, %v4065_v34  ;;  %v4092_v34 = vrot.slane %v7977_v51, 4  ;;  %v4095_v28 = vrot.slane %v7978_v31, 5  ;;  %v3350_v1 = vrot.slane %v3348_v7, 4 }
 0x284   : > { %5531 = vmatmul.mubr.bf16.gmra.mrb[80].mxu0 %v1547_v4  ;;  %v4086_v4 = vrot.slane %v3348_v7, 5 }
 0x285   : > { %5665 = vmatpush3.bf16.msra.mxu1 %v6241_v32  ;;  %v4074_v32 = vrot.slane %v3336_v55, 4  ;;  %5790 = vmatprep.mubr.bf16.mxu0 %v4061_v8  ;;  %v4096_v8 = vor.u32 %v4095_v28, %v4092_v34 }
 0x286   : > { %5666 = vmatprep.subr.bf16.mxu1 %v6243_v40 }
 0x287   : > { %v4078_v60 = vor.u32 %v4077_v9, %v4074_v32  ;;  %v7982_v32 = vshrl.u32 %v7340_v41, 16  ;;  %v7981_v9 = vshll.u32 %v7340_v41, 16 }
 0x288   : > { %5643 = vmatmul.mubr.bf16.gmra.mrb[12].mxu1 %v6289_v45  ;;  %v4070_v45 = vsel %vm1839_vm2, %v4060_v11, %v4069_v43 }
 0x289   : > { %5646 = vmatprep.mubr.bf16.mxu1 %v6290_v30  ;;  %5667 = vmatpush3.bf16.msra.mxu1 %v6243_v40  ;;  %v4083_v40 = vrot.slane %v3345_v25, 4  ;;  %v7980_v30 = vshll.u32 %v7357_v42, 16  ;;  %v4101_v31 = vrot.slane %v7982_v32, 4 }
 0x28a   : > { %5668 = vmatprep.subr.bf16.mxu1 %v6246_v48 }
 0x28b   : > { %v4087_v11 = vor.u32 %v4086_v4, %v4083_v40 }
 0x28c   : > { %5791 = vmatmul.mubr.bf16.vlgmr.msra.gmra.mrb[84].mxu0 %v4070_v45  ;;  %v7434_v45 = vld [vmem:[#allocation2 + $0x68] sm:$0xff] }
 0x28d   : > { %5669 = vmatpush3.bf16.msra.mxu1 %v6246_v48  ;;  %v4079_v48 = vsel %vm1839_vm2, %v4069_v43, %v4078_v60  ;;  %v7426_v43 = vld [vmem:[#allocation2 + $0x60] sm:$0xff]  ;;  %v4088_v51 = vsel %vm1839_vm2, %v4078_v60, %v4087_v11  ;;  %v4097_v40 = vsel %vm1839_vm2, %v4087_v11, %v4096_v8  ;;  %v7983_v34 = vrot.slane %v7434_v45, 4 }
 0x28e   : > { %5694 = vmatprep.subr.bf16.mxu1 %v6248_v39  ;;  %5794 = vmatprep.mubr.bf16.mxu0 %v4079_v48  ;;  %v4113_v48 = vrot.slane %v7980_v30, 5  ;;  %v7984_v60 = vrot.slane %v7426_v43, 4  ;;  %v7985_v30 = vshll.u32 %v7359_v20, 16  ;;  %v3393_v32 = vshll.u32 %v7426_v43, 16 }
 0x290   : > { %5647 = vmatmul.mubr.bf16.gmra.mrb[16].mxu1 %v7090_v49  ;;  %v7979_v49 = vshrl.u32 %v7357_v42, 16 }
 0x291   : > { %5650 = vmatprep.mubr.bf16.mxu1 %v7155_v27  ;;  %v4104_v27 = vrot.slane %v7981_v9, 5  ;;  %v6251_v9 = vld [vmem:[#allocation7 + $0x188] sm:$0xff]  }
 0x292   : > { %v4110_v4 = vrot.slane %v7979_v49, 4  ;;  %v3381_v49 = vshrl.u32 %v7359_v20, 16 }
 0x293   : > { %v4105_v28 = vor.u32 %v4104_v27, %v4101_v31  ;;  %v4122_v27 = vrot.slane %v7985_v30, 5  ;;  %v6253_v30 = vld [vmem:[#allocation7 + $0x198] sm:$0xff]  }
 0x294   : > { %5795 = vmatmul.mubr.bf16.gmra.mrb[88].mxu0 %v4088_v51  ;;  %v4114_v11 = vor.u32 %v4113_v48, %v4110_v4  ;;  %v4119_v31 = vrot.slane %v3381_v49, 4  ;;  %v4131_v48 = vrot.slane %v3393_v32, 5 }
 0x295   : > { %5798 = vmatprep.mubr.bf16.mxu0 %v4097_v40  ;;  %v4106_v51 = vsel %vm1839_vm2, %v4096_v8, %v4105_v28  ;;  %v6252_v8 = vld [vmem:[#allocation7 + $0x190] sm:$0xff]  }
 0x296   : > { %v4115_v40 = vsel %vm1839_vm2, %v4105_v28, %v4114_v11  ;;  %v3402_v28 = vshll.u32 %v7434_v45, 16 }
 0x298   : > { %5651 = vmatmul.mubr.bf16.gmra.mrb[20].mxu1 %v7165_v33  ;;  %v7449_v33 = vsel %vm1046_vm1, %v7984_v60, %v7983_v34  ;;  %v4123_v34 = vor.u32 %v4122_v27, %v4119_v31 }
 0x299   : > { %5670 = vmatprep.mubr.bf16.mxu1 %v7136_v37  ;;  %v7986_v37 = vshrl.u32 %v7426_v43, 16 }
 0x29b   : > { %v4128_v4 = vrot.slane %v7986_v37, 4  ;;  %v4124_v37 = vsel %vm1839_vm2, %v4114_v11, %v4123_v34  ;;  %v6255_v11 = vld [vmem:[#allocation7 + $0x1a8] sm:$0xff]  }
 0x29c   : > { %5799 = vmatmul.mubr.bf16.gmra.mrb[92].mxu0 %v4106_v51 }
 0x29d   : > { %5802 = vmatprep.mubr.bf16.mxu0 %v4115_v40  ;;  %v4132_v60 = vor.u32 %v4131_v48, %v4128_v4  ;;  %v3320_v48 = vrot.slane %v3318_v36, 3  ;;  %v3332_v36 = vrot.slane %v3330_v2, 4  ;;  %v6259_v2 = vld [vmem:[#allocation7 + $0x1c8] sm:$0xff]  }
 0x29f   : > { %v4133_v51 = vsel %vm1839_vm2, %v4123_v34, %v4132_v60  ;;  %v3279_v34 = vld [vmem:[#allocation2 + $0x18] sm:$0xf8] }
 0x2a0   : > { %5671 = vmatmul.mubr.bf16.vlgmr.msra.gmra.mrb[0].mxu1 %v7143_v10  ;;  %v3399_v10 = vshrl.u32 %v7434_v45, 16 }
 0x2a1   : > { %5695 = vmatpush3.bf16.msra.mxu1 %v6248_v39  ;;  %5674 = vmatprep.mubr.bf16.mxu1 %v7159_v22  ;;  %v4140_v22 = vrot.slane %v3402_v28, 5 }
 0x2a2   : > { %5696 = vmatprep.subr.bf16.mxu1 %v6251_v9  ;;  %v4137_v39 = vrot.slane %v3399_v10, 4 }
 0x2a4   : > { %5803 = vmatmul.mubr.bf16.gmra.mrb[96].mxu0 %v4124_v37  ;;  %v7477_v31 = vor.u32 %v4140_v22, %v4137_v39  ;;  %v3313_v37 = vshll.u32 %v3279_v34, 16 }
 0x2a5   : > { %5697 = vmatpush3.bf16.msra.mxu1 %v6251_v9  ;;  %v6254_v9 = vld [vmem:[#allocation7 + $0x1a0] sm:$0xff]   ;;  %5806 = vmatprep.mubr.bf16.mxu0 %v4133_v51  ;;  %v3329_v51 = vrot.slane %v3327_v53, 3  ;;  %v3347_v53 = vrot.slane %v3345_v25, 3  ;;  %v8016_v25 = vshrl.u32 %v7340_v41, 16 }
 0x2a6   : > { %5698 = vmatprep.subr.bf16.mxu1 %v6252_v8  ;;  %v4142_v27 = vsel %vm1839_vm2, %v4132_v60, %v7477_v31  ;;  %v3310_v60 = vshrl.u32 %v3279_v34, 16  ;;  %v3315_v4 = vrot.slane %v3313_v37, 4  ;;  %v6262_v37 = vld [vmem:[#allocation7 + $0x1d8] sm:$0xff]  }
 0x2a7   : > { %v3365_v7 = vrot.slane %v8016_v25, 3 }
 0x2a8   : > { %5675 = vmatmul.mubr.bf16.gmra.mrb[4].mxu1 %v7168_v35  ;;  %v6256_v35 = vld [vmem:[#allocation7 + $0x1b0] sm:$0xff]  }
 0x2a9   : > { %5699 = vmatpush3.bf16.msra.mxu1 %v6252_v8  ;;  %5678 = vmatprep.mubr.bf16.mxu1 %v7176_v57  ;;  %v6257_v57 = vld [vmem:[#allocation7 + $0x1b8] sm:$0xff]   ;;  %v3323_v8 = vrot.slane %v3321_v12, 4  ;;  %v3338_v12 = vrot.slane %v3336_v55, 3  ;;  %v8014_v55 = vshrl.u32 %v7336_v24, 16 }
 0x2aa   : > { %5700 = vmatprep.subr.bf16.mxu1 %v6253_v30 }
 0x2ab   : > { %v3324_v39 = vor.u32 %v3323_v8, %v3320_v48 }
 0x2ac   : > { %5807 = vmatmul.mubr.bf16.gmra.mrb[100].mxu0 %v4142_v27  ;;  %v3356_v27 = vrot.slane %v8014_v55, 3  ;;  %v3404_v55 = vrot.slane %v3402_v28, 4 }
 0x2ad   : > { %5701 = vmatpush3.bf16.msra.mxu1 %v6253_v30  ;;  %v2899_v30 = vld [vmem:[#allocation2 + $0x70] sm:$0x1] }
 0x2ae   : > { %5702 = vmatprep.subr.bf16.mxu1 %v6254_v9  ;;  %v3014_v40 = vshll.u32 %v2899_v30, 16  ;;  %v8017_v30 = vshll.u32 %v7340_v41, 16 }
 0x2b0   : > { %5679 = vmatmul.mubr.bf16.gmra.mrb[8].mxu1 %v7188_v13  ;;  %v6258_v13 = vld [vmem:[#allocation7 + $0x1c0] sm:$0xff]  }
 0x2b1   : > { %5682 = vmatprep.mubr.bf16.mxu1 %v7192_v17  ;;  %5703 = vmatpush3.bf16.msra.mxu1 %v6254_v9  ;;  %v3312_v17 = vrot.slane %v3310_v60, 3  ;;  %v3368_v60 = vrot.slane %v8017_v30, 4 }
 0x2b2   : > { %5704 = vmatprep.subr.bf16.mxu1 %v6255_v11 }
 0x2b3   : > { %v3369_v48 = vor.u32 %v3368_v60, %v3365_v7 }
 0x2b5   : > { %5705 = vmatpush3.bf16.msra.mxu1 %v6255_v11 }
 0x2b6   : > { %5706 = vmatprep.subr.bf16.mxu1 %v6256_v35 }
 0x2b8   : > { %5683 = vmatmul.mubr.bf16.gmra.mrb[12].mxu1 %v7202_v0  ;;  %v3016_v0 = vrot.slane %v3014_v40, 1 }
 0x2b9   : > { %5686 = vmatprep.mubr.bf16.mxu1 %v7213_v58  ;;  %5707 = vmatpush3.bf16.msra.mxu1 %v6256_v35  ;;  %v3316_v58 = vor.u32 %v3315_v4, %v3312_v17  ;;  %v3351_v35 = vor.u32 %v3350_v1, %v3347_v53  ;;  %v8019_v17 = vshll.u32 %v7357_v42, 16  ;;  %v6276_v1 = vld [vmem:[%s8022_s15 + $0x10] sm:$0xff]  }
 0x2ba   : > { %5708 = vmatprep.subr.bf16.mxu1 %v6257_v57  ;;  %v3017_v22 = vsel %vm2917_vm4, %v7246_v19, %v3016_v0  ;;  %v6264_v0 = vld [vmem:[#allocation7 + $0x1e0] sm:$0xff]  }
 0x2bb   : > { %v3325_v23 = vsel %vm1150_vm3, %v3316_v58, %v3324_v39  ;;  %v3377_v4 = vrot.slane %v8019_v17, 4  ;;  %v3383_v58 = vrot.slane %v3381_v49, 3  ;;  %v6274_v49 = vld [vmem:[%s8022_s15] sm:$0xff]  }
 0x2bc   : > { %5814 = vmatprep.subr.bf16.mxu0 %v6274_v49 }
 0x2bd   : > { %5709 = vmatpush3.bf16.msra.mxu1 %v6257_v57  ;;  %v6260_v57 = vld [vmem:[#allocation7 + $0x1d0] sm:$0xff]   ;;  %5815 = vmatpush3.bf16.msra.mxu0 %v6274_v49 }
 0x2be   : > { %5734 = vmatprep.subr.bf16.mxu1 %v6258_v13 }
 0x2c0   : > { %5687 = vmatmul.mubr.bf16.gmra.mrb[16].mxu1 %v7221_v56  ;;  %v3341_v56 = vrot.slane %v3339_v3, 4  ;;  %v3359_v3 = vrot.slane %v8015_v47, 4 }
 0x2c1   : > { %5690 = vmatprep.mubr.bf16.mxu1 %v7242_v15  ;;  %v3333_v15 = vor.u32 %v3332_v36, %v3329_v51  ;;  %v8021_v36 = vshrl.u32 %v7426_v43, 16 }
 0x2c2   : > { %v3342_v9 = vor.u32 %v3341_v56, %v3338_v12  ;;  %v3360_v34 = vor.u32 %v3359_v3, %v3356_v27  ;;  %v3395_v12 = vrot.slane %v3393_v32, 4  ;;  %v7532_v56 = vld [vmem:[#allocation2 + $0x70] sm:$0xff] }
 0x2c3   : > { %v3334_v19 = vsel %vm1150_vm3, %v3324_v39, %v3333_v15  ;;  %v8020_v39 = vshll.u32 %v7359_v20, 16  ;;  %v6275_v20 = vld [vmem:[%s8022_s15 + $0x8] sm:$0xff]   ;;  %v3408_v53 = vshrl.u32 %v7532_v56, 16  ;;  %v3411_v32 = vshll.u32 %v7532_v56, 16 }
 0x2c4   : > { %v3343_v11 = vsel %vm1150_vm3, %v3333_v15, %v3342_v9  ;;  %v3352_v52 = vsel %vm1150_vm3, %v3342_v9, %v3351_v35  ;;  %v3361_v24 = vsel %vm1150_vm3, %v3351_v35, %v3360_v34  ;;  %v3370_v41 = vsel %vm1150_vm3, %v3360_v34, %v3369_v48  ;;  %5816 = vmatprep.subr.bf16.mxu0 %v6275_v20  ;;  %v3291_v35 = vld [vmem:[#allocation2 + $0x78] sm:$0xf] }
 0x2c5   : > { %v3410_v47 = vrot.slane %v3408_v53, 3  ;;  %v3413_v3 = vrot.slane %v3411_v32, 4  ;;  %5817 = vmatpush3.bf16.msra.mxu0 %v6275_v20  ;;  %v3417_v34 = vshrl.u32 %v3291_v35, 16  ;;  %v6278_v20 = vld [vmem:[%s8022_s15 + $0x20] sm:$0xff]  }
 0x2c6   : > { %5818 = vmatprep.subr.bf16.mxu0 %v6276_v1 }
 0x2c7   : > { %v3414_v25 = vor.u32 %v3413_v3, %v3410_v47  ;;  %v3419_v30 = vrot.slane %v3417_v34, 3 }
 0x2c8   : > { %5691 = vmatmul.mubr.bf16.gmra.mrb[20].mxu1 %v3017_v22  ;;  %v3386_v22 = vrot.slane %v8020_v39, 4 }
 0x2c9   : > { %5710 = vmatprep.mubr.bf16.mxu1 %v3325_v23  ;;  %v3392_v23 = vrot.slane %v8021_v36, 3  ;;  %5819 = vmatpush3.bf16.msra.mxu0 %v6276_v1  ;;  %v6280_v1 = vld [vmem:[%s8022_s15 + $0x30] sm:$0xff]  }
 0x2ca   : > { %v3387_v15 = vor.u32 %v3386_v22, %v3383_v58 }
 0x2cb   : > { %v3396_v9 = vor.u32 %v3395_v12, %v3392_v23 }
 0x2cd   : > { %v3397_v27 = vsel %vm1150_vm3, %v3387_v15, %v3396_v9 }
 0x2d0   : > { %5711 = vmatmul.mubr.bf16.vlgmr.msra.gmra.mrb[0].mxu1 %v3334_v19  ;;  %v6269_v19 = vld [vmem:[#allocation7 + $0x1f0] sm:$0xff]  }
 0x2d1   : > { %5735 = vmatpush3.bf16.msra.mxu1 %v6258_v13  ;;  %5714 = vmatprep.mubr.bf16.mxu1 %v3343_v11  ;;  %v8018_v13 = vshrl.u32 %v7357_v42, 16  ;;  %v6266_v42 = vld [vmem:[#allocation7 + $0x1e8] sm:$0xff]   ;;  %v3401_v11 = vrot.slane %v3399_v10, 3  ;;  %v6277_v10 = vld [vmem:[%s8022_s15 + $0x18] sm:$0xff]  }
 0x2d2   : > { %5736 = vmatprep.subr.bf16.mxu1 %v6259_v2  ;;  %5820 = vmatprep.subr.bf16.mxu0 %v6277_v10 }
 0x2d3   : > { %v3374_v40 = vrot.slane %v8018_v13, 3  ;;  %v3405_v28 = vor.u32 %v3404_v55, %v3401_v11  ;;  %5821 = vmatpush3.bf16.msra.mxu0 %v6277_v10  ;;  %v6281_v55 = vld [vmem:[%s8022_s15 + $0x38] sm:$0xff]  }
 0x2d4   : > { %5822 = vmatprep.subr.bf16.mxu0 %v6278_v20 }
 0x2d5   : > { %5737 = vmatpush3.bf16.msra.mxu1 %v6259_v2  ;;  %v3378_v8 = vor.u32 %v3377_v4, %v3374_v40  ;;  %v3406_v7 = vsel %vm1150_vm3, %v3396_v9, %v3405_v28 }
 0x2d6   : > { %5738 = vmatprep.subr.bf16.mxu1 %v6260_v57 }
 0x2d7   : > { %v3379_v51 = vsel %vm1150_vm3, %v3369_v48, %v3378_v8  ;;  %v3388_v2 = vsel %vm1150_vm3, %v3378_v8, %v3387_v15  ;;  %5823 = vmatpush3.bf16.msra.mxu0 %v6278_v20 }
 0x2d8   : > { %5715 = vmatmul.mubr.bf16.gmra.mrb[4].mxu1 %v3352_v52  ;;  %v3420_v52 = vshll.u32 %v3291_v35, 16 }
 0x2d9   : > { %5739 = vmatpush3.bf16.msra.mxu1 %v6260_v57  ;;  %5718 = vmatprep.mubr.bf16.mxu1 %v3361_v24  ;;  %v6271_v57 = vld [vmem:[#allocation7 + $0x1f8] sm:$0xff]   ;;  %v3415_v24 = vsel %vm1150_vm3, %v3405_v28, %v3414_v25 }
 0x2da   : > { %5740 = vmatprep.subr.bf16.mxu1 %v6262_v37  ;;  %v3422_v60 = vrot.slane %v3420_v52, 4 }
 0x2dc   : > { %v3423_v13 = vor.u32 %v3422_v60, %v3419_v30 }
 0x2dd   : > { %5741 = vmatpush3.bf16.msra.mxu1 %v6262_v37  ;;  %v3686_v37 = vld [vmem:[#allocation2 + $0x18] sm:$0xf0] }
 0x2de   : > { %5742 = vmatprep.subr.bf16.mxu1 %v6264_v0  ;;  %v3729_v40 = vrot.slane %v3686_v37, 4  ;;  %v3424_v17 = vsel %vm1150_vm3, %v3414_v25, %v3423_v13 }
 0x2e0   : > { %5719 = vmatmul.mubr.bf16.gmra.mrb[8].mxu1 %v3370_v41  ;;  %v3731_v4 = vsel %vm1046_vm1, %v3729_v40, %v7302_v61  ;;  %v3750_v61 = vrot.slane %v7532_v56, 4 }
 0x2e1   : > { %5722 = vmatprep.mubr.bf16.mxu1 %v3379_v51  ;;  %5743 = vmatpush3.bf16.msra.mxu1 %v6264_v0 }
 0x2e2   : > { %5744 = vmatprep.subr.bf16.mxu1 %v6266_v42 }
 0x2e5   : > { %5745 = vmatpush3.bf16.msra.mxu1 %v6266_v42 }
 0x2e6   : > { %5746 = vmatprep.subr.bf16.mxu1 %v6269_v19 }
 0x2e8   : > { %5723 = vmatmul.mubr.bf16.gmra.mrb[12].mxu1 %v3388_v2 }
 0x2e9   : > { %5726 = vmatprep.mubr.bf16.mxu1 %v3397_v27  ;;  %5747 = vmatpush3.bf16.msra.mxu1 %v6269_v19  ;;  %v6279_v19 = vld [vmem:[%s8022_s15 + $0x28] sm:$0xff]  }
 0x2ea   : > { %5748 = vmatprep.subr.bf16.mxu1 %v6271_v57  ;;  %5824 = vmatprep.subr.bf16.mxu0 %v6279_v19 }
 0x2eb   : > { %5825 = vmatpush3.bf16.msra.mxu0 %v6279_v19 }
 0x2ec   : > { %5826 = vmatprep.subr.bf16.mxu0 %v6280_v1 }
 0x2ed   : > { %5749 = vmatpush3.bf16.msra.mxu1 %v6271_v57 }
 0x2ee   : > { %5854 = vmatprep.subr.bf16.mxu1 %v7281_v21 }
 0x2ef   : > { %5827 = vmatpush3.bf16.msra.mxu0 %v6280_v1 }
 0x2f0   : > { %5727 = vmatmul.mubr.bf16.gmra.mrb[16].mxu1 %v3406_v7  ;;  %5828 = vmatprep.subr.bf16.mxu0 %v6281_v55 }
 0x2f1   : > { %5730 = vmatprep.mubr.bf16.mxu1 %v3415_v24 }
 0x2f3   : > { %5829 = vmatpush3.bf16.msra.mxu0 %v6281_v55 }
 0x2f8   : > { %5731 = vmatmul.mubr.bf16.gmra.mrb[20].mxu1 %v3424_v17 }
 0x2f9   : > { %5750 = vmatprep.mubr.bf16.mxu1 %v3731_v4 }
 0x300   : > { %5751 = vmatmul.mubr.bf16.vlgmr.msra.gmra.mrb[0].mxu1 %v7313_v54  ;;  %v8024_v54 = vrot.slane %v7434_v45, 4 }
 0x301   : > { %5862 = vmatpush3.bf16.msra.mxu1 %v7281_v21  ;;  %5754 = vmatprep.mubr.bf16.mxu1 %v7330_v5  ;;  %v8023_v21 = vrot.slane %v7426_v43, 4  ;;  %v4146_v5 = vrot.slane %v3408_v53, 4 }
 0x302   : > { %5855 = vmatprep.subr.bf16.mxu1 %v7295_v26 }
 0x305   : > { %5863 = vmatpush3.bf16.msra.mxu1 %v7295_v26  ;;  %v3747_v26 = vsel %vm1046_vm1, %v7370_v29, %v8023_v21 }
 0x306   : > { %5856 = vmatprep.subr.bf16.mxu1 %v7317_v63 }
 0x308   : > { %5755 = vmatmul.mubr.bf16.gmra.mrb[4].mxu1 %v7334_v50  ;;  %v4149_v50 = vrot.slane %v3411_v32, 5 }
 0x309   : > { %5864 = vmatpush3.bf16.msra.mxu1 %v7317_v63  ;;  %5758 = vmatprep.mubr.bf16.mxu1 %v7352_v14  ;;  %v3751_v63 = vsel %vm1046_vm1, %v8024_v54, %v3750_v61  ;;  %v4027_v14 = vld [vmem:[#allocation2 + $0x78] sm:$0x1f] }
 0x30a   : > { %5857 = vmatprep.subr.bf16.mxu1 %v7321_v38 }
 0x30d   : > { %5865 = vmatpush3.bf16.msra.mxu1 %v7321_v38  ;;  %v3698_v38 = vld [vmem:[#allocation2 + $0x78] sm:$0xf] }
 0x30e   : > { %5858 = vmatprep.subr.bf16.mxu1 %v7338_v16 }
 0x310   : > { %5759 = vmatmul.mubr.bf16.gmra.mrb[8].mxu1 %v7355_v59 }
 0x311   : > { %5762 = vmatprep.mubr.bf16.mxu1 %v7378_v62  ;;  %5866 = vmatpush3.bf16.msra.mxu1 %v7338_v16  ;;  %v3752_v16 = vrot.slane %v3698_v38, 4 }
 0x312   : > { %5859 = vmatprep.subr.bf16.mxu1 %v7342_v44 }
 0x313   : > { %v3753_v59 = vsel %vm1046_vm1, %v3750_v61, %v3752_v16  ;;  %v7684_v16 = vld [vmem:[%s8025_s28] ss:$0 sm:$0xff]  ;;  %s4912_s28 = sadd.s32 %s6067_s20, %s6066_s10 }
 0x314   : > { %s5152_s23 = sshll.u32 %s4912_s28, 7 }
 0x315   : > { %5867 = vmatpush3.bf16.msra.mxu1 %v7342_v44  ;;  %v4150_v44 = vor.u32 %v4149_v50, %v4146_v5 }
 0x316   : > { %5860 = vmatprep.subr.bf16.mxu1 %v7362_v6 }
 0x317   : > { %v4151_v29 = vsel %vm1839_vm2, %v7477_v31, %v4150_v44 }
 0x318   : > { %5763 = vmatmul.mubr.bf16.gmra.mrb[12].mxu1 %v7382_v46 }
 0x319   : > { %5766 = vmatprep.mubr.bf16.mxu1 %v3747_v26  ;;  %5868 = vmatpush3.bf16.msra.mxu1 %v7362_v6  ;;  %v4153_v6 = vshrl.u32 %v4027_v14, 16 }
 0x31a   : > { %5861 = vmatprep.subr.bf16.mxu1 %v7364_v18 }
 0x31b   : > { %v4155_v62 = vrot.slane %v4153_v6, 4  ;;  %v7689_v6 = vld [vmem:[%s8026_s24] ss:$0 sm:$0xff] }
 0x31d   : > { %5869 = vmatpush3.bf16.msra.mxu1 %v7364_v18  ;;  %v4156_v18 = vshll.u32 %v4027_v14, 16 }
 0x31f   : > { %v4158_v46 = vrot.slane %v4156_v18, 5 }
 0x320   : > { %5767 = vmatmul.mubr.bf16.gmra.mrb[16].mxu1 %v7449_v33 }
 0x321   : > { %5770 = vmatprep.mubr.bf16.mxu1 %v3751_v63  ;;  %v4159_v43 = vor.u32 %v4158_v46, %v4155_v62 }
 0x323   : > { %v4160_v45 = vsel %vm1839_vm2, %v4150_v44, %v4159_v43 }
 0x328   : > { %5771 = vmatmul.mubr.bf16.gmra.mrb[20].mxu1 %v3753_v59 }
 0x329   : > { %5810 = vmatprep.mubr.bf16.mxu1 %v4151_v29 }
 0x32f   : > { %v5512_v33 = vpop.f32.mrb[60].mxu0 }
 0x330   : > { %v1642_v48 = vpop.f32.mrb[61].mxu0 }
 0x331   : > { %v5513_v8 = vpop.f32.mrb[62].mxu0 }
 0x332   : > { %v7603_v0 = vpop.f32.mrb[63].mxu0 }
 0x334   : > { %5811 = vmatmul.mubr.bf16.vlgmr.msra.gmra.mrb[20].mxu1 %v4160_v45 }
 0x337   : > { %v7605_v41 = vpop.f32.mrb[64].mxu0 }
 0x338   : > { %v7607_v58 = vpop.f32.mrb[65].mxu0 }
 0x339   : > { %v7609_v39 = vpop.f32.mrb[66].mxu0 }
 0x33a   : > { %v7611_v31 = vpop.f32.mrb[67].mxu0 }
 0x33f   : > { %v7613_v22 = vpop.f32.mrb[68].mxu0 }
 0x340   : > { %v7615_v51 = vpop.f32.mrb[69].mxu0 }
 0x341   : > { %v7617_v42 = vpop.f32.mrb[70].mxu0 }
 0x342   : > { %v7619_v36 = vpop.f32.mrb[71].mxu0 }
 0x347   : > { %v7621_v23 = vpop.f32.mrb[72].mxu0 }
 0x348   : > { %v7623_v12 = vpop.f32.mrb[73].mxu0 }
 0x349   : > { %v7625_v56 = vpop.f32.mrb[74].mxu0 }
 0x34a   : > { %v7627_v49 = vpop.f32.mrb[75].mxu0 }
 0x34f   : > { %v7632_v15 = vpop.f32.mrb[76].mxu0 }
 0x350   : > { %v7634_v9 = vpop.f32.mrb[77].mxu0 }
 0x351   : > { %v7639_v53 = vpop.f32.mrb[78].mxu0 }
 0x352   : > { %v7641_v32 = vpop.f32.mrb[79].mxu0 }
 0x357   : > { %v7646_v2 = vpop.f32.mrb[80].mxu0 }
 0x358   : > { %v7648_v11 = vpop.f32.mrb[81].mxu0 }
 0x359   : > { %v7653_v27 = vpop.f32.mrb[82].mxu0 }
 0x35a   : > { %v7655_v47 = vpop.f32.mrb[83].mxu0 }
 0x35f   : > { %v5792_v3 = vpop.f32.mrb[84].mxu0 }
 0x360   : > { %v4255_v35 = vpop.f32.mrb[85].mxu0 }
 0x361   : > { %v5793_v57 = vpop.f32.mrb[86].mxu0 }
 0x362   : > { %v4258_v10 = vpop.f32.mrb[87].mxu0 }
 0x367   : > { %v5796_v28 = vpop.f32.mrb[88].mxu0 }
 0x368   : > { %v4271_v34 = vpop.f32.mrb[89].mxu0 }
 0x369   : > { %v5797_v52 = vpop.f32.mrb[90].mxu0 }
 0x36a   : > { %v4274_v25 = vpop.f32.mrb[91].mxu0 }
 0x36f   : > { %v7657_v7 = vpop.f32.mrb[92].mxu0 }
 0x370   : > { %v7659_v30 = vpop.f32.mrb[93].mxu0 }
 0x371   : > { %v7661_v60 = vpop.f32.mrb[94].mxu0 }
 0x372   : > { %v7663_v24 = vpop.f32.mrb[95].mxu0 }
 0x377   : > { %v7665_v37 = vpop.f32.mrb[96].mxu0 }
 0x378   : > { %v7667_v13 = vpop.f32.mrb[97].mxu0 }
 0x379   : > { %v7669_v40 = vpop.f32.mrb[98].mxu0 }
 0x37a   : > { %v7671_v17 = vpop.f32.mrb[99].mxu0 }
 0x37f   : > { %v7673_v4 = vpop.f32.mrb[100].mxu0 }
 0x380   : > { %v7675_v21 = vpop.f32.mrb[101].mxu0 }
 0x381   : > { %v7677_v26 = vpop.f32.mrb[102].mxu0 }
 0x382   : > { %v7679_v61 = vpop.f32.mrb[103].mxu0 }
 0x3d3   : > { %v5752_v54 = vpop.f32.mrb[0].mxu1 }
 0x3d4   : > { %v5870_v63 = vadd.f32 %v5752_v54, %v5512_v33  ;;  %v3848_v38 = vpop.f32.mrb[1].mxu1 }
 0x3d5   : > { %v5872_v5 = vadd.f32 %v3848_v38, %v1642_v48  ;;  %v5753_v50 = vpop.f32.mrb[2].mxu1 }
 0x3d6   : > { %v5874_v44 = vadd.f32 %v5753_v50, %v5513_v8  ;;  %v5871_v14 = vadd.f32 %v5870_v63, %v5792_v3  ;;  %v3851_v59 = vpop.f32.mrb[3].mxu1 }
 0x3d7   : > { %v5876_v18 = vadd.f32 %v3851_v59, %v7603_v0  ;;  %v5873_v29 = vadd.f32 %v5872_v5, %v4255_v35 }
 0x3d8   : > { %v4455_v62 = vmul.f32 %v5871_v14, %v7684_v16  ;;  %v5875_v46 = vadd.f32 %v5874_v44, %v5793_v57 }
 0x3d9   : > { %v4453_v43 = vmul.f32 %v5873_v29, %v7684_v16  ;;  %v5877_v45 = vadd.f32 %v5876_v18, %v4258_v10 }
 0x3da   : > { %v4486_v33 = vadd.f32 %v7689_v6, %v4455_v62  ;;  %v4456_v48 = vmul.f32 %v5875_v46, %v7684_v16 }
 0x3db   : > { %v4484_v8 = vadd.f32 %v7689_v6, %v4453_v43  ;;  %v4454_v20 = vmul.f32 %v5877_v45, %v7684_v16  ;;  %v5756_v19 = vpop.f32.mrb[4].mxu1 }
 0x3dc   : > { %v4487_v1 = vadd.f32 %v7689_v6, %v4456_v48  ;;  %v5878_v0 = vadd.f32 %v5756_v19, %v7605_v41  ;;  %v3864_v55 = vpop.f32.mrb[5].mxu1  ;;  %v4510_v10 = vmax.f32 %v4486_v33, 0.0 }
 0x3dd   : > { %v4485_v3 = vadd.f32 %v7689_v6, %v4454_v20  ;;  %v5880_v35 = vadd.f32 %v3864_v55, %v7607_v58  ;;  %v5757_v57 = vpop.f32.mrb[6].mxu1  ;;  %v4508_v50 = vmax.f32 %v4484_v8, 0.0 }
 0x3de   : > { %v4511_v54 = vmax.f32 %v4487_v1, 0.0  ;;  %v5882_v63 = vadd.f32 %v5757_v57, %v7609_v39  ;;  %v5879_v38 = vadd.f32 %v5878_v0, %v5796_v28  ;;  %v3867_v5 = vpop.f32.mrb[7].mxu1 }
 0x3df   : > { %v4509_v44 = vmax.f32 %v4485_v3, 0.0  ;;  %v5884_v14 = vadd.f32 %v3867_v5, %v7611_v31  ;;  %v5881_v59 = vadd.f32 %v5880_v35, %v4271_v34 }
 0x3e0   : > { %v4533_v18 = vpack.c.bf16 %v4511_v54, %v4510_v10  ;;  %v4459_v41 = vmul.f32 %v5879_v38, %v7684_v16  ;;  %v5883_v29 = vadd.f32 %v5882_v63, %v5797_v52 }
 0x3e1   : > { %v4457_v62 = vmul.f32 %v5881_v59, %v7684_v16  ;;  %v5885_v46 = vadd.f32 %v5884_v14, %v4274_v25  ;;  %v4532_v58 = vpack.c.bf16 %v4509_v44, %v4508_v50 }
 0x3e2   : > { %v4490_v43 = vadd.f32 %v7689_v6, %v4459_v41  ;;  %v4460_v45 = vmul.f32 %v5883_v29, %v7684_v16 }
 0x3e3   : > { %v4488_v39 = vadd.f32 %v7689_v6, %v4457_v62  ;;  %v4458_v28 = vmul.f32 %v5885_v46, %v7684_v16  ;;  %v5760_v33 = vpop.f32.mrb[8].mxu1  ;;  %5830 = vmatprep.mubr.bf16.mxu0 %v4532_v58 }
 0x3e4   : > { %v4491_v31 = vadd.f32 %v7689_v6, %v4460_v45  ;;  %v5886_v34 = vadd.f32 %v5760_v33, %v7613_v22  ;;  %v3880_v48 = vpop.f32.mrb[9].mxu1  ;;  %5831 = vmatmul.mubr.bf16.vlgmr.msra.gmra.mrb[104].mxu0 %v4533_v18  ;;  %v4514_v20 = vmax.f32 %v4490_v43, 0.0 }
 0x3e5   : > { %v4489_v52 = vadd.f32 %v7689_v6, %v4458_v28  ;;  %v5888_v25 = vadd.f32 %v3880_v48, %v7615_v51  ;;  %v5761_v8 = vpop.f32.mrb[10].mxu1  ;;  %v4512_v3 = vmax.f32 %v4488_v39, 0.0 }
 0x3e6   : > { %v4515_v19 = vmax.f32 %v4491_v31, 0.0  ;;  %v5890_v1 = vadd.f32 %v5761_v8, %v7617_v42  ;;  %v5887_v0 = vadd.f32 %v5886_v34, %v7657_v7  ;;  %v3883_v55 = vpop.f32.mrb[11].mxu1 }
 0x3e7   : > { %v4513_v35 = vmax.f32 %v4489_v52, 0.0  ;;  %v5892_v57 = vadd.f32 %v3883_v55, %v7619_v36  ;;  %v5889_v22 = vadd.f32 %v5888_v25, %v7659_v30 }
 0x3e8   : > { %v4463_v10 = vmul.f32 %v5887_v0, %v7684_v16  ;;  %v5891_v54 = vadd.f32 %v5890_v1, %v7661_v60  ;;  %v4535_v63 = vpack.c.bf16 %v4515_v19, %v4514_v20 }
 0x3e9   : > { %v4461_v51 = vmul.f32 %v5889_v22, %v7684_v16  ;;  %v5893_v38 = vadd.f32 %v5892_v57, %v7663_v24  ;;  %v4534_v5 = vpack.c.bf16 %v4513_v35, %v4512_v3 }
 0x3ea   : > { %v4494_v42 = vadd.f32 %v7689_v6, %v4463_v10  ;;  %v4464_v7 = vmul.f32 %v5891_v54, %v7684_v16 }
 0x3eb   : > { %v4492_v50 = vadd.f32 %v7689_v6, %v4461_v51  ;;  %v4462_v36 = vmul.f32 %v5893_v38, %v7684_v16  ;;  %v5764_v44 = vpop.f32.mrb[12].mxu1  ;;  %5834 = vmatprep.mubr.bf16.mxu0 %v4534_v5 }
 0x3ec   : > { %v4495_v30 = vadd.f32 %v7689_v6, %v4464_v7  ;;  %v5894_v60 = vadd.f32 %v5764_v44, %v7621_v23  ;;  %v3896_v14 = vpop.f32.mrb[13].mxu1  ;;  %5835 = vmatmul.mubr.bf16.gmra.mrb[108].mxu0 %v4535_v63  ;;  %v4518_v41 = vmax.f32 %v4494_v42, 0.0 }
 0x3ed   : > { %v4493_v59 = vadd.f32 %v7689_v6, %v4462_v36  ;;  %v5896_v24 = vadd.f32 %v3896_v14, %v7623_v12  ;;  %v5765_v18 = vpop.f32.mrb[14].mxu1  ;;  %v4516_v43 = vmax.f32 %v4492_v50, 0.0 }
 0x3ee   : > { %v4519_v29 = vmax.f32 %v4495_v30, 0.0  ;;  %v5898_v62 = vadd.f32 %v5765_v18, %v7625_v56  ;;  %v5895_v46 = vadd.f32 %v5894_v60, %v7665_v37  ;;  %v3899_v58 = vpop.f32.mrb[15].mxu1 }
 0x3ef   : > { %v4517_v45 = vmax.f32 %v4493_v59, 0.0  ;;  %v5900_v39 = vadd.f32 %v3899_v58, %v7627_v49  ;;  %v5897_v23 = vadd.f32 %v5896_v24, %v7667_v13 }
 0x3f0   : > { %v4467_v28 = vmul.f32 %v5895_v46, %v7684_v16  ;;  %v5899_v33 = vadd.f32 %v5898_v62, %v7669_v40  ;;  %v4537_v31 = vpack.c.bf16 %v4519_v29, %v4518_v41 }
 0x3f1   : > { %v4465_v12 = vmul.f32 %v5897_v23, %v7684_v16  ;;  %v5901_v34 = vadd.f32 %v5900_v39, %v7671_v17  ;;  %v4536_v48 = vpack.c.bf16 %v4517_v45, %v4516_v43 }
 0x3f2   : > { %v4498_v56 = vadd.f32 %v7689_v6, %v4467_v28  ;;  %v4468_v37 = vmul.f32 %v5899_v33, %v7684_v16 }
 0x3f3   : > { %v4496_v52 = vadd.f32 %v7689_v6, %v4465_v12  ;;  %v4466_v49 = vmul.f32 %v5901_v34, %v7684_v16  ;;  %v5768_v25 = vpop.f32.mrb[16].mxu1  ;;  %5838 = vmatprep.mubr.bf16.mxu0 %v4536_v48  ;;  %v7775_v34 = vld [vmem:[%s8027_s8] ss:$0 sm:$0xff]  ;;  %s7881_s8 = scalar_lea.hbm %s8031_s7, %s5152_s23 }
 0x3f4   : > { %v4499_v13 = vadd.f32 %v7689_v6, %v4468_v37  ;;  %v5902_v40 = vadd.f32 %v5768_v25, %v7632_v15  ;;  %v3912_v8 = vpop.f32.mrb[17].mxu1  ;;  %5839 = vmatmul.mubr.bf16.gmra.mrb[112].mxu0 %v4537_v31  ;;  %v4522_v1 = vmax.f32 %v4498_v56, 0.0  ;;  %v5128_v37 = vld [vmem:[%s6803_s13 + $0x28] sm:$0xff] }
 0x3f5   : > { %v4497_v20 = vadd.f32 %v7689_v6, %v4466_v49  ;;  %v5904_v17 = vadd.f32 %v3912_v8, %v7634_v9  ;;  %v5769_v19 = vpop.f32.mrb[18].mxu1  ;;  %v4520_v57 = vmax.f32 %v4496_v52, 0.0 }
 0x3f6   : > { %v4523_v0 = vmax.f32 %v4499_v13, 0.0  ;;  %v5906_v55 = vadd.f32 %v5769_v19, %v7639_v53  ;;  %v5903_v3 = vadd.f32 %v5902_v40, %v7673_v4  ;;  %v3915_v35 = vpop.f32.mrb[19].mxu1  ;;  %v5126_v13 = vld [vmem:[%s6803_s13 + $0x18] sm:$0xff] }
 0x3f7   : > { %v4521_v22 = vmax.f32 %v4497_v20, 0.0  ;;  %v5908_v10 = vadd.f32 %v3915_v35, %v7641_v32  ;;  %v5905_v15 = vadd.f32 %v5904_v17, %v7675_v21  ;;  %v5129_v17 = vld [vmem:[%s6803_s13 + $0x30] sm:$0xff] }
 0x3f8   : > { %v4471_v54 = vmul.f32 %v5903_v3, %v7684_v16  ;;  %v5907_v63 = vadd.f32 %v5906_v55, %v7677_v26  ;;  %v4539_v51 = vpack.c.bf16 %v4523_v0, %v4522_v1  ;;  %v5127_v55 = vld [vmem:[%s6803_s13 + $0x20] sm:$0xff] }
 0x3f9   : > { %v4469_v9 = vmul.f32 %v5905_v15, %v7684_v16  ;;  %v5909_v38 = vadd.f32 %v5908_v10, %v7679_v61  ;;  %v4538_v5 = vpack.c.bf16 %v4521_v22, %v4520_v57 }
 0x3fa   : > { %v4502_v53 = vadd.f32 %v7689_v6, %v4471_v54  ;;  %v4472_v4 = vmul.f32 %v5907_v63, %v7684_v16 }
 0x3fb   : > { %v4500_v42 = vadd.f32 %v7689_v6, %v4469_v9  ;;  %v4470_v32 = vmul.f32 %v5909_v38, %v7684_v16  ;;  %5842 = vmatprep.mubr.bf16.mxu0 %v4538_v5  ;;  %v5132_v5 = vld [vmem:[%s6803_s13 + $0x48] sm:$0xff] }
 0x3fc   : > { %v4503_v21 = vadd.f32 %v7689_v6, %v4472_v4  ;;  %5843 = vmatmul.mubr.bf16.gmra.mrb[116].mxu0 %v4539_v51  ;;  %v4526_v7 = vmax.f32 %v4502_v53, 0.0 }
 0x3fd   : > { %v4501_v26 = vadd.f32 %v7689_v6, %v4470_v32  ;;  %v4524_v36 = vmax.f32 %v4500_v42, 0.0  ;;  %v5130_v32 = vld [vmem:[%s6803_s13 + $0x38] sm:$0xff] }
 0x3fe   : > { %v4527_v50 = vmax.f32 %v4503_v21, 0.0 }
 0x3ff   : > { %v4525_v44 = vmax.f32 %v4501_v26, 0.0 }
 0x400   : > { %v4541_v61 = vpack.c.bf16 %v4527_v50, %v4526_v7  ;;  %v5133_v50 = vld [vmem:[%s6803_s13 + $0x50] sm:$0xff] }
 0x401   : > { %v4540_v30 = vpack.c.bf16 %v4525_v44, %v4524_v36 }
 0x403   : > { %5846 = vmatprep.mubr.bf16.mxu0 %v4540_v30  ;;  %v5131_v30 = vld [vmem:[%s6803_s13 + $0x40] sm:$0xff] }
 0x404   : > { %5847 = vmatmul.mubr.bf16.gmra.mrb[120].mxu0 %v4541_v61 }
 0x407   : > { %v5812_v60 = vpop.f32.mrb[20].mxu1 }
 0x408   : > { %v5910_v14 = vadd.f32 %v5812_v60, %v7646_v2  ;;  %v4335_v59 = vpop.f32.mrb[21].mxu1 }
 0x409   : > { %v5911_v24 = vadd.f32 %v4335_v59, %v7648_v11  ;;  %v5813_v18 = vpop.f32.mrb[22].mxu1 }
 0x40a   : > { %v4475_v41 = vmul.f32 %v5910_v14, %v7684_v16  ;;  %v5912_v29 = vadd.f32 %v5813_v18, %v7653_v27  ;;  %v4338_v62 = vpop.f32.mrb[23].mxu1 }
 0x40b   : > { %v4473_v46 = vmul.f32 %v5911_v24, %v7684_v16  ;;  %v5913_v58 = vadd.f32 %v4338_v62, %v7655_v47 }
 0x40c   : > { %v4506_v43 = vadd.f32 %v7689_v6, %v4475_v41  ;;  %v4476_v45 = vmul.f32 %v5912_v29, %v7684_v16 }
 0x40d   : > { %v4504_v39 = vadd.f32 %v7689_v6, %v4473_v46  ;;  %v4474_v2 = vmul.f32 %v5913_v58, %v7684_v16 }
 0x40e   : > { %v4507_v11 = vadd.f32 %v7689_v6, %v4476_v45  ;;  %v4530_v28 = vmax.f32 %v4506_v43, 0.0  ;;  %v5136_v45 = vld [vmem:[%s6803_s13 + $0x68] sm:$0xff] }
 0x40f   : > { %v4505_v23 = vadd.f32 %v7689_v6, %v4474_v2  ;;  %v4528_v33 = vmax.f32 %v4504_v39, 0.0  ;;  %v7780_v6 = vld [vmem:[%s8028_s30] ss:$0 sm:$0xff]  ;;  %s6353_s30 = sshll.u32 %s6488_s16, 4  ;;  %s6354_s30 = int_to_ptr.vmem [resolvable:$false] %s6353_s30 }
 0x410   : > { %v4531_v27 = vmax.f32 %v4507_v11, 0.0  ;;  %s6355_s29 = scalar_lea.vmem %s6354_s30, 6144  ;;  %p6356_p2 = scmp.lt.s32.totalorder %s7883_s11, %s6354_s30 }
 0x411   : > { %v4529_v31 = vmax.f32 %v4505_v23, 0.0  ;;  %v5134_v23 = vld [vmem:[%s6803_s13 + $0x58] sm:$0xff]  ;;  %p6357_p5 = scmp.lt.s32.totalorder %s6355_s29, %s6349_s9 }
 0x412   : > { %v4543_v12 = vpack.c.bf16 %v4531_v27, %v4530_v28 }
 0x413   : > { %v4542_v47 = vpack.c.bf16 %v4529_v31, %v4528_v33  ;;  %v5137_v31 = vld [vmem:[%s6803_s13 + $0x70] sm:$0xff]  ;;  %p6358_p8 = por %p6357_p5, %p6356_p2 }
 0x415   : > { %5850 = vmatprep.mubr.bf16.mxu0 %v4542_v47  ;;  %p6359_p12 = pnand %p6358_p8, %p6352_p0 }
 0x416   : > { %5851 = vmatmul.mubr.bf16.gmra.mrb[124].mxu0 %v4543_v12 }
 0x4b7   : > { %v5832_v16 = vpop.f32.mrb[104].mxu0 }
 0x4b8   : > { %v4746_v48 = vmul.f32 %v5832_v16, %v7775_v34  ;;  %v4642_v56 = vpop.f32.mrb[105].mxu0 }
 0x4b9   : > { %v4744_v52 = vmul.f32 %v7775_v34, %v4642_v56  ;;  %v5833_v49 = vpop.f32.mrb[106].mxu0 }
 0x4ba   : > { %v4777_v25 = vadd.f32 %v7780_v6, %v4746_v48  ;;  %v4747_v40 = vmul.f32 %v5833_v49, %v7775_v34  ;;  %v4645_v8 = vpop.f32.mrb[107].mxu0  ;;  %v5135_v48 = vld [vmem:[%s6803_s13 + $0x60] sm:$0xff] }
 0x4bb   : > { %v4775_v20 = vadd.f32 %v7780_v6, %v4744_v52  ;;  %v4745_v19 = vmul.f32 %v7775_v34, %v4645_v8 }
 0x4bc   : > { %v4828_v1 = vadd.f32 %v5128_v37, %v4777_v25  ;;  %v4778_v0 = vadd.f32 %v7780_v6, %v4747_v40 }
 0x4bd   : > { %v4826_v3 = vadd.f32 %v5126_v13, %v4775_v20  ;;  %v4776_v35 = vadd.f32 %v7780_v6, %v4745_v19 }
 0x4be   : > { %v4852_v57 = vmax.f32 %v4828_v1, 0.0  ;;  %v4829_v22 = vadd.f32 %v5129_v17, %v4778_v0  ;;  %v5140_v1 = vld [vmem:[%s6803_s13 + $0x88] sm:$0xff] }
 0x4bf   : > { %v4850_v10 = vmax.f32 %v4826_v3, 0.0  ;;  %v4827_v15 = vadd.f32 %v5127_v55, %v4776_v35  ;;  %v5836_v54 = vpop.f32.mrb[108].mxu0  ;;  %v5138_v35 = vld [vmem:[%s6803_s13 + $0x78] sm:$0xff] }
 0x4c0   : > { %4876 = vst [vmem:[%s7024_s12 + $0x10] sm:$0xff] %v4852_v57  ;;  %v4853_v63 = vmax.f32 %v4829_v22, 0.0  ;;  %v4750_v51 = vmul.f32 %v5836_v54, %v7775_v34  ;;  %v4658_v9 = vpop.f32.mrb[109].mxu0 }
 0x4c1   : > { %4874 = vst [vmem:[%s7024_s12] sm:$0xff] %v4850_v10  ;;  %v4851_v38 = vmax.f32 %v4827_v15, 0.0  ;;  %v4748_v53 = vmul.f32 %v7775_v34, %v4658_v9  ;;  %v5837_v4 = vpop.f32.mrb[110].mxu0  ;;  %v5141_v15 = vld [vmem:[%s6803_s13 + $0x90] sm:$0xff]  ;;  %v5139_v9 = vld [vmem:[%s6803_s13 + $0x80] sm:$0xff] }
 0x4c2   : > { %4877 = vst [vmem:[%s7024_s12 + $0x18] sm:$0xff] %v4853_v63  ;;  %v4781_v42 = vadd.f32 %v7780_v6, %v4750_v51  ;;  %v4751_v21 = vmul.f32 %v5837_v4, %v7775_v34  ;;  %v4661_v26 = vpop.f32.mrb[111].mxu0 }
 0x4c3   : > { %4875 = vst [vmem:[%s7024_s12 + $0x8] sm:$0xff] %v4851_v38  ;;  %v4779_v7 = vadd.f32 %v7780_v6, %v4748_v53  ;;  %v4749_v36 = vmul.f32 %v7775_v34, %v4661_v26 }
 0x4c4   : > { %v4832_v44 = vadd.f32 %v5132_v5, %v4781_v42  ;;  %v4782_v61 = vadd.f32 %v7780_v6, %v4751_v21 }
 0x4c5   : > { %v4830_v60 = vadd.f32 %v5130_v32, %v4779_v7  ;;  %v4780_v14 = vadd.f32 %v7780_v6, %v4749_v36 }
 0x4c6   : > { %v4856_v59 = vmax.f32 %v4832_v44, 0.0  ;;  %v4833_v24 = vadd.f32 %v5133_v50, %v4782_v61  ;;  %v5144_v44 = vld [vmem:[%s6803_s13 + $0xa8] sm:$0xff] }
 0x4c7   : > { %v4854_v18 = vmax.f32 %v4830_v60, 0.0  ;;  %v4831_v41 = vadd.f32 %v5131_v30, %v4780_v14  ;;  %v5840_v29 = vpop.f32.mrb[112].mxu0  ;;  %v5142_v14 = vld [vmem:[%s6803_s13 + $0x98] sm:$0xff] }
 0x4c8   : > { %4880 = vst [vmem:[%s7024_s12 + $0x30] sm:$0xff] %v4856_v59  ;;  %v4857_v62 = vmax.f32 %v4833_v24, 0.0  ;;  %v4754_v46 = vmul.f32 %v5840_v29, %v7775_v34  ;;  %v4674_v58 = vpop.f32.mrb[113].mxu0 }
 0x4c9   : > { %4878 = vst [vmem:[%s7024_s12 + $0x20] sm:$0xff] %v4854_v18  ;;  %v4855_v43 = vmax.f32 %v4831_v41, 0.0  ;;  %v4752_v39 = vmul.f32 %v7775_v34, %v4674_v58  ;;  %v5841_v2 = vpop.f32.mrb[114].mxu0  ;;  %v5145_v41 = vld [vmem:[%s6803_s13 + $0xb0] sm:$0xff]  ;;  %v5143_v58 = vld [vmem:[%s6803_s13 + $0xa0] sm:$0xff] }
 0x4ca   : > { %4881 = vst [vmem:[%s7024_s12 + $0x38] sm:$0xff] %v4857_v62  ;;  %v4785_v11 = vadd.f32 %v7780_v6, %v4754_v46  ;;  %v4755_v28 = vmul.f32 %v5841_v2, %v7775_v34  ;;  %v4677_v27 = vpop.f32.mrb[115].mxu0 }
 0x4cb   : > { %4879 = vst [vmem:[%s7024_s12 + $0x28] sm:$0xff] %v4855_v43  ;;  %v4783_v33 = vadd.f32 %v7780_v6, %v4752_v39  ;;  %v4753_v12 = vmul.f32 %v7775_v34, %v4677_v27 }
 0x4cc   : > { %v4836_v47 = vadd.f32 %v5136_v45, %v4785_v11  ;;  %v4786_v16 = vadd.f32 %v7780_v6, %v4755_v28 }
 0x4cd   : > { %v4834_v56 = vadd.f32 %v5134_v23, %v4783_v33  ;;  %v4784_v37 = vadd.f32 %v7780_v6, %v4753_v12 }
 0x4ce   : > { %v4860_v52 = vmax.f32 %v4836_v47, 0.0  ;;  %v4837_v49 = vadd.f32 %v5137_v31, %v4786_v16  ;;  %v5148_v47 = vld [vmem:[%s6803_s13 + $0xc8] sm:$0xff] }
 0x4cf   : > { %v4858_v25 = vmax.f32 %v4834_v56, 0.0  ;;  %v4835_v13 = vadd.f32 %v5135_v48, %v4784_v37  ;;  %v5844_v40 = vpop.f32.mrb[116].mxu0  ;;  %v5146_v37 = vld [vmem:[%s6803_s13 + $0xb8] sm:$0xff] }
 0x4d0   : > { %4884 = vst [vmem:[%s7024_s12 + $0x50] sm:$0xff] %v4860_v52  ;;  %v4861_v8 = vmax.f32 %v4837_v49, 0.0  ;;  %v4758_v20 = vmul.f32 %v5844_v40, %v7775_v34  ;;  %v4690_v17 = vpop.f32.mrb[117].mxu0 }
 0x4d1   : > { %4882 = vst [vmem:[%s7024_s12 + $0x40] sm:$0xff] %v4858_v25  ;;  %v4859_v19 = vmax.f32 %v4835_v13, 0.0  ;;  %v4756_v0 = vmul.f32 %v7775_v34, %v4690_v17  ;;  %v5845_v55 = vpop.f32.mrb[118].mxu0  ;;  %v5149_v13 = vld [vmem:[%s6803_s13 + $0xd0] sm:$0xff]  ;;  %v5147_v17 = vld [vmem:[%s6803_s13 + $0xc0] sm:$0xff]  ;;  %s7890_s13 = scalar_lea.sflag [#allocation6], %s431_s6 }
 0x4d2   : > { %4885 = vst [vmem:[%s7024_s12 + $0x58] sm:$0xff] %v4861_v8  ;;  %v4789_v3 = vadd.f32 %v7780_v6, %v4758_v20  ;;  %v4759_v57 = vmul.f32 %v5845_v55, %v7775_v34  ;;  %v4693_v22 = vpop.f32.mrb[119].mxu0 }
 0x4d3   : > { %4883 = vst [vmem:[%s7024_s12 + $0x48] sm:$0xff] %v4859_v19  ;;  %v4787_v10 = vadd.f32 %v7780_v6, %v4756_v0  ;;  %v4757_v54 = vmul.f32 %v7775_v34, %v4693_v22 }
 0x4d4   : > { %v4840_v63 = vadd.f32 %v5140_v1, %v4789_v3  ;;  %v4790_v51 = vadd.f32 %v7780_v6, %v4759_v57 }
 0x4d5   : > { %v4838_v38 = vadd.f32 %v5138_v35, %v4787_v10  ;;  %v4788_v5 = vadd.f32 %v7780_v6, %v4757_v54 }
 0x4d6   : > { %v4864_v53 = vmax.f32 %v4840_v63, 0.0  ;;  %v4841_v4 = vadd.f32 %v5141_v15, %v4790_v51 }
 0x4d7   : > { %v4862_v42 = vmax.f32 %v4838_v38, 0.0  ;;  %v4839_v32 = vadd.f32 %v5139_v9, %v4788_v5  ;;  %v5848_v21 = vpop.f32.mrb[120].mxu0 }
 0x4d8   : > { %4888 = vst [vmem:[%s7024_s12 + $0x70] sm:$0xff] %v4864_v53  ;;  %v4865_v26 = vmax.f32 %v4841_v4, 0.0  ;;  %v4762_v7 = vmul.f32 %v5848_v21, %v7775_v34  ;;  %v4706_v50 = vpop.f32.mrb[121].mxu0 }
 0x4d9   : > { %4886 = vst [vmem:[%s7024_s12 + $0x60] sm:$0xff] %v4862_v42  ;;  %v4863_v36 = vmax.f32 %v4839_v32, 0.0  ;;  %v4760_v61 = vmul.f32 %v7775_v34, %v4706_v50  ;;  %v5849_v30 = vpop.f32.mrb[122].mxu0 }
 0x4da   : > { %4889 = vst [vmem:[%s7024_s12 + $0x78] sm:$0xff] %v4865_v26  ;;  %v4793_v60 = vadd.f32 %v7780_v6, %v4762_v7  ;;  %v4763_v59 = vmul.f32 %v5849_v30, %v7775_v34  ;;  %v4709_v24 = vpop.f32.mrb[123].mxu0 }
 0x4db   : > { %4887 = vst [vmem:[%s7024_s12 + $0x68] sm:$0xff] %v4863_v36  ;;  %v4791_v18 = vadd.f32 %v7780_v6, %v4760_v61  ;;  %v4761_v29 = vmul.f32 %v7775_v34, %v4709_v24 }
 0x4dc   : > { %v4844_v62 = vadd.f32 %v5144_v44, %v4793_v60  ;;  %v4794_v46 = vadd.f32 %v7780_v6, %v4763_v59 }
 0x4dd   : > { %v4842_v43 = vadd.f32 %v5142_v14, %v4791_v18  ;;  %v4792_v45 = vadd.f32 %v7780_v6, %v4761_v29 }
 0x4de   : > { %v4868_v39 = vmax.f32 %v4844_v62, 0.0  ;;  %v4845_v2 = vadd.f32 %v5145_v41, %v4794_v46 }
 0x4df   : > { %v4866_v11 = vmax.f32 %v4842_v43, 0.0  ;;  %v4843_v23 = vadd.f32 %v5143_v58, %v4792_v45 }
 0x4e0   : > { %4892 = vst [vmem:[%s7024_s12 + $0x90] sm:$0xff] %v4868_v39  ;;  %v4869_v28 = vmax.f32 %v4845_v2, 0.0 }
 0x4e1   : > { %4890 = vst [vmem:[%s7024_s12 + $0x80] sm:$0xff] %v4866_v11  ;;  %v4867_v27 = vmax.f32 %v4843_v23, 0.0 }
 0x4e2   : > { %4893 = vst [vmem:[%s7024_s12 + $0x98] sm:$0xff] %v4869_v28 }
 0x4e3   : > { %4891 = vst [vmem:[%s7024_s12 + $0x88] sm:$0xff] %v4867_v27 }
 0x4e9   : > { %v5852_v33 = vpop.f32.mrb[124].mxu0 }
 0x4ea   : > { %v4766_v31 = vmul.f32 %v5852_v33, %v7775_v34  ;;  %v4722_v12 = vpop.f32.mrb[125].mxu0 }
 0x4eb   : > { %v4764_v16 = vmul.f32 %v7775_v34, %v4722_v12  ;;  %v5853_v48 = vpop.f32.mrb[126].mxu0 }
 0x4ec   : > { %v4797_v56 = vadd.f32 %v7780_v6, %v4766_v31  ;;  %v4767_v52 = vmul.f32 %v5853_v48, %v7775_v34  ;;  %v4725_v49 = vpop.f32.mrb[127].mxu0 }
 0x4ed   : > { %v4795_v25 = vadd.f32 %v7780_v6, %v4764_v16  ;;  %v4765_v40 = vmul.f32 %v7775_v34, %v4725_v49 }
 0x4ee   : > { %v4848_v8 = vadd.f32 %v5148_v47, %v4797_v56  ;;  %v4798_v20 = vadd.f32 %v7780_v6, %v4767_v52 }
 0x4ef   : > { %v4846_v19 = vadd.f32 %v5146_v37, %v4795_v25  ;;  %v4796_v1 = vadd.f32 %v7780_v6, %v4765_v40 }
 0x4f0   : > { %v4872_v0 = vmax.f32 %v4848_v8, 0.0  ;;  %v4849_v55 = vadd.f32 %v5149_v13, %v4798_v20 }
 0x4f1   : > { %v4870_v3 = vmax.f32 %v4846_v19, 0.0  ;;  %v4847_v35 = vadd.f32 %v5147_v17, %v4796_v1 }
 0x4f2   : > { %4896 = vst [vmem:[%s7024_s12 + $0xb0] sm:$0xff] %v4872_v0  ;;  %v4873_v34 = vmax.f32 %v4849_v55, 0.0 }
 0x4f3   : > { %4894 = vst [vmem:[%s7024_s12 + $0xa0] sm:$0xff] %v4870_v3  ;;  %v4871_v6 = vmax.f32 %v4847_v35, 0.0 }
 0x4f4   : > { %4897 = vst [vmem:[%s7024_s12 + $0xb8] sm:$0xff] %v4873_v34 }
 0x4f5   : > { %4895 = vst [vmem:[%s7024_s12 + $0xa8] sm:$0xff] %v4871_v6 }
 0x4f6   : > { %6362 = shalt.err (!%p6359_p12)
}
 0x4f7   : > { %s6363_s6 = scalar_lea.hbm %s7881_s8, 3072  ;;  %s6367_s20 = scalar_lea.hbm %s8031_s7, 12288 }
 0x4f8   : > { %p6364_p1 = scmp.ne.s32.totalorder %s7881_s8, %s6363_s6  ;;  %p6368_p3 = scmp.lt.u32.totalorder %s7881_s8, %s8031_s7 }
 0x4f9   : > { %p6369_p4 = scmp.lt.u32.totalorder %s6367_s20, %s6363_s6  ;;  %p6371_p9 = scmp.lt.u32.totalorder %s6363_s6, %s7881_s8 }
 0x4fa   : > { %p6365_p6 = pnand %p6364_p1, %p8032_p11 }
 0x4fb   : > { %p6370_p7 = por %p6369_p4, %p6368_p3 }
 0x4fc   : > { %p6366_p10 = pneg %p6365_p6 }
 0x4fd   : > { %p6372_p13 = por %p6371_p9, %p6370_p7 }
 0x4ff   : > { %p6373_p0 = pnand %p6372_p13, %p6366_p10 }
 0x501   : > { %6376 = shalt.err (!%p6373_p0)
}
 0x502   : > { %s6489_s24 = smov 128   ;;  %s6490_s14 = smov 8  }
 0x503   : > { %6074 = dma.vmem_to_hbm [thread:$0]  (%p8032_p11), %s7883_s11, 3072, %s7881_s8, %s7890_s13, %s6489_s24, %s6489_s24, %s6490_s14  }
 0x504 PF: > { %s8033_s9 = sld [smem:[#allocation13_spill]]  ;;  %s8034_s16 = sld [smem:[#allocation17_spill]] }
 0x505   : > { %p6091_p2 = scmp.ge.s32.totalorder %s6475_s27, 2 }
 0x50a   : > { %s4930_s30 = sand.u32 1, %s8033_s9   ;;  %p8035_p5 = scmp.ne.s32.totalorder %s8034_s16, 0 }
 0x50b   : > { %s4931_s29 = scalar_lea.sflag [#allocation6], %s4930_s30 }
 0x50c   : > { %p6085_p8 = pnand %p6091_p2, %p8035_p5 }
 0x50e   : > { %6430 = dma.done.wait (!%p6085_p8), %s4931_s29, 3072  }
 0x50f   : > { %6432 = vsyncadd (!%p6085_p8), %s4931_s29, 4294964224  ;;  %s28_s27 = sadd.s32 1, %s6475_s27   ;;  %s8036_s23 = sld [smem:[#allocation15_spill]] }
 0x510   : > { %p25_p12 = scmp.ge.s32.totalorder %s28_s27, 6   ;;  %s8037_s11 = sld [smem:[#allocation18_spill]] }
 0x511   : > { %s8038_s8 = sld [smem:[#allocation19_spill]]  ;;  %s8039_s17 = smov %s6439_s18 }
 0x512   : > { %s8040_s18 = smov %s6443_s19  ;;  %s8041_s19 = smov %s6688_s25 }
 0x513   : > { %s8042_s20 = smov %s6451_s21  ;;  %s8043_s21 = smov %s6455_s22 }
 0x514   : > { %s8044_s22 = smov %s6683_s5  ;;  %s8045_s24 = smov %s6471_s26 }
 0x515   :  { %27 = sbr.rel (!%p25_p12) target bundleno = 18 (0x12), region = 131 }
 0x516   : > { %s8046_s25 = smov %s8037_s11 }
 0x517   : > { %s8047_s26 = smov %s8038_s8 }
 0x51c   :  { %4936 = vsyncpa [#allocation5], 1 }
 0x51d   :  { %4938 = vsyncpa [#allocation5 + $0x1], 1 }
 0x51e   :  { %4939 = vsyncpa [#allocation8], 1 }
 0x51f   :  { %4940 = vsyncpa [#allocation6], 1 }
 0x520   :  { %4942 = vsyncpa [#allocation6 + $0x1], 1 }

</bundles_post_ra>
